<compile_context>
chip_gen: v7x
topology: tpu7x:2x2x1
jax: 0.10.0
libtpu: 0.0.40
codegen_flags: <defaults>
</compile_context>

<pallas_src>
import functools

import jax
import jax.numpy as jnp
from jax import lax
from jax.experimental import pallas as pl
from jax.experimental.pallas import tpu as pltpu

LRELU_SLOPE = 0.01   # nn.LeakyReLU() default
BN_EPS = 1e-5        # nn.BatchNorm2d default
LANE = 128


def _cpad(c):
    return ((c + LANE - 1) // LANE) * LANE


def _lrelu(x):
    return jnp.where(x >= 0, x, LRELU_SLOPE * x)


# ----------------------------------------------------------------------------
# Kernel A: Conv2d(k=3, s=1, p=1) + bias + LeakyReLU (the in_conv)
# ----------------------------------------------------------------------------
def _conv_s1_kernel(x0_ref, x1_ref, x2_ref, w_ref, b_ref, o_ref):
    width = o_ref.shape[0]          # W (output columns of this row)
    cin_p = x0_ref.shape[1]         # padded input channels
    rows = (x0_ref, x1_ref, x2_ref)
    acc = jnp.zeros(o_ref.shape, jnp.float32)
    for kh in range(3):
        row = rows[kh][...]                                  # (W+2, cin_p) bf16
        for kw in range(3):
            a = row[kw:kw + width, :]                        # (W, cin_p)
            t = kh * 3 + kw
            wt = w_ref[t * cin_p:(t + 1) * cin_p, :]         # (cin_p, cout_p) bf16
            acc += jnp.dot(a, wt, preferred_element_type=jnp.float32)
    acc = acc + b_ref[...]
    o_ref[...] = _lrelu(acc).astype(o_ref.dtype)


def conv3x3_s1_lrelu(xp, w_mat, bias_row):
    """xp: (N, H+2, W+2, cin_p) bf16 (spatially pre-padded, channel lane-padded)."""
    N, Hp, Wp, cin_p = xp.shape
    H, W = Hp - 2, Wp - 2
    cout_p = w_mat.shape[1]

    def xspec(kh):
        return pl.BlockSpec((None, None, Wp, cin_p),
                            lambda n, i, kh=kh: (n, i + kh, 0, 0))

    return pl.pallas_call(
        _conv_s1_kernel,
        out_shape=jax.ShapeDtypeStruct((N, H, W, cout_p), jnp.bfloat16),
        grid=(N, H),
        in_specs=[xspec(0), xspec(1), xspec(2),
                  pl.BlockSpec((9 * cin_p, cout_p), lambda n, i: (0, 0)),
                  pl.BlockSpec((1, cout_p), lambda n, i: (0, 0))],
        out_specs=pl.BlockSpec((None, None, W, cout_p), lambda n, i: (n, i, 0, 0)),
        compiler_params=pltpu.CompilerParams(
            dimension_semantics=("parallel", "parallel")),
    )(xp, xp, xp, w_mat, bias_row)


# ----------------------------------------------------------------------------
# Kernel B: Conv2d(k=3, s=2, p=1) + bias, with fused per-channel sum / sumsq
# (for training-mode BatchNorm) accumulated into a resident stats output.
# ----------------------------------------------------------------------------
def _conv_s2_kernel(x0_ref, x1_ref, x2_ref, w_ref, b_ref, y_ref, s_ref):
    wo = y_ref.shape[0]             # output columns of this row
    cin2_p = x0_ref.shape[1]        # 2 * padded input channels (pair-grouped)

    first = jnp.logical_and(pl.program_id(0) == 0, pl.program_id(1) == 0)

    @pl.when(first)
    def _():
        s_ref[...] = jnp.zeros_like(s_ref)

    rows = (x0_ref, x1_ref, x2_ref)
    acc = jnp.zeros(y_ref.shape, jnp.float32)
    for kh in range(3):
        row = rows[kh][...]                                   # (Wo+1, 2*cin_p) bf16
        for b in range(2):                                    # column-pair offset
            a = row[b:b + wo, :]                              # (Wo, 2*cin_p)
            t = kh * 2 + b
            wt = w_ref[t * cin2_p:(t + 1) * cin2_p, :]        # (2*cin_p, cout_p)
            acc += jnp.dot(a, wt, preferred_element_type=jnp.float32)
    acc = acc + b_ref[...]
    y_ref[...] = acc.astype(y_ref.dtype)
    # fused BN statistics epilogue
    s_ref[0:1, :] += jnp.sum(acc, axis=0, keepdims=True)
    s_ref[1:2, :] += jnp.sum(acc * acc, axis=0, keepdims=True)


def conv3x3_s2_stats(x, w_mat, bias_row):
    """x: (N, H, W, cin_p) bf16, H and W even. Returns (y, stats)."""
    N, H, W, cin_p = x.shape
    assert H % 2 == 0 and W % 2 == 0
    Ho, Wo = H // 2, W // 2
    cin2_p = 2 * cin_p
    cout_p = w_mat.shape[1]

    # top pad by 1 row, left pad by 2 cols (= 1 zero column-pair), then the FREE
    # reshape that groups column pairs: (N, H+1, Wo+1, 2*cin_p).
    xg = jnp.pad(x, ((0, 0), (1, 0), (2, 0), (0, 0)))
    xg = xg.reshape(N, H + 1, Wo + 1, cin2_p)

    def xspec(kh):
        return pl.BlockSpec((None, None, Wo + 1, cin2_p),
                            lambda n, i, kh=kh: (n, 2 * i + kh, 0, 0))

    y, stats = pl.pallas_call(
        _conv_s2_kernel,
        out_shape=(jax.ShapeDtypeStruct((N, Ho, Wo, cout_p), jnp.bfloat16),
                   jax.ShapeDtypeStruct((8, cout_p), jnp.float32)),
        grid=(N, Ho),
        in_specs=[xspec(0), xspec(1), xspec(2),
                  pl.BlockSpec((6 * cin2_p, cout_p), lambda n, i: (0, 0)),
                  pl.BlockSpec((1, cout_p), lambda n, i: (0, 0))],
        out_specs=(pl.BlockSpec((None, None, Wo, cout_p), lambda n, i: (n, i, 0, 0)),
                   pl.BlockSpec((8, cout_p), lambda n, i: (0, 0))),
        compiler_params=pltpu.CompilerParams(
            dimension_semantics=("arbitrary", "arbitrary")),  # stats accumulate sequentially
    )(xg, xg, xg, w_mat, bias_row)
    return y, stats


# ----------------------------------------------------------------------------
# Kernel C: per-channel affine (folded BatchNorm) + LeakyReLU
# ----------------------------------------------------------------------------
def _bn_lrelu_kernel(y_ref, sc_ref, sh_ref, o_ref):
    v = y_ref[...].astype(jnp.float32) * sc_ref[...] + sh_ref[...]
    o_ref[...] = jnp.where(v >= 0, v, LRELU_SLOPE * v).astype(o_ref.dtype)


def bn_lrelu(y, scale_row, shift_row):
    N, Ho, Wo, cp = y.shape
    return pl.pallas_call(
        _bn_lrelu_kernel,
        out_shape=jax.ShapeDtypeStruct(y.shape, jnp.bfloat16),
        grid=(N, Ho),
        in_specs=[pl.BlockSpec((None, None, Wo, cp), lambda n, i: (n, i, 0, 0)),
                  pl.BlockSpec((1, cp), lambda n, i: (0, 0)),
                  pl.BlockSpec((1, cp), lambda n, i: (0, 0))],
        out_specs=pl.BlockSpec((None, None, Wo, cp), lambda n, i: (n, i, 0, 0)),
        compiler_params=pltpu.CompilerParams(
            dimension_semantics=("parallel", "parallel")),
    )(y, scale_row, shift_row)


# ----------------------------------------------------------------------------
# Parameter preparation (lane-padded, bf16, tap-major weight layouts)
# ----------------------------------------------------------------------------
def _prep_w_s1(w, cin_p, cout_p):
    cout, cin = w.shape[0], w.shape[1]
    wt = jnp.transpose(w, (2, 3, 1, 0))                    # [kh, kw, c, o]
    wz = jnp.zeros((3, 3, cin_p, cout_p), jnp.float32)
    wz = wz.at[:, :, :cin, :cout].set(wt)
    return wz.reshape(9 * cin_p, cout_p).astype(jnp.bfloat16)


def _prep_w_s2(w, cin_p, cout_p):
    cout, cin = w.shape[0], w.shape[1]
    wt = jnp.transpose(w, (2, 3, 1, 0))                    # [kh, kw, c, o]
    wz = jnp.zeros((3, 2, 2, cin_p, cout_p), jnp.float32)  # [kh, pair_off b, parity q, c, o]
    for kh in range(3):
        for b in range(2):
            for q in range(2):
                kw = 2 * b + q - 1
                if 0 <= kw <= 2:
                    wz = wz.at[kh, b, q, :cin, :cout].set(wt[kh, kw])
    return wz.reshape(12 * cin_p, cout_p).astype(jnp.bfloat16)


def _prep_bias(b, cout_p):
    return jnp.zeros((1, cout_p), jnp.float32).at[0, :b.shape[0]].set(b)


def _pad_vec(v, cp):
    return jnp.zeros((cp,), jnp.float32).at[:v.shape[0]].set(v)


def init_params(key, in_f, emb_f, max_f, num_b):
    chans = [in_f, emb_f] + [min(emb_f * 2 ** (i + 1), max_f) for i in range(num_b)]
    keys = jax.random.split(key, 2 + 4 * num_b)
    raw = {"in_w": 0.1 * jax.random.normal(keys[0], (emb_f, in_f, 3, 3), jnp.float32),
           "in_b": 0.1 * jax.random.normal(keys[1], (emb_f,), jnp.float32),
           "blocks": []}
    k = 2
    for i in range(num_b):
        cin, cout = chans[i + 1], chans[i + 2]
        raw["blocks"].append({
            "w": 0.1 * jax.random.normal(keys[k], (cout, cin, 3, 3), jnp.float32),
            "b": 0.1 * jax.random.normal(keys[k + 1], (cout,), jnp.float32),
            "gamma": 1.0 + 0.1 * jax.random.normal(keys[k + 2], (cout,), jnp.float32),
            "beta": 0.1 * jax.random.normal(keys[k + 3], (cout,), jnp.float32),
        })
        k += 4
    kern = {"in_w": _prep_w_s1(raw["in_w"], _cpad(in_f), _cpad(emb_f)),
            "in_b": _prep_bias(raw["in_b"], _cpad(emb_f)),
            "blocks": []}
    for i, blk in enumerate(raw["blocks"]):
        cin, cout = chans[i + 1], chans[i + 2]
        kern["blocks"].append({
            "w": _prep_w_s2(blk["w"], _cpad(cin), _cpad(cout)),
            "b": _prep_bias(blk["b"], _cpad(cout)),
            "gamma": _pad_vec(blk["gamma"], _cpad(cout)),
            "beta": _pad_vec(blk["beta"], _cpad(cout)),
        })
    return raw, kern, tuple(chans)


# ----------------------------------------------------------------------------
# Encoder forward (default get_skip=False path)
# ----------------------------------------------------------------------------
def encoder_forward(params, x_nchw, *, chans):
    in_f = x_nchw.shape[1]
    cin_p = _cpad(in_f)

    x = jnp.transpose(x_nchw.astype(jnp.float32), (0, 2, 3, 1))        # NHWC
    xp = jnp.pad(x, ((0, 0), (1, 1), (1, 1), (0, cin_p - in_f))).astype(jnp.bfloat16)

    # in_conv: Conv2d(in_f, emb_f, 3, p=1) + LeakyReLU
    h = conv3x3_s1_lrelu(xp, params["in_w"], params["in_b"])

    for idx, blk in enumerate(params["blocks"]):
        cout = chans[idx + 2]
        cout_p = _cpad(cout)
        y, stats = conv3x3_s2_stats(h, blk["w"], blk["b"])
        N, Ho, Wo, _ = y.shape
        if Ho > 1 or Wo > 1:
            # training-mode BatchNorm2d (batch stats, biased variance)
            M = N * Ho * Wo
            mean = stats[0] / M
            var = jnp.maximum(stats[1] / M - mean * mean, 0.0)
            scale = blk["gamma"] * lax.rsqrt(var + BN_EPS)
            shift = blk["beta"] - mean * scale
        else:
            scale = jnp.ones((cout_p,), jnp.float32)
            shift = jnp.zeros((cout_p,), jnp.float32)
        h = bn_lrelu(y, scale.reshape(1, cout_p), shift.reshape(1, cout_p))

    out = h[:, :, :, :chans[-1]].astype(jnp.float32)
    return jnp.transpose(out, (0, 3, 1, 2))                            # NCHW


# ----------------------------------------------------------------------------
# Pure-JAX reference (mirrors the PyTorch module, fp32)
# ----------------------------------------------------------------------------
def encoder_reference(raw, x_nchw):
    def conv(x, w, b, stride):
        y = lax.conv_general_dilated(
            x, w, window_strides=(stride, stride), padding=((1, 1), (1, 1)),
            dimension_numbers=("NCHW", "OIHW", "NCHW"),
            precision=lax.Precision.HIGHEST)
        return y + b[None, :, None, None]

    x = _lrelu(conv(x_nchw, raw["in_w"], raw["in_b"], 1))
    for blk in raw["blocks"]:
        x = conv(x, blk["w"], blk["b"], 2)
        if x.shape[2] > 1 or x.shape[3] > 1:
            m = jnp.mean(x, axis=(0, 2, 3), keepdims=True)
            v = jnp.mean((x - m) ** 2, axis=(0, 2, 3), keepdims=True)
            x = (x - m) * lax.rsqrt(v + BN_EPS) * blk["gamma"][None, :, None, None] \
                + blk["beta"][None, :, None, None]
        x = _lrelu(x)
    return x


# ----------------------------------------------------------------------------
if __name__ == "__main__":
    in_f, emb_f, max_f, num_b = 3, 16, 64, 3
    batch, spatial = 2, 16

    key = jax.random.PRNGKey(0)
    kp, kx = jax.random.split(key)
    raw, kern, chans = init_params(kp, in_f, emb_f, max_f, num_b)
    x = jax.random.normal(kx, (batch, in_f, spatial, spatial), jnp.float32)

    fwd = jax.jit(functools.partial(encoder_forward, chans=chans))
    y = fwd(kern, x)
    jax.block_until_ready(y)

    out_c = min(emb_f * 2 ** num_b, max_f)
    out_s = spatial // (2 ** num_b)
    assert y.shape == (batch, out_c, out_s, out_s), y.shape
    assert bool(jnp.all(jnp.isfinite(y)))

    y_ref = encoder_reference(raw, x)
    err = float(jnp.max(jnp.abs(y - y_ref)))
    assert err < 0.15, f"max abs err vs reference: {err}"

    print("KERNEL_OK")
</pallas_src>

<mosaic_0001>
module attributes {stable_mosaic.version = 11 : i64} {
  func.func @_conv_s1_kernel(%arg0: i32, %arg1: i32, %arg2: memref<1x1x18x128xbf16, #tpu.memory_space<vmem>>, %arg3: memref<1x1x18x128xbf16, #tpu.memory_space<vmem>>, %arg4: memref<1x1x18x128xbf16, #tpu.memory_space<vmem>>, %arg5: memref<1152x128xbf16, #tpu.memory_space<vmem>>, %arg6: memref<1x128xf32, #tpu.memory_space<vmem>>, %arg7: memref<1x1x16x128xbf16, #tpu.memory_space<vmem>>) attributes {dimension_semantics = [#tpu.dimension_semantics<parallel>, #tpu.dimension_semantics<parallel>], iteration_bounds = array<i64: 2, 16>, scalar_prefetch = 0 : i64, scratch_operands = 0 : i64, tpu.core_type = #tpu.core_type<tc>, window_params = [{transform_indices = @transform_0, window_bounds = array<i64: 1, 1, 18, 128>}, {transform_indices = @transform_1, window_bounds = array<i64: 1, 1, 18, 128>}, {transform_indices = @transform_2, window_bounds = array<i64: 1, 1, 18, 128>}, {pipeline_mode = #tpu.pipeline_mode<synchronous>, transform_indices = @transform_3, window_bounds = array<i64: 1152, 128>}, {pipeline_mode = #tpu.pipeline_mode<synchronous>, transform_indices = @transform_4, window_bounds = array<i64: 1, 128>}, {transform_indices = @transform_5, window_bounds = array<i64: 1, 1, 16, 128>}]} {
    %cst = arith.constant 0.000000e+00 : f32
    %0 = vector.broadcast %cst : f32 to vector<16x128xf32>
    %c0 = arith.constant 0 : index
    %c0_0 = arith.constant 0 : index
    %c0_1 = arith.constant 0 : index
    %c0_2 = arith.constant 0 : index
    %1 = vector.load %arg2[%c0, %c0_0, %c0_1, %c0_2] : memref<1x1x18x128xbf16, #tpu.memory_space<vmem>>, vector<1x1x18x128xbf16>
    %2 = vector.shape_cast %1 : vector<1x1x18x128xbf16> to vector<18x128xbf16>
    %3 = vector.extract_strided_slice %2 {offsets = [0, 0], sizes = [16, 128], strides = [1, 1]} : vector<18x128xbf16> to vector<16x128xbf16>
    %c0_3 = arith.constant 0 : index
    %c0_4 = arith.constant 0 : index
    %4 = vector.load %arg5[%c0_3, %c0_4] : memref<1152x128xbf16, #tpu.memory_space<vmem>>, vector<128x128xbf16>
    %cst_5 = arith.constant dense<0.000000e+00> : vector<16x128xf32>
    %5 = tpu.matmul %3, %4, %cst_5 {dimension_numbers = #tpu.dot_dimension_numbers<[1], [0], [0], [1], [0, 0, 1, 1], [], []>} : vector<16x128xbf16>, vector<128x128xbf16>, vector<16x128xf32> -> vector<16x128xf32>
    %6 = arith.addf %0, %5 : vector<16x128xf32>
    %7 = vector.extract_strided_slice %2 {offsets = [1, 0], sizes = [16, 128], strides = [1, 1]} : vector<18x128xbf16> to vector<16x128xbf16>
    %c128 = arith.constant 128 : index
    %c0_6 = arith.constant 0 : index
    %8 = vector.load %arg5[%c128, %c0_6] : memref<1152x128xbf16, #tpu.memory_space<vmem>>, vector<128x128xbf16>
    %cst_7 = arith.constant dense<0.000000e+00> : vector<16x128xf32>
    %9 = tpu.matmul %7, %8, %cst_7 {dimension_numbers = #tpu.dot_dimension_numbers<[1], [0], [0], [1], [0, 0, 1, 1], [], []>} : vector<16x128xbf16>, vector<128x128xbf16>, vector<16x128xf32> -> vector<16x128xf32>
    %10 = arith.addf %6, %9 : vector<16x128xf32>
    %11 = vector.extract_strided_slice %2 {offsets = [2, 0], sizes = [16, 128], strides = [1, 1]} : vector<18x128xbf16> to vector<16x128xbf16>
    %c256 = arith.constant 256 : index
    %c0_8 = arith.constant 0 : index
    %12 = vector.load %arg5[%c256, %c0_8] : memref<1152x128xbf16, #tpu.memory_space<vmem>>, vector<128x128xbf16>
    %cst_9 = arith.constant dense<0.000000e+00> : vector<16x128xf32>
    %13 = tpu.matmul %11, %12, %cst_9 {dimension_numbers = #tpu.dot_dimension_numbers<[1], [0], [0], [1], [0, 0, 1, 1], [], []>} : vector<16x128xbf16>, vector<128x128xbf16>, vector<16x128xf32> -> vector<16x128xf32>
    %14 = arith.addf %10, %13 : vector<16x128xf32>
    %c0_10 = arith.constant 0 : index
    %c0_11 = arith.constant 0 : index
    %c0_12 = arith.constant 0 : index
    %c0_13 = arith.constant 0 : index
    %15 = vector.load %arg3[%c0_10, %c0_11, %c0_12, %c0_13] : memref<1x1x18x128xbf16, #tpu.memory_space<vmem>>, vector<1x1x18x128xbf16>
    %16 = vector.shape_cast %15 : vector<1x1x18x128xbf16> to vector<18x128xbf16>
    %17 = vector.extract_strided_slice %16 {offsets = [0, 0], sizes = [16, 128], strides = [1, 1]} : vector<18x128xbf16> to vector<16x128xbf16>
    %c384 = arith.constant 384 : index
    %c0_14 = arith.constant 0 : index
    %18 = vector.load %arg5[%c384, %c0_14] : memref<1152x128xbf16, #tpu.memory_space<vmem>>, vector<128x128xbf16>
    %cst_15 = arith.constant dense<0.000000e+00> : vector<16x128xf32>
    %19 = tpu.matmul %17, %18, %cst_15 {dimension_numbers = #tpu.dot_dimension_numbers<[1], [0], [0], [1], [0, 0, 1, 1], [], []>} : vector<16x128xbf16>, vector<128x128xbf16>, vector<16x128xf32> -> vector<16x128xf32>
    %20 = arith.addf %14, %19 : vector<16x128xf32>
    %21 = vector.extract_strided_slice %16 {offsets = [1, 0], sizes = [16, 128], strides = [1, 1]} : vector<18x128xbf16> to vector<16x128xbf16>
    %c512 = arith.constant 512 : index
    %c0_16 = arith.constant 0 : index
    %22 = vector.load %arg5[%c512, %c0_16] : memref<1152x128xbf16, #tpu.memory_space<vmem>>, vector<128x128xbf16>
    %cst_17 = arith.constant dense<0.000000e+00> : vector<16x128xf32>
    %23 = tpu.matmul %21, %22, %cst_17 {dimension_numbers = #tpu.dot_dimension_numbers<[1], [0], [0], [1], [0, 0, 1, 1], [], []>} : vector<16x128xbf16>, vector<128x128xbf16>, vector<16x128xf32> -> vector<16x128xf32>
    %24 = arith.addf %20, %23 : vector<16x128xf32>
    %25 = vector.extract_strided_slice %16 {offsets = [2, 0], sizes = [16, 128], strides = [1, 1]} : vector<18x128xbf16> to vector<16x128xbf16>
    %c640 = arith.constant 640 : index
    %c0_18 = arith.constant 0 : index
    %26 = vector.load %arg5[%c640, %c0_18] : memref<1152x128xbf16, #tpu.memory_space<vmem>>, vector<128x128xbf16>
    %cst_19 = arith.constant dense<0.000000e+00> : vector<16x128xf32>
    %27 = tpu.matmul %25, %26, %cst_19 {dimension_numbers = #tpu.dot_dimension_numbers<[1], [0], [0], [1], [0, 0, 1, 1], [], []>} : vector<16x128xbf16>, vector<128x128xbf16>, vector<16x128xf32> -> vector<16x128xf32>
    %28 = arith.addf %24, %27 : vector<16x128xf32>
    %c0_20 = arith.constant 0 : index
    %c0_21 = arith.constant 0 : index
    %c0_22 = arith.constant 0 : index
    %c0_23 = arith.constant 0 : index
    %29 = vector.load %arg4[%c0_20, %c0_21, %c0_22, %c0_23] : memref<1x1x18x128xbf16, #tpu.memory_space<vmem>>, vector<1x1x18x128xbf16>
    %30 = vector.shape_cast %29 : vector<1x1x18x128xbf16> to vector<18x128xbf16>
    %31 = vector.extract_strided_slice %30 {offsets = [0, 0], sizes = [16, 128], strides = [1, 1]} : vector<18x128xbf16> to vector<16x128xbf16>
    %c768 = arith.constant 768 : index
    %c0_24 = arith.constant 0 : index
    %32 = vector.load %arg5[%c768, %c0_24] : memref<1152x128xbf16, #tpu.memory_space<vmem>>, vector<128x128xbf16>
    %cst_25 = arith.constant dense<0.000000e+00> : vector<16x128xf32>
    %33 = tpu.matmul %31, %32, %cst_25 {dimension_numbers = #tpu.dot_dimension_numbers<[1], [0], [0], [1], [0, 0, 1, 1], [], []>} : vector<16x128xbf16>, vector<128x128xbf16>, vector<16x128xf32> -> vector<16x128xf32>
    %34 = arith.addf %28, %33 : vector<16x128xf32>
    %35 = vector.extract_strided_slice %30 {offsets = [1, 0], sizes = [16, 128], strides = [1, 1]} : vector<18x128xbf16> to vector<16x128xbf16>
    %c896 = arith.constant 896 : index
    %c0_26 = arith.constant 0 : index
    %36 = vector.load %arg5[%c896, %c0_26] : memref<1152x128xbf16, #tpu.memory_space<vmem>>, vector<128x128xbf16>
    %cst_27 = arith.constant dense<0.000000e+00> : vector<16x128xf32>
    %37 = tpu.matmul %35, %36, %cst_27 {dimension_numbers = #tpu.dot_dimension_numbers<[1], [0], [0], [1], [0, 0, 1, 1], [], []>} : vector<16x128xbf16>, vector<128x128xbf16>, vector<16x128xf32> -> vector<16x128xf32>
    %38 = arith.addf %34, %37 : vector<16x128xf32>
    %39 = vector.extract_strided_slice %30 {offsets = [2, 0], sizes = [16, 128], strides = [1, 1]} : vector<18x128xbf16> to vector<16x128xbf16>
    %c1024 = arith.constant 1024 : index
    %c0_28 = arith.constant 0 : index
    %40 = vector.load %arg5[%c1024, %c0_28] : memref<1152x128xbf16, #tpu.memory_space<vmem>>, vector<128x128xbf16>
    %cst_29 = arith.constant dense<0.000000e+00> : vector<16x128xf32>
    %41 = tpu.matmul %39, %40, %cst_29 {dimension_numbers = #tpu.dot_dimension_numbers<[1], [0], [0], [1], [0, 0, 1, 1], [], []>} : vector<16x128xbf16>, vector<128x128xbf16>, vector<16x128xf32> -> vector<16x128xf32>
    %42 = arith.addf %38, %41 : vector<16x128xf32>
    %c0_30 = arith.constant 0 : index
    %c0_31 = arith.constant 0 : index
    %43 = vector.load %arg6[%c0_30, %c0_31] : memref<1x128xf32, #tpu.memory_space<vmem>>, vector<1x128xf32>
    %44 = vector.broadcast %43 : vector<1x128xf32> to vector<16x128xf32>
    %45 = arith.addf %42, %44 : vector<16x128xf32>
    %cst_32 = arith.constant 0.000000e+00 : f32
    %46 = vector.broadcast %cst_32 : f32 to vector<16x128xf32>
    %47 = arith.cmpf oge, %45, %46 : vector<16x128xf32>
    %cst_33 = arith.constant 0.00999999977 : f32
    %48 = vector.broadcast %cst_33 : f32 to vector<16x128xf32>
    %49 = arith.mulf %48, %45 : vector<16x128xf32>
    %50 = arith.select %47, %45, %49 : vector<16x128xi1>, vector<16x128xf32>
    %51 = arith.truncf %50 : vector<16x128xf32> to vector<16x128xbf16>
    %c0_34 = arith.constant 0 : index
    %c0_35 = arith.constant 0 : index
    %c0_36 = arith.constant 0 : index
    %c0_37 = arith.constant 0 : index
    %52 = vector.load %arg7[%c0_34, %c0_35, %c0_36, %c0_37] : memref<1x1x16x128xbf16, #tpu.memory_space<vmem>>, vector<1x1x16x128xbf16>
    %53 = vector.shape_cast %52 : vector<1x1x16x128xbf16> to vector<16x128xbf16>
    %54 = vector.shape_cast %51 : vector<16x128xbf16> to vector<1x1x16x128xbf16>
    tpu.vector_store %arg7[%c0_34, %c0_35, %c0_36, %c0_37], %54 {strides = array<i32>} : memref<1x1x16x128xbf16, #tpu.memory_space<vmem>>, vector<1x1x16x128xbf16>,
    return
  }
  func.func @transform_0(%arg0: i32, %arg1: i32) -> (i32, i32, i32, i32) {
    %c0_i32 = arith.constant 0 : i32
    %0 = arith.addi %arg1, %c0_i32 : i32
    %c0_i32_0 = arith.constant 0 : i32
    %c0_i32_1 = arith.constant 0 : i32
    %c0_i32_2 = arith.constant 0 : i32
    return %arg0, %0, %c0_i32_0, %c0_i32_1 : i32, i32, i32, i32
  }
  func.func @transform_1(%arg0: i32, %arg1: i32) -> (i32, i32, i32, i32) {
    %c1_i32 = arith.constant 1 : i32
    %0 = arith.addi %arg1, %c1_i32 : i32
    %c0_i32 = arith.constant 0 : i32
    %c0_i32_0 = arith.constant 0 : i32
    %c0_i32_1 = arith.constant 0 : i32
    return %arg0, %0, %c0_i32, %c0_i32_0 : i32, i32, i32, i32
  }
  func.func @transform_2(%arg0: i32, %arg1: i32) -> (i32, i32, i32, i32) {
    %c2_i32 = arith.constant 2 : i32
    %0 = arith.addi %arg1, %c2_i32 : i32
    %c0_i32 = arith.constant 0 : i32
    %c0_i32_0 = arith.constant 0 : i32
    %c0_i32_1 = arith.constant 0 : i32
    return %arg0, %0, %c0_i32, %c0_i32_0 : i32, i32, i32, i32
  }
  func.func @transform_3(%arg0: i32, %arg1: i32) -> (i32, i32) {
    %c0_i32 = arith.constant 0 : i32
    %c0_i32_0 = arith.constant 0 : i32
    %c0_i32_1 = arith.constant 0 : i32
    return %c0_i32, %c0_i32_0 : i32, i32
  }
  func.func @transform_4(%arg0: i32, %arg1: i32) -> (i32, i32) {
    %c0_i32 = arith.constant 0 : i32
    %c0_i32_0 = arith.constant 0 : i32
    %c0_i32_1 = arith.constant 0 : i32
    return %c0_i32, %c0_i32_0 : i32, i32
  }
  func.func @transform_5(%arg0: i32, %arg1: i32) -> (i32, i32, i32, i32) {
    %c0_i32 = arith.constant 0 : i32
    %c0_i32_0 = arith.constant 0 : i32
    %c0_i32_1 = arith.constant 0 : i32
    return %arg0, %arg1, %c0_i32, %c0_i32_0 : i32, i32, i32, i32
  }
}

module attributes {stable_mosaic.version = 11 : i64} {
  func.func @_conv_s2_kernel(%arg0: i32, %arg1: i32, %arg2: memref<1x1x9x256xbf16, #tpu.memory_space<vmem>>, %arg3: memref<1x1x9x256xbf16, #tpu.memory_space<vmem>>, %arg4: memref<1x1x9x256xbf16, #tpu.memory_space<vmem>>, %arg5: memref<1536x128xbf16, #tpu.memory_space<vmem>>, %arg6: memref<1x128xf32, #tpu.memory_space<vmem>>, %arg7: memref<1x1x8x128xbf16, #tpu.memory_space<vmem>>, %arg8: memref<8x128xf32, #tpu.memory_space<vmem>>) attributes {dimension_semantics = [#tpu.dimension_semantics<arbitrary>, #tpu.dimension_semantics<arbitrary>], iteration_bounds = array<i64: 2, 8>, scalar_prefetch = 0 : i64, scratch_operands = 0 : i64, tpu.core_type = #tpu.core_type<tc>, window_params = [{transform_indices = @transform_0, window_bounds = array<i64: 1, 1, 9, 256>}, {transform_indices = @transform_1, window_bounds = array<i64: 1, 1, 9, 256>}, {transform_indices = @transform_2, window_bounds = array<i64: 1, 1, 9, 256>}, {pipeline_mode = #tpu.pipeline_mode<synchronous>, transform_indices = @transform_3, window_bounds = array<i64: 1536, 128>}, {pipeline_mode = #tpu.pipeline_mode<synchronous>, transform_indices = @transform_4, window_bounds = array<i64: 1, 128>}, {transform_indices = @transform_5, window_bounds = array<i64: 1, 1, 8, 128>}, {pipeline_mode = #tpu.pipeline_mode<synchronous>, transform_indices = @transform_6, window_bounds = array<i64: 8, 128>}]} {
    %c0_i32 = arith.constant 0 : i32
    %0 = arith.cmpi eq, %arg0, %c0_i32 : i32
    %c0_i32_0 = arith.constant 0 : i32
    %1 = arith.cmpi eq, %arg1, %c0_i32_0 : i32
    %2 = arith.andi %0, %1 : i1
    %3 = arith.extui %2 : i1 to i32
    %c0_i32_1 = arith.constant 0 : i32
    %4 = arith.cmpi ne, %3, %c0_i32_1 : i32
    scf.if %4 {
      %cst_41 = arith.constant 0.000000e+00 : f32
      %54 = vector.broadcast %cst_41 : f32 to vector<8x128xf32>
      %c0_42 = arith.constant 0 : index
      %c0_43 = arith.constant 0 : index
      %55 = vector.load %arg8[%c0_42, %c0_43] : memref<8x128xf32, #tpu.memory_space<vmem>>, vector<8x128xf32>
      tpu.vector_store %arg8[%c0_42, %c0_43], %54 {strides = array<i32>} : memref<8x128xf32, #tpu.memory_space<vmem>>, vector<8x128xf32>,
    } else {
    }
    %cst = arith.constant 0.000000e+00 : f32
    %5 = vector.broadcast %cst : f32 to vector<8x128xf32>
    %c0 = arith.constant 0 : index
    %c0_2 = arith.constant 0 : index
    %c0_3 = arith.constant 0 : index
    %c0_4 = arith.constant 0 : index
    %6 = vector.load %arg2[%c0, %c0_2, %c0_3, %c0_4] : memref<1x1x9x256xbf16, #tpu.memory_space<vmem>>, vector<1x1x9x256xbf16>
    %7 = vector.shape_cast %6 : vector<1x1x9x256xbf16> to vector<9x256xbf16>
    %8 = vector.extract_strided_slice %7 {offsets = [0, 0], sizes = [8, 256], strides = [1, 1]} : vector<9x256xbf16> to vector<8x256xbf16>
    %c0_5 = arith.constant 0 : index
    %c0_6 = arith.constant 0 : index
    %9 = vector.load %arg5[%c0_5, %c0_6] : memref<1536x128xbf16, #tpu.memory_space<vmem>>, vector<256x128xbf16>
    %cst_7 = arith.constant dense<0.000000e+00> : vector<8x128xf32>
    %10 = tpu.matmul %8, %9, %cst_7 {dimension_numbers = #tpu.dot_dimension_numbers<[1], [0], [0], [1], [0, 0, 1, 1], [], []>} : vector<8x256xbf16>, vector<256x128xbf16>, vector<8x128xf32> -> vector<8x128xf32>
    %11 = arith.addf %5, %10 : vector<8x128xf32>
    %12 = vector.extract_strided_slice %7 {offsets = [1, 0], sizes = [8, 256], strides = [1, 1]} : vector<9x256xbf16> to vector<8x256xbf16>
    %c256 = arith.constant 256 : index
    %c0_8 = arith.constant 0 : index
    %13 = vector.load %arg5[%c256, %c0_8] : memref<1536x128xbf16, #tpu.memory_space<vmem>>, vector<256x128xbf16>
    %cst_9 = arith.constant dense<0.000000e+00> : vector<8x128xf32>
    %14 = tpu.matmul %12, %13, %cst_9 {dimension_numbers = #tpu.dot_dimension_numbers<[1], [0], [0], [1], [0, 0, 1, 1], [], []>} : vector<8x256xbf16>, vector<256x128xbf16>, vector<8x128xf32> -> vector<8x128xf32>
    %15 = arith.addf %11, %14 : vector<8x128xf32>
    %c0_10 = arith.constant 0 : index
    %c0_11 = arith.constant 0 : index
    %c0_12 = arith.constant 0 : index
    %c0_13 = arith.constant 0 : index
    %16 = vector.load %arg3[%c0_10, %c0_11, %c0_12, %c0_13] : memref<1x1x9x256xbf16, #tpu.memory_space<vmem>>, vector<1x1x9x256xbf16>
    %17 = vector.shape_cast %16 : vector<1x1x9x256xbf16> to vector<9x256xbf16>
    %18 = vector.extract_strided_slice %17 {offsets = [0, 0], sizes = [8, 256], strides = [1, 1]} : vector<9x256xbf16> to vector<8x256xbf16>
    %c512 = arith.constant 512 : index
    %c0_14 = arith.constant 0 : index
    %19 = vector.load %arg5[%c512, %c0_14] : memref<1536x128xbf16, #tpu.memory_space<vmem>>, vector<256x128xbf16>
    %cst_15 = arith.constant dense<0.000000e+00> : vector<8x128xf32>
    %20 = tpu.matmul %18, %19, %cst_15 {dimension_numbers = #tpu.dot_dimension_numbers<[1], [0], [0], [1], [0, 0, 1, 1], [], []>} : vector<8x256xbf16>, vector<256x128xbf16>, vector<8x128xf32> -> vector<8x128xf32>
    %21 = arith.addf %15, %20 : vector<8x128xf32>
    %22 = vector.extract_strided_slice %17 {offsets = [1, 0], sizes = [8, 256], strides = [1, 1]} : vector<9x256xbf16> to vector<8x256xbf16>
    %c768 = arith.constant 768 : index
    %c0_16 = arith.constant 0 : index
    %23 = vector.load %arg5[%c768, %c0_16] : memref<1536x128xbf16, #tpu.memory_space<vmem>>, vector<256x128xbf16>
    %cst_17 = arith.constant dense<0.000000e+00> : vector<8x128xf32>
    %24 = tpu.matmul %22, %23, %cst_17 {dimension_numbers = #tpu.dot_dimension_numbers<[1], [0], [0], [1], [0, 0, 1, 1], [], []>} : vector<8x256xbf16>, vector<256x128xbf16>, vector<8x128xf32> -> vector<8x128xf32>
    %25 = arith.addf %21, %24 : vector<8x128xf32>
    %c0_18 = arith.constant 0 : index
    %c0_19 = arith.constant 0 : index
    %c0_20 = arith.constant 0 : index
    %c0_21 = arith.constant 0 : index
    %26 = vector.load %arg4[%c0_18, %c0_19, %c0_20, %c0_21] : memref<1x1x9x256xbf16, #tpu.memory_space<vmem>>, vector<1x1x9x256xbf16>
    %27 = vector.shape_cast %26 : vector<1x1x9x256xbf16> to vector<9x256xbf16>
    %28 = vector.extract_strided_slice %27 {offsets = [0, 0], sizes = [8, 256], strides = [1, 1]} : vector<9x256xbf16> to vector<8x256xbf16>
    %c1024 = arith.constant 1024 : index
    %c0_22 = arith.constant 0 : index
    %29 = vector.load %arg5[%c1024, %c0_22] : memref<1536x128xbf16, #tpu.memory_space<vmem>>, vector<256x128xbf16>
    %cst_23 = arith.constant dense<0.000000e+00> : vector<8x128xf32>
    %30 = tpu.matmul %28, %29, %cst_23 {dimension_numbers = #tpu.dot_dimension_numbers<[1], [0], [0], [1], [0, 0, 1, 1], [], []>} : vector<8x256xbf16>, vector<256x128xbf16>, vector<8x128xf32> -> vector<8x128xf32>
    %31 = arith.addf %25, %30 : vector<8x128xf32>
    %32 = vector.extract_strided_slice %27 {offsets = [1, 0], sizes = [8, 256], strides = [1, 1]} : vector<9x256xbf16> to vector<8x256xbf16>
    %c1280 = arith.constant 1280 : index
    %c0_24 = arith.constant 0 : index
    %33 = vector.load %arg5[%c1280, %c0_24] : memref<1536x128xbf16, #tpu.memory_space<vmem>>, vector<256x128xbf16>
    %cst_25 = arith.constant dense<0.000000e+00> : vector<8x128xf32>
    %34 = tpu.matmul %32, %33, %cst_25 {dimension_numbers = #tpu.dot_dimension_numbers<[1], [0], [0], [1], [0, 0, 1, 1], [], []>} : vector<8x256xbf16>, vector<256x128xbf16>, vector<8x128xf32> -> vector<8x128xf32>
    %35 = arith.addf %31, %34 : vector<8x128xf32>
    %c0_26 = arith.constant 0 : index
    %c0_27 = arith.constant 0 : index
    %36 = vector.load %arg6[%c0_26, %c0_27] : memref<1x128xf32, #tpu.memory_space<vmem>>, vector<1x128xf32>
    %37 = vector.broadcast %36 : vector<1x128xf32> to vector<8x128xf32>
    %38 = arith.addf %35, %37 : vector<8x128xf32>
    %39 = arith.truncf %38 : vector<8x128xf32> to vector<8x128xbf16>
    %c0_28 = arith.constant 0 : index
    %c0_29 = arith.constant 0 : index
    %c0_30 = arith.constant 0 : index
    %c0_31 = arith.constant 0 : index
    %40 = vector.load %arg7[%c0_28, %c0_29, %c0_30, %c0_31] : memref<1x1x8x128xbf16, #tpu.memory_space<vmem>>, vector<1x1x8x128xbf16>
    %41 = vector.shape_cast %40 : vector<1x1x8x128xbf16> to vector<8x128xbf16>
    %42 = vector.shape_cast %39 : vector<8x128xbf16> to vector<1x1x8x128xbf16>
    tpu.vector_store %arg7[%c0_28, %c0_29, %c0_30, %c0_31], %42 {strides = array<i32>} : memref<1x1x8x128xbf16, #tpu.memory_space<vmem>>, vector<1x1x8x128xbf16>,
    %c0_32 = arith.constant 0 : index
    %c0_33 = arith.constant 0 : index
    %43 = vector.load %arg8[%c0_32, %c0_33] : memref<8x128xf32, #tpu.memory_space<vmem>>, vector<1x128xf32>
    %cst_34 = arith.constant dense<0.000000e+00> : vector<128xf32>
    %44 = vector.multi_reduction <add>, %38, %cst_34 [0] : vector<8x128xf32> to vector<128xf32>
    %45 = vector.shape_cast %44 : vector<128xf32> to vector<1x128xf32>
    %46 = arith.addf %43, %45 : vector<1x128xf32>
    %c0_35 = arith.constant 0 : index
    %c0_36 = arith.constant 0 : index
    %47 = vector.load %arg8[%c0_35, %c0_36] : memref<8x128xf32, #tpu.memory_space<vmem>>, vector<1x128xf32>
    tpu.vector_store %arg8[%c0_35, %c0_36], %46 {strides = array<i32>} : memref<8x128xf32, #tpu.memory_space<vmem>>, vector<1x128xf32>,
    %c1 = arith.constant 1 : index
    %c0_37 = arith.constant 0 : index
    %48 = vector.load %arg8[%c1, %c0_37] : memref<8x128xf32, #tpu.memory_space<vmem>>, vector<1x128xf32>
    %49 = arith.mulf %38, %38 : vector<8x128xf32>
    %cst_38 = arith.constant dense<0.000000e+00> : vector<128xf32>
    %50 = vector.multi_reduction <add>, %49, %cst_38 [0] : vector<8x128xf32> to vector<128xf32>
    %51 = vector.shape_cast %50 : vector<128xf32> to vector<1x128xf32>
    %52 = arith.addf %48, %51 : vector<1x128xf32>
    %c1_39 = arith.constant 1 : index
    %c0_40 = arith.constant 0 : index
    %53 = vector.load %arg8[%c1_39, %c0_40] : memref<8x128xf32, #tpu.memory_space<vmem>>, vector<1x128xf32>
    tpu.vector_store %arg8[%c1_39, %c0_40], %52 {strides = array<i32>} : memref<8x128xf32, #tpu.memory_space<vmem>>, vector<1x128xf32>,
    return
  }
  func.func @transform_0(%arg0: i32, %arg1: i32) -> (i32, i32, i32, i32) {
    %c2_i32 = arith.constant 2 : i32
    %0 = arith.muli %c2_i32, %arg1 : i32
    %c0_i32 = arith.constant 0 : i32
    %1 = arith.addi %0, %c0_i32 : i32
    %c0_i32_0 = arith.constant 0 : i32
    %c0_i32_1 = arith.constant 0 : i32
    %c0_i32_2 = arith.constant 0 : i32
    return %arg0, %1, %c0_i32_0, %c0_i32_1 : i32, i32, i32, i32
  }
  func.func @transform_1(%arg0: i32, %arg1: i32) -> (i32, i32, i32, i32) {
    %c2_i32 = arith.constant 2 : i32
    %0 = arith.muli %c2_i32, %arg1 : i32
    %c1_i32 = arith.constant 1 : i32
    %1 = arith.addi %0, %c1_i32 : i32
    %c0_i32 = arith.constant 0 : i32
    %c0_i32_0 = arith.constant 0 : i32
    %c0_i32_1 = arith.constant 0 : i32
    return %arg0, %1, %c0_i32, %c0_i32_0 : i32, i32, i32, i32
  }
  func.func @transform_2(%arg0: i32, %arg1: i32) -> (i32, i32, i32, i32) {
    %c2_i32 = arith.constant 2 : i32
    %0 = arith.muli %c2_i32, %arg1 : i32
    %c2_i32_0 = arith.constant 2 : i32
    %1 = arith.addi %0, %c2_i32_0 : i32
    %c0_i32 = arith.constant 0 : i32
    %c0_i32_1 = arith.constant 0 : i32
    %c0_i32_2 = arith.constant 0 : i32
    return %arg0, %1, %c0_i32, %c0_i32_1 : i32, i32, i32, i32
  }
  func.func @transform_3(%arg0: i32, %arg1: i32) -> (i32, i32) {
    %c0_i32 = arith.constant 0 : i32
    %c0_i32_0 = arith.constant 0 : i32
    %c0_i32_1 = arith.constant 0 : i32
    return %c0_i32, %c0_i32_0 : i32, i32
  }
  func.func @transform_4(%arg0: i32, %arg1: i32) -> (i32, i32) {
    %c0_i32 = arith.constant 0 : i32
    %c0_i32_0 = arith.constant 0 : i32
    %c0_i32_1 = arith.constant 0 : i32
    return %c0_i32, %c0_i32_0 : i32, i32
  }
  func.func @transform_5(%arg0: i32, %arg1: i32) -> (i32, i32, i32, i32) {
    %c0_i32 = arith.constant 0 : i32
    %c0_i32_0 = arith.constant 0 : i32
    %c0_i32_1 = arith.constant 0 : i32
    return %arg0, %arg1, %c0_i32, %c0_i32_0 : i32, i32, i32, i32
  }
  func.func @transform_6(%arg0: i32, %arg1: i32) -> (i32, i32) {
    %c0_i32 = arith.constant 0 : i32
    %c0_i32_0 = arith.constant 0 : i32
    %c0_i32_1 = arith.constant 0 : i32
    return %c0_i32, %c0_i32_0 : i32, i32
  }
}

module attributes {stable_mosaic.version = 11 : i64} {
  func.func @_bn_lrelu_kernel(%arg0: i32, %arg1: i32, %arg2: memref<1x1x8x128xbf16, #tpu.memory_space<vmem>>, %arg3: memref<1x128xf32, #tpu.memory_space<vmem>>, %arg4: memref<1x128xf32, #tpu.memory_space<vmem>>, %arg5: memref<1x1x8x128xbf16, #tpu.memory_space<vmem>>) attributes {dimension_semantics = [#tpu.dimension_semantics<parallel>, #tpu.dimension_semantics<parallel>], iteration_bounds = array<i64: 2, 8>, scalar_prefetch = 0 : i64, scratch_operands = 0 : i64, tpu.core_type = #tpu.core_type<tc>, window_params = [{transform_indices = @transform_0, window_bounds = array<i64: 1, 1, 8, 128>}, {pipeline_mode = #tpu.pipeline_mode<synchronous>, transform_indices = @transform_1, window_bounds = array<i64: 1, 128>}, {pipeline_mode = #tpu.pipeline_mode<synchronous>, transform_indices = @transform_2, window_bounds = array<i64: 1, 128>}, {transform_indices = @transform_3, window_bounds = array<i64: 1, 1, 8, 128>}]} {
    %c0 = arith.constant 0 : index
    %c0_0 = arith.constant 0 : index
    %c0_1 = arith.constant 0 : index
    %c0_2 = arith.constant 0 : index
    %0 = vector.load %arg2[%c0, %c0_0, %c0_1, %c0_2] : memref<1x1x8x128xbf16, #tpu.memory_space<vmem>>, vector<1x1x8x128xbf16>
    %1 = vector.shape_cast %0 : vector<1x1x8x128xbf16> to vector<8x128xbf16>
    %2 = arith.extf %1 : vector<8x128xbf16> to vector<8x128xf32>
    %c0_3 = arith.constant 0 : index
    %c0_4 = arith.constant 0 : index
    %3 = vector.load %arg3[%c0_3, %c0_4] : memref<1x128xf32, #tpu.memory_space<vmem>>, vector<1x128xf32>
    %4 = vector.broadcast %3 : vector<1x128xf32> to vector<8x128xf32>
    %5 = arith.mulf %2, %4 : vector<8x128xf32>
    %c0_5 = arith.constant 0 : index
    %c0_6 = arith.constant 0 : index
    %6 = vector.load %arg4[%c0_5, %c0_6] : memref<1x128xf32, #tpu.memory_space<vmem>>, vector<1x128xf32>
    %7 = vector.broadcast %6 : vector<1x128xf32> to vector<8x128xf32>
    %8 = arith.addf %5, %7 : vector<8x128xf32>
    %cst = arith.constant 0.000000e+00 : f32
    %9 = vector.broadcast %cst : f32 to vector<8x128xf32>
    %10 = arith.cmpf oge, %8, %9 : vector<8x128xf32>
    %cst_7 = arith.constant 0.00999999977 : f32
    %11 = vector.broadcast %cst_7 : f32 to vector<8x128xf32>
    %12 = arith.mulf %11, %8 : vector<8x128xf32>
    %13 = arith.select %10, %8, %12 : vector<8x128xi1>, vector<8x128xf32>
    %14 = arith.truncf %13 : vector<8x128xf32> to vector<8x128xbf16>
    %c0_8 = arith.constant 0 : index
    %c0_9 = arith.constant 0 : index
    %c0_10 = arith.constant 0 : index
    %c0_11 = arith.constant 0 : index
    %15 = vector.load %arg5[%c0_8, %c0_9, %c0_10, %c0_11] : memref<1x1x8x128xbf16, #tpu.memory_space<vmem>>, vector<1x1x8x128xbf16>
    %16 = vector.shape_cast %15 : vector<1x1x8x128xbf16> to vector<8x128xbf16>
    %17 = vector.shape_cast %14 : vector<8x128xbf16> to vector<1x1x8x128xbf16>
    tpu.vector_store %arg5[%c0_8, %c0_9, %c0_10, %c0_11], %17 {strides = array<i32>} : memref<1x1x8x128xbf16, #tpu.memory_space<vmem>>, vector<1x1x8x128xbf16>,
    return
  }
  func.func @transform_0(%arg0: i32, %arg1: i32) -> (i32, i32, i32, i32) {
    %c0_i32 = arith.constant 0 : i32
    %c0_i32_0 = arith.constant 0 : i32
    %c0_i32_1 = arith.constant 0 : i32
    return %arg0, %arg1, %c0_i32, %c0_i32_0 : i32, i32, i32, i32
  }
  func.func @transform_1(%arg0: i32, %arg1: i32) -> (i32, i32) {
    %c0_i32 = arith.constant 0 : i32
    %c0_i32_0 = arith.constant 0 : i32
    %c0_i32_1 = arith.constant 0 : i32
    return %c0_i32, %c0_i32_0 : i32, i32
  }
  func.func @transform_2(%arg0: i32, %arg1: i32) -> (i32, i32) {
    %c0_i32 = arith.constant 0 : i32
    %c0_i32_0 = arith.constant 0 : i32
    %c0_i32_1 = arith.constant 0 : i32
    return %c0_i32, %c0_i32_0 : i32, i32
  }
  func.func @transform_3(%arg0: i32, %arg1: i32) -> (i32, i32, i32, i32) {
    %c0_i32 = arith.constant 0 : i32
    %c0_i32_0 = arith.constant 0 : i32
    %c0_i32_1 = arith.constant 0 : i32
    return %arg0, %arg1, %c0_i32, %c0_i32_0 : i32, i32, i32, i32
  }
}

module attributes {stable_mosaic.version = 11 : i64} {
  func.func @_conv_s2_kernel(%arg0: i32, %arg1: i32, %arg2: memref<1x1x5x256xbf16, #tpu.memory_space<vmem>>, %arg3: memref<1x1x5x256xbf16, #tpu.memory_space<vmem>>, %arg4: memref<1x1x5x256xbf16, #tpu.memory_space<vmem>>, %arg5: memref<1536x128xbf16, #tpu.memory_space<vmem>>, %arg6: memref<1x128xf32, #tpu.memory_space<vmem>>, %arg7: memref<1x1x4x128xbf16, #tpu.memory_space<vmem>>, %arg8: memref<8x128xf32, #tpu.memory_space<vmem>>) attributes {dimension_semantics = [#tpu.dimension_semantics<arbitrary>, #tpu.dimension_semantics<arbitrary>], iteration_bounds = array<i64: 2, 4>, scalar_prefetch = 0 : i64, scratch_operands = 0 : i64, tpu.core_type = #tpu.core_type<tc>, window_params = [{transform_indices = @transform_0, window_bounds = array<i64: 1, 1, 5, 256>}, {transform_indices = @transform_1, window_bounds = array<i64: 1, 1, 5, 256>}, {transform_indices = @transform_2, window_bounds = array<i64: 1, 1, 5, 256>}, {pipeline_mode = #tpu.pipeline_mode<synchronous>, transform_indices = @transform_3, window_bounds = array<i64: 1536, 128>}, {pipeline_mode = #tpu.pipeline_mode<synchronous>, transform_indices = @transform_4, window_bounds = array<i64: 1, 128>}, {transform_indices = @transform_5, window_bounds = array<i64: 1, 1, 4, 128>}, {pipeline_mode = #tpu.pipeline_mode<synchronous>, transform_indices = @transform_6, window_bounds = array<i64: 8, 128>}]} {
    %c0_i32 = arith.constant 0 : i32
    %0 = arith.cmpi eq, %arg0, %c0_i32 : i32
    %c0_i32_0 = arith.constant 0 : i32
    %1 = arith.cmpi eq, %arg1, %c0_i32_0 : i32
    %2 = arith.andi %0, %1 : i1
    %3 = arith.extui %2 : i1 to i32
    %c0_i32_1 = arith.constant 0 : i32
    %4 = arith.cmpi ne, %3, %c0_i32_1 : i32
    scf.if %4 {
      %cst_41 = arith.constant 0.000000e+00 : f32
      %54 = vector.broadcast %cst_41 : f32 to vector<8x128xf32>
      %c0_42 = arith.constant 0 : index
      %c0_43 = arith.constant 0 : index
      %55 = vector.load %arg8[%c0_42, %c0_43] : memref<8x128xf32, #tpu.memory_space<vmem>>, vector<8x128xf32>
      tpu.vector_store %arg8[%c0_42, %c0_43], %54 {strides = array<i32>} : memref<8x128xf32, #tpu.memory_space<vmem>>, vector<8x128xf32>,
    } else {
    }
    %cst = arith.constant 0.000000e+00 : f32
    %5 = vector.broadcast %cst : f32 to vector<4x128xf32>
    %c0 = arith.constant 0 : index
    %c0_2 = arith.constant 0 : index
    %c0_3 = arith.constant 0 : index
    %c0_4 = arith.constant 0 : index
    %6 = vector.load %arg2[%c0, %c0_2, %c0_3, %c0_4] : memref<1x1x5x256xbf16, #tpu.memory_space<vmem>>, vector<1x1x5x256xbf16>
    %7 = vector.shape_cast %6 : vector<1x1x5x256xbf16> to vector<5x256xbf16>
    %8 = vector.extract_strided_slice %7 {offsets = [0, 0], sizes = [4, 256], strides = [1, 1]} : vector<5x256xbf16> to vector<4x256xbf16>
    %c0_5 = arith.constant 0 : index
    %c0_6 = arith.constant 0 : index
    %9 = vector.load %arg5[%c0_5, %c0_6] : memref<1536x128xbf16, #tpu.memory_space<vmem>>, vector<256x128xbf16>
    %cst_7 = arith.constant dense<0.000000e+00> : vector<4x128xf32>
    %10 = tpu.matmul %8, %9, %cst_7 {dimension_numbers = #tpu.dot_dimension_numbers<[1], [0], [0], [1], [0, 0, 1, 1], [], []>} : vector<4x256xbf16>, vector<256x128xbf16>, vector<4x128xf32> -> vector<4x128xf32>
    %11 = arith.addf %5, %10 : vector<4x128xf32>
    %12 = vector.extract_strided_slice %7 {offsets = [1, 0], sizes = [4, 256], strides = [1, 1]} : vector<5x256xbf16> to vector<4x256xbf16>
    %c256 = arith.constant 256 : index
    %c0_8 = arith.constant 0 : index
    %13 = vector.load %arg5[%c256, %c0_8] : memref<1536x128xbf16, #tpu.memory_space<vmem>>, vector<256x128xbf16>
    %cst_9 = arith.constant dense<0.000000e+00> : vector<4x128xf32>
    %14 = tpu.matmul %12, %13, %cst_9 {dimension_numbers = #tpu.dot_dimension_numbers<[1], [0], [0], [1], [0, 0, 1, 1], [], []>} : vector<4x256xbf16>, vector<256x128xbf16>, vector<4x128xf32> -> vector<4x128xf32>
    %15 = arith.addf %11, %14 : vector<4x128xf32>
    %c0_10 = arith.constant 0 : index
    %c0_11 = arith.constant 0 : index
    %c0_12 = arith.constant 0 : index
    %c0_13 = arith.constant 0 : index
    %16 = vector.load %arg3[%c0_10, %c0_11, %c0_12, %c0_13] : memref<1x1x5x256xbf16, #tpu.memory_space<vmem>>, vector<1x1x5x256xbf16>
    %17 = vector.shape_cast %16 : vector<1x1x5x256xbf16> to vector<5x256xbf16>
    %18 = vector.extract_strided_slice %17 {offsets = [0, 0], sizes = [4, 256], strides = [1, 1]} : vector<5x256xbf16> to vector<4x256xbf16>
    %c512 = arith.constant 512 : index
    %c0_14 = arith.constant 0 : index
    %19 = vector.load %arg5[%c512, %c0_14] : memref<1536x128xbf16, #tpu.memory_space<vmem>>, vector<256x128xbf16>
    %cst_15 = arith.constant dense<0.000000e+00> : vector<4x128xf32>
    %20 = tpu.matmul %18, %19, %cst_15 {dimension_numbers = #tpu.dot_dimension_numbers<[1], [0], [0], [1], [0, 0, 1, 1], [], []>} : vector<4x256xbf16>, vector<256x128xbf16>, vector<4x128xf32> -> vector<4x128xf32>
    %21 = arith.addf %15, %20 : vector<4x128xf32>
    %22 = vector.extract_strided_slice %17 {offsets = [1, 0], sizes = [4, 256], strides = [1, 1]} : vector<5x256xbf16> to vector<4x256xbf16>
    %c768 = arith.constant 768 : index
    %c0_16 = arith.constant 0 : index
    %23 = vector.load %arg5[%c768, %c0_16] : memref<1536x128xbf16, #tpu.memory_space<vmem>>, vector<256x128xbf16>
    %cst_17 = arith.constant dense<0.000000e+00> : vector<4x128xf32>
    %24 = tpu.matmul %22, %23, %cst_17 {dimension_numbers = #tpu.dot_dimension_numbers<[1], [0], [0], [1], [0, 0, 1, 1], [], []>} : vector<4x256xbf16>, vector<256x128xbf16>, vector<4x128xf32> -> vector<4x128xf32>
    %25 = arith.addf %21, %24 : vector<4x128xf32>
    %c0_18 = arith.constant 0 : index
    %c0_19 = arith.constant 0 : index
    %c0_20 = arith.constant 0 : index
    %c0_21 = arith.constant 0 : index
    %26 = vector.load %arg4[%c0_18, %c0_19, %c0_20, %c0_21] : memref<1x1x5x256xbf16, #tpu.memory_space<vmem>>, vector<1x1x5x256xbf16>
    %27 = vector.shape_cast %26 : vector<1x1x5x256xbf16> to vector<5x256xbf16>
    %28 = vector.extract_strided_slice %27 {offsets = [0, 0], sizes = [4, 256], strides = [1, 1]} : vector<5x256xbf16> to vector<4x256xbf16>
    %c1024 = arith.constant 1024 : index
    %c0_22 = arith.constant 0 : index
    %29 = vector.load %arg5[%c1024, %c0_22] : memref<1536x128xbf16, #tpu.memory_space<vmem>>, vector<256x128xbf16>
    %cst_23 = arith.constant dense<0.000000e+00> : vector<4x128xf32>
    %30 = tpu.matmul %28, %29, %cst_23 {dimension_numbers = #tpu.dot_dimension_numbers<[1], [0], [0], [1], [0, 0, 1, 1], [], []>} : vector<4x256xbf16>, vector<256x128xbf16>, vector<4x128xf32> -> vector<4x128xf32>
    %31 = arith.addf %25, %30 : vector<4x128xf32>
    %32 = vector.extract_strided_slice %27 {offsets = [1, 0], sizes = [4, 256], strides = [1, 1]} : vector<5x256xbf16> to vector<4x256xbf16>
    %c1280 = arith.constant 1280 : index
    %c0_24 = arith.constant 0 : index
    %33 = vector.load %arg5[%c1280, %c0_24] : memref<1536x128xbf16, #tpu.memory_space<vmem>>, vector<256x128xbf16>
    %cst_25 = arith.constant dense<0.000000e+00> : vector<4x128xf32>
    %34 = tpu.matmul %32, %33, %cst_25 {dimension_numbers = #tpu.dot_dimension_numbers<[1], [0], [0], [1], [0, 0, 1, 1], [], []>} : vector<4x256xbf16>, vector<256x128xbf16>, vector<4x128xf32> -> vector<4x128xf32>
    %35 = arith.addf %31, %34 : vector<4x128xf32>
    %c0_26 = arith.constant 0 : index
    %c0_27 = arith.constant 0 : index
    %36 = vector.load %arg6[%c0_26, %c0_27] : memref<1x128xf32, #tpu.memory_space<vmem>>, vector<1x128xf32>
    %37 = vector.broadcast %36 : vector<1x128xf32> to vector<4x128xf32>
    %38 = arith.addf %35, %37 : vector<4x128xf32>
    %39 = arith.truncf %38 : vector<4x128xf32> to vector<4x128xbf16>
    %c0_28 = arith.constant 0 : index
    %c0_29 = arith.constant 0 : index
    %c0_30 = arith.constant 0 : index
    %c0_31 = arith.constant 0 : index
    %40 = vector.load %arg7[%c0_28, %c0_29, %c0_30, %c0_31] : memref<1x1x4x128xbf16, #tpu.memory_space<vmem>>, vector<1x1x4x128xbf16>
    %41 = vector.shape_cast %40 : vector<1x1x4x128xbf16> to vector<4x128xbf16>
    %42 = vector.shape_cast %39 : vector<4x128xbf16> to vector<1x1x4x128xbf16>
    tpu.vector_store %arg7[%c0_28, %c0_29, %c0_30, %c0_31], %42 {strides = array<i32>} : memref<1x1x4x128xbf16, #tpu.memory_space<vmem>>, vector<1x1x4x128xbf16>,
    %c0_32 = arith.constant 0 : index
    %c0_33 = arith.constant 0 : index
    %43 = vector.load %arg8[%c0_32, %c0_33] : memref<8x128xf32, #tpu.memory_space<vmem>>, vector<1x128xf32>
    %cst_34 = arith.constant dense<0.000000e+00> : vector<128xf32>
    %44 = vector.multi_reduction <add>, %38, %cst_34 [0] : vector<4x128xf32> to vector<128xf32>
    %45 = vector.shape_cast %44 : vector<128xf32> to vector<1x128xf32>
    %46 = arith.addf %43, %45 : vector<1x128xf32>
    %c0_35 = arith.constant 0 : index
    %c0_36 = arith.constant 0 : index
    %47 = vector.load %arg8[%c0_35, %c0_36] : memref<8x128xf32, #tpu.memory_space<vmem>>, vector<1x128xf32>
    tpu.vector_store %arg8[%c0_35, %c0_36], %46 {strides = array<i32>} : memref<8x128xf32, #tpu.memory_space<vmem>>, vector<1x128xf32>,
    %c1 = arith.constant 1 : index
    %c0_37 = arith.constant 0 : index
    %48 = vector.load %arg8[%c1, %c0_37] : memref<8x128xf32, #tpu.memory_space<vmem>>, vector<1x128xf32>
    %49 = arith.mulf %38, %38 : vector<4x128xf32>
    %cst_38 = arith.constant dense<0.000000e+00> : vector<128xf32>
    %50 = vector.multi_reduction <add>, %49, %cst_38 [0] : vector<4x128xf32> to vector<128xf32>
    %51 = vector.shape_cast %50 : vector<128xf32> to vector<1x128xf32>
    %52 = arith.addf %48, %51 : vector<1x128xf32>
    %c1_39 = arith.constant 1 : index
    %c0_40 = arith.constant 0 : index
    %53 = vector.load %arg8[%c1_39, %c0_40] : memref<8x128xf32, #tpu.memory_space<vmem>>, vector<1x128xf32>
    tpu.vector_store %arg8[%c1_39, %c0_40], %52 {strides = array<i32>} : memref<8x128xf32, #tpu.memory_space<vmem>>, vector<1x128xf32>,
    return
  }
  func.func @transform_0(%arg0: i32, %arg1: i32) -> (i32, i32, i32, i32) {
    %c2_i32 = arith.constant 2 : i32
    %0 = arith.muli %c2_i32, %arg1 : i32
    %c0_i32 = arith.constant 0 : i32
    %1 = arith.addi %0, %c0_i32 : i32
    %c0_i32_0 = arith.constant 0 : i32
    %c0_i32_1 = arith.constant 0 : i32
    %c0_i32_2 = arith.constant 0 : i32
    return %arg0, %1, %c0_i32_0, %c0_i32_1 : i32, i32, i32, i32
  }
  func.func @transform_1(%arg0: i32, %arg1: i32) -> (i32, i32, i32, i32) {
    %c2_i32 = arith.constant 2 : i32
    %0 = arith.muli %c2_i32, %arg1 : i32
    %c1_i32 = arith.constant 1 : i32
    %1 = arith.addi %0, %c1_i32 : i32
    %c0_i32 = arith.constant 0 : i32
    %c0_i32_0 = arith.constant 0 : i32
    %c0_i32_1 = arith.constant 0 : i32
    return %arg0, %1, %c0_i32, %c0_i32_0 : i32, i32, i32, i32
  }
  func.func @transform_2(%arg0: i32, %arg1: i32) -> (i32, i32, i32, i32) {
    %c2_i32 = arith.constant 2 : i32
    %0 = arith.muli %c2_i32, %arg1 : i32
    %c2_i32_0 = arith.constant 2 : i32
    %1 = arith.addi %0, %c2_i32_0 : i32
    %c0_i32 = arith.constant 0 : i32
    %c0_i32_1 = arith.constant 0 : i32
    %c0_i32_2 = arith.constant 0 : i32
    return %arg0, %1, %c0_i32, %c0_i32_1 : i32, i32, i32, i32
  }
  func.func @transform_3(%arg0: i32, %arg1: i32) -> (i32, i32) {
    %c0_i32 = arith.constant 0 : i32
    %c0_i32_0 = arith.constant 0 : i32
    %c0_i32_1 = arith.constant 0 : i32
    return %c0_i32, %c0_i32_0 : i32, i32
  }
  func.func @transform_4(%arg0: i32, %arg1: i32) -> (i32, i32) {
    %c0_i32 = arith.constant 0 : i32
    %c0_i32_0 = arith.constant 0 : i32
    %c0_i32_1 = arith.constant 0 : i32
    return %c0_i32, %c0_i32_0 : i32, i32
  }
  func.func @transform_5(%arg0: i32, %arg1: i32) -> (i32, i32, i32, i32) {
    %c0_i32 = arith.constant 0 : i32
    %c0_i32_0 = arith.constant 0 : i32
    %c0_i32_1 = arith.constant 0 : i32
    return %arg0, %arg1, %c0_i32, %c0_i32_0 : i32, i32, i32, i32
  }
  func.func @transform_6(%arg0: i32, %arg1: i32) -> (i32, i32) {
    %c0_i32 = arith.constant 0 : i32
    %c0_i32_0 = arith.constant 0 : i32
    %c0_i32_1 = arith.constant 0 : i32
    return %c0_i32, %c0_i32_0 : i32, i32
  }
}

module attributes {stable_mosaic.version = 11 : i64} {
  func.func @_bn_lrelu_kernel(%arg0: i32, %arg1: i32, %arg2: memref<1x1x4x128xbf16, #tpu.memory_space<vmem>>, %arg3: memref<1x128xf32, #tpu.memory_space<vmem>>, %arg4: memref<1x128xf32, #tpu.memory_space<vmem>>, %arg5: memref<1x1x4x128xbf16, #tpu.memory_space<vmem>>) attributes {dimension_semantics = [#tpu.dimension_semantics<parallel>, #tpu.dimension_semantics<parallel>], iteration_bounds = array<i64: 2, 4>, scalar_prefetch = 0 : i64, scratch_operands = 0 : i64, tpu.core_type = #tpu.core_type<tc>, window_params = [{transform_indices = @transform_0, window_bounds = array<i64: 1, 1, 4, 128>}, {pipeline_mode = #tpu.pipeline_mode<synchronous>, transform_indices = @transform_1, window_bounds = array<i64: 1, 128>}, {pipeline_mode = #tpu.pipeline_mode<synchronous>, transform_indices = @transform_2, window_bounds = array<i64: 1, 128>}, {transform_indices = @transform_3, window_bounds = array<i64: 1, 1, 4, 128>}]} {
    %c0 = arith.constant 0 : index
    %c0_0 = arith.constant 0 : index
    %c0_1 = arith.constant 0 : index
    %c0_2 = arith.constant 0 : index
    %0 = vector.load %arg2[%c0, %c0_0, %c0_1, %c0_2] : memref<1x1x4x128xbf16, #tpu.memory_space<vmem>>, vector<1x1x4x128xbf16>
    %1 = vector.shape_cast %0 : vector<1x1x4x128xbf16> to vector<4x128xbf16>
    %2 = arith.extf %1 : vector<4x128xbf16> to vector<4x128xf32>
    %c0_3 = arith.constant 0 : index
    %c0_4 = arith.constant 0 : index
    %3 = vector.load %arg3[%c0_3, %c0_4] : memref<1x128xf32, #tpu.memory_space<vmem>>, vector<1x128xf32>
    %4 = vector.broadcast %3 : vector<1x128xf32> to vector<4x128xf32>
    %5 = arith.mulf %2, %4 : vector<4x128xf32>
    %c0_5 = arith.constant 0 : index
    %c0_6 = arith.constant 0 : index
    %6 = vector.load %arg4[%c0_5, %c0_6] : memref<1x128xf32, #tpu.memory_space<vmem>>, vector<1x128xf32>
    %7 = vector.broadcast %6 : vector<1x128xf32> to vector<4x128xf32>
    %8 = arith.addf %5, %7 : vector<4x128xf32>
    %cst = arith.constant 0.000000e+00 : f32
    %9 = vector.broadcast %cst : f32 to vector<4x128xf32>
    %10 = arith.cmpf oge, %8, %9 : vector<4x128xf32>
    %cst_7 = arith.constant 0.00999999977 : f32
    %11 = vector.broadcast %cst_7 : f32 to vector<4x128xf32>
    %12 = arith.mulf %11, %8 : vector<4x128xf32>
    %13 = arith.select %10, %8, %12 : vector<4x128xi1>, vector<4x128xf32>
    %14 = arith.truncf %13 : vector<4x128xf32> to vector<4x128xbf16>
    %c0_8 = arith.constant 0 : index
    %c0_9 = arith.constant 0 : index
    %c0_10 = arith.constant 0 : index
    %c0_11 = arith.constant 0 : index
    %15 = vector.load %arg5[%c0_8, %c0_9, %c0_10, %c0_11] : memref<1x1x4x128xbf16, #tpu.memory_space<vmem>>, vector<1x1x4x128xbf16>
    %16 = vector.shape_cast %15 : vector<1x1x4x128xbf16> to vector<4x128xbf16>
    %17 = vector.shape_cast %14 : vector<4x128xbf16> to vector<1x1x4x128xbf16>
    tpu.vector_store %arg5[%c0_8, %c0_9, %c0_10, %c0_11], %17 {strides = array<i32>} : memref<1x1x4x128xbf16, #tpu.memory_space<vmem>>, vector<1x1x4x128xbf16>,
    return
  }
  func.func @transform_0(%arg0: i32, %arg1: i32) -> (i32, i32, i32, i32) {
    %c0_i32 = arith.constant 0 : i32
    %c0_i32_0 = arith.constant 0 : i32
    %c0_i32_1 = arith.constant 0 : i32
    return %arg0, %arg1, %c0_i32, %c0_i32_0 : i32, i32, i32, i32
  }
  func.func @transform_1(%arg0: i32, %arg1: i32) -> (i32, i32) {
    %c0_i32 = arith.constant 0 : i32
    %c0_i32_0 = arith.constant 0 : i32
    %c0_i32_1 = arith.constant 0 : i32
    return %c0_i32, %c0_i32_0 : i32, i32
  }
  func.func @transform_2(%arg0: i32, %arg1: i32) -> (i32, i32) {
    %c0_i32 = arith.constant 0 : i32
    %c0_i32_0 = arith.constant 0 : i32
    %c0_i32_1 = arith.constant 0 : i32
    return %c0_i32, %c0_i32_0 : i32, i32
  }
  func.func @transform_3(%arg0: i32, %arg1: i32) -> (i32, i32, i32, i32) {
    %c0_i32 = arith.constant 0 : i32
    %c0_i32_0 = arith.constant 0 : i32
    %c0_i32_1 = arith.constant 0 : i32
    return %arg0, %arg1, %c0_i32, %c0_i32_0 : i32, i32, i32, i32
  }
}

module attributes {stable_mosaic.version = 11 : i64} {
  func.func @_conv_s2_kernel(%arg0: i32, %arg1: i32, %arg2: memref<1x1x3x256xbf16, #tpu.memory_space<vmem>>, %arg3: memref<1x1x3x256xbf16, #tpu.memory_space<vmem>>, %arg4: memref<1x1x3x256xbf16, #tpu.memory_space<vmem>>, %arg5: memref<1536x128xbf16, #tpu.memory_space<vmem>>, %arg6: memref<1x128xf32, #tpu.memory_space<vmem>>, %arg7: memref<1x1x2x128xbf16, #tpu.memory_space<vmem>>, %arg8: memref<8x128xf32, #tpu.memory_space<vmem>>) attributes {dimension_semantics = [#tpu.dimension_semantics<arbitrary>, #tpu.dimension_semantics<arbitrary>], iteration_bounds = array<i64: 2, 2>, scalar_prefetch = 0 : i64, scratch_operands = 0 : i64, tpu.core_type = #tpu.core_type<tc>, window_params = [{transform_indices = @transform_0, window_bounds = array<i64: 1, 1, 3, 256>}, {transform_indices = @transform_1, window_bounds = array<i64: 1, 1, 3, 256>}, {transform_indices = @transform_2, window_bounds = array<i64: 1, 1, 3, 256>}, {pipeline_mode = #tpu.pipeline_mode<synchronous>, transform_indices = @transform_3, window_bounds = array<i64: 1536, 128>}, {pipeline_mode = #tpu.pipeline_mode<synchronous>, transform_indices = @transform_4, window_bounds = array<i64: 1, 128>}, {transform_indices = @transform_5, window_bounds = array<i64: 1, 1, 2, 128>}, {pipeline_mode = #tpu.pipeline_mode<synchronous>, transform_indices = @transform_6, window_bounds = array<i64: 8, 128>}]} {
    %c0_i32 = arith.constant 0 : i32
    %0 = arith.cmpi eq, %arg0, %c0_i32 : i32
    %c0_i32_0 = arith.constant 0 : i32
    %1 = arith.cmpi eq, %arg1, %c0_i32_0 : i32
    %2 = arith.andi %0, %1 : i1
    %3 = arith.extui %2 : i1 to i32
    %c0_i32_1 = arith.constant 0 : i32
    %4 = arith.cmpi ne, %3, %c0_i32_1 : i32
    scf.if %4 {
      %cst_41 = arith.constant 0.000000e+00 : f32
      %54 = vector.broadcast %cst_41 : f32 to vector<8x128xf32>
      %c0_42 = arith.constant 0 : index
      %c0_43 = arith.constant 0 : index
      %55 = vector.load %arg8[%c0_42, %c0_43] : memref<8x128xf32, #tpu.memory_space<vmem>>, vector<8x128xf32>
      tpu.vector_store %arg8[%c0_42, %c0_43], %54 {strides = array<i32>} : memref<8x128xf32, #tpu.memory_space<vmem>>, vector<8x128xf32>,
    } else {
    }
    %cst = arith.constant 0.000000e+00 : f32
    %5 = vector.broadcast %cst : f32 to vector<2x128xf32>
    %c0 = arith.constant 0 : index
    %c0_2 = arith.constant 0 : index
    %c0_3 = arith.constant 0 : index
    %c0_4 = arith.constant 0 : index
    %6 = vector.load %arg2[%c0, %c0_2, %c0_3, %c0_4] : memref<1x1x3x256xbf16, #tpu.memory_space<vmem>>, vector<1x1x3x256xbf16>
    %7 = vector.shape_cast %6 : vector<1x1x3x256xbf16> to vector<3x256xbf16>
    %8 = vector.extract_strided_slice %7 {offsets = [0, 0], sizes = [2, 256], strides = [1, 1]} : vector<3x256xbf16> to vector<2x256xbf16>
    %c0_5 = arith.constant 0 : index
    %c0_6 = arith.constant 0 : index
    %9 = vector.load %arg5[%c0_5, %c0_6] : memref<1536x128xbf16, #tpu.memory_space<vmem>>, vector<256x128xbf16>
    %cst_7 = arith.constant dense<0.000000e+00> : vector<2x128xf32>
    %10 = tpu.matmul %8, %9, %cst_7 {dimension_numbers = #tpu.dot_dimension_numbers<[1], [0], [0], [1], [0, 0, 1, 1], [], []>} : vector<2x256xbf16>, vector<256x128xbf16>, vector<2x128xf32> -> vector<2x128xf32>
    %11 = arith.addf %5, %10 : vector<2x128xf32>
    %12 = vector.extract_strided_slice %7 {offsets = [1, 0], sizes = [2, 256], strides = [1, 1]} : vector<3x256xbf16> to vector<2x256xbf16>
    %c256 = arith.constant 256 : index
    %c0_8 = arith.constant 0 : index
    %13 = vector.load %arg5[%c256, %c0_8] : memref<1536x128xbf16, #tpu.memory_space<vmem>>, vector<256x128xbf16>
    %cst_9 = arith.constant dense<0.000000e+00> : vector<2x128xf32>
    %14 = tpu.matmul %12, %13, %cst_9 {dimension_numbers = #tpu.dot_dimension_numbers<[1], [0], [0], [1], [0, 0, 1, 1], [], []>} : vector<2x256xbf16>, vector<256x128xbf16>, vector<2x128xf32> -> vector<2x128xf32>
    %15 = arith.addf %11, %14 : vector<2x128xf32>
    %c0_10 = arith.constant 0 : index
    %c0_11 = arith.constant 0 : index
    %c0_12 = arith.constant 0 : index
    %c0_13 = arith.constant 0 : index
    %16 = vector.load %arg3[%c0_10, %c0_11, %c0_12, %c0_13] : memref<1x1x3x256xbf16, #tpu.memory_space<vmem>>, vector<1x1x3x256xbf16>
    %17 = vector.shape_cast %16 : vector<1x1x3x256xbf16> to vector<3x256xbf16>
    %18 = vector.extract_strided_slice %17 {offsets = [0, 0], sizes = [2, 256], strides = [1, 1]} : vector<3x256xbf16> to vector<2x256xbf16>
    %c512 = arith.constant 512 : index
    %c0_14 = arith.constant 0 : index
    %19 = vector.load %arg5[%c512, %c0_14] : memref<1536x128xbf16, #tpu.memory_space<vmem>>, vector<256x128xbf16>
    %cst_15 = arith.constant dense<0.000000e+00> : vector<2x128xf32>
    %20 = tpu.matmul %18, %19, %cst_15 {dimension_numbers = #tpu.dot_dimension_numbers<[1], [0], [0], [1], [0, 0, 1, 1], [], []>} : vector<2x256xbf16>, vector<256x128xbf16>, vector<2x128xf32> -> vector<2x128xf32>
    %21 = arith.addf %15, %20 : vector<2x128xf32>
    %22 = vector.extract_strided_slice %17 {offsets = [1, 0], sizes = [2, 256], strides = [1, 1]} : vector<3x256xbf16> to vector<2x256xbf16>
    %c768 = arith.constant 768 : index
    %c0_16 = arith.constant 0 : index
    %23 = vector.load %arg5[%c768, %c0_16] : memref<1536x128xbf16, #tpu.memory_space<vmem>>, vector<256x128xbf16>
    %cst_17 = arith.constant dense<0.000000e+00> : vector<2x128xf32>
    %24 = tpu.matmul %22, %23, %cst_17 {dimension_numbers = #tpu.dot_dimension_numbers<[1], [0], [0], [1], [0, 0, 1, 1], [], []>} : vector<2x256xbf16>, vector<256x128xbf16>, vector<2x128xf32> -> vector<2x128xf32>
    %25 = arith.addf %21, %24 : vector<2x128xf32>
    %c0_18 = arith.constant 0 : index
    %c0_19 = arith.constant 0 : index
    %c0_20 = arith.constant 0 : index
    %c0_21 = arith.constant 0 : index
    %26 = vector.load %arg4[%c0_18, %c0_19, %c0_20, %c0_21] : memref<1x1x3x256xbf16, #tpu.memory_space<vmem>>, vector<1x1x3x256xbf16>
    %27 = vector.shape_cast %26 : vector<1x1x3x256xbf16> to vector<3x256xbf16>
    %28 = vector.extract_strided_slice %27 {offsets = [0, 0], sizes = [2, 256], strides = [1, 1]} : vector<3x256xbf16> to vector<2x256xbf16>
    %c1024 = arith.constant 1024 : index
    %c0_22 = arith.constant 0 : index
    %29 = vector.load %arg5[%c1024, %c0_22] : memref<1536x128xbf16, #tpu.memory_space<vmem>>, vector<256x128xbf16>
    %cst_23 = arith.constant dense<0.000000e+00> : vector<2x128xf32>
    %30 = tpu.matmul %28, %29, %cst_23 {dimension_numbers = #tpu.dot_dimension_numbers<[1], [0], [0], [1], [0, 0, 1, 1], [], []>} : vector<2x256xbf16>, vector<256x128xbf16>, vector<2x128xf32> -> vector<2x128xf32>
    %31 = arith.addf %25, %30 : vector<2x128xf32>
    %32 = vector.extract_strided_slice %27 {offsets = [1, 0], sizes = [2, 256], strides = [1, 1]} : vector<3x256xbf16> to vector<2x256xbf16>
    %c1280 = arith.constant 1280 : index
    %c0_24 = arith.constant 0 : index
    %33 = vector.load %arg5[%c1280, %c0_24] : memref<1536x128xbf16, #tpu.memory_space<vmem>>, vector<256x128xbf16>
    %cst_25 = arith.constant dense<0.000000e+00> : vector<2x128xf32>
    %34 = tpu.matmul %32, %33, %cst_25 {dimension_numbers = #tpu.dot_dimension_numbers<[1], [0], [0], [1], [0, 0, 1, 1], [], []>} : vector<2x256xbf16>, vector<256x128xbf16>, vector<2x128xf32> -> vector<2x128xf32>
    %35 = arith.addf %31, %34 : vector<2x128xf32>
    %c0_26 = arith.constant 0 : index
    %c0_27 = arith.constant 0 : index
    %36 = vector.load %arg6[%c0_26, %c0_27] : memref<1x128xf32, #tpu.memory_space<vmem>>, vector<1x128xf32>
    %37 = vector.broadcast %36 : vector<1x128xf32> to vector<2x128xf32>
    %38 = arith.addf %35, %37 : vector<2x128xf32>
    %39 = arith.truncf %38 : vector<2x128xf32> to vector<2x128xbf16>
    %c0_28 = arith.constant 0 : index
    %c0_29 = arith.constant 0 : index
    %c0_30 = arith.constant 0 : index
    %c0_31 = arith.constant 0 : index
    %40 = vector.load %arg7[%c0_28, %c0_29, %c0_30, %c0_31] : memref<1x1x2x128xbf16, #tpu.memory_space<vmem>>, vector<1x1x2x128xbf16>
    %41 = vector.shape_cast %40 : vector<1x1x2x128xbf16> to vector<2x128xbf16>
    %42 = vector.shape_cast %39 : vector<2x128xbf16> to vector<1x1x2x128xbf16>
    tpu.vector_store %arg7[%c0_28, %c0_29, %c0_30, %c0_31], %42 {strides = array<i32>} : memref<1x1x2x128xbf16, #tpu.memory_space<vmem>>, vector<1x1x2x128xbf16>,
    %c0_32 = arith.constant 0 : index
    %c0_33 = arith.constant 0 : index
    %43 = vector.load %arg8[%c0_32, %c0_33] : memref<8x128xf32, #tpu.memory_space<vmem>>, vector<1x128xf32>
    %cst_34 = arith.constant dense<0.000000e+00> : vector<128xf32>
    %44 = vector.multi_reduction <add>, %38, %cst_34 [0] : vector<2x128xf32> to vector<128xf32>
    %45 = vector.shape_cast %44 : vector<128xf32> to vector<1x128xf32>
    %46 = arith.addf %43, %45 : vector<1x128xf32>
    %c0_35 = arith.constant 0 : index
    %c0_36 = arith.constant 0 : index
    %47 = vector.load %arg8[%c0_35, %c0_36] : memref<8x128xf32, #tpu.memory_space<vmem>>, vector<1x128xf32>
    tpu.vector_store %arg8[%c0_35, %c0_36], %46 {strides = array<i32>} : memref<8x128xf32, #tpu.memory_space<vmem>>, vector<1x128xf32>,
    %c1 = arith.constant 1 : index
    %c0_37 = arith.constant 0 : index
    %48 = vector.load %arg8[%c1, %c0_37] : memref<8x128xf32, #tpu.memory_space<vmem>>, vector<1x128xf32>
    %49 = arith.mulf %38, %38 : vector<2x128xf32>
    %cst_38 = arith.constant dense<0.000000e+00> : vector<128xf32>
    %50 = vector.multi_reduction <add>, %49, %cst_38 [0] : vector<2x128xf32> to vector<128xf32>
    %51 = vector.shape_cast %50 : vector<128xf32> to vector<1x128xf32>
    %52 = arith.addf %48, %51 : vector<1x128xf32>
    %c1_39 = arith.constant 1 : index
    %c0_40 = arith.constant 0 : index
    %53 = vector.load %arg8[%c1_39, %c0_40] : memref<8x128xf32, #tpu.memory_space<vmem>>, vector<1x128xf32>
    tpu.vector_store %arg8[%c1_39, %c0_40], %52 {strides = array<i32>} : memref<8x128xf32, #tpu.memory_space<vmem>>, vector<1x128xf32>,
    return
  }
  func.func @transform_0(%arg0: i32, %arg1: i32) -> (i32, i32, i32, i32) {
    %c2_i32 = arith.constant 2 : i32
    %0 = arith.muli %c2_i32, %arg1 : i32
    %c0_i32 = arith.constant 0 : i32
    %1 = arith.addi %0, %c0_i32 : i32
    %c0_i32_0 = arith.constant 0 : i32
    %c0_i32_1 = arith.constant 0 : i32
    %c0_i32_2 = arith.constant 0 : i32
    return %arg0, %1, %c0_i32_0, %c0_i32_1 : i32, i32, i32, i32
  }
  func.func @transform_1(%arg0: i32, %arg1: i32) -> (i32, i32, i32, i32) {
    %c2_i32 = arith.constant 2 : i32
    %0 = arith.muli %c2_i32, %arg1 : i32
    %c1_i32 = arith.constant 1 : i32
    %1 = arith.addi %0, %c1_i32 : i32
    %c0_i32 = arith.constant 0 : i32
    %c0_i32_0 = arith.constant 0 : i32
    %c0_i32_1 = arith.constant 0 : i32
    return %arg0, %1, %c0_i32, %c0_i32_0 : i32, i32, i32, i32
  }
  func.func @transform_2(%arg0: i32, %arg1: i32) -> (i32, i32, i32, i32) {
    %c2_i32 = arith.constant 2 : i32
    %0 = arith.muli %c2_i32, %arg1 : i32
    %c2_i32_0 = arith.constant 2 : i32
    %1 = arith.addi %0, %c2_i32_0 : i32
    %c0_i32 = arith.constant 0 : i32
    %c0_i32_1 = arith.constant 0 : i32
    %c0_i32_2 = arith.constant 0 : i32
    return %arg0, %1, %c0_i32, %c0_i32_1 : i32, i32, i32, i32
  }
  func.func @transform_3(%arg0: i32, %arg1: i32) -> (i32, i32) {
    %c0_i32 = arith.constant 0 : i32
    %c0_i32_0 = arith.constant 0 : i32
    %c0_i32_1 = arith.constant 0 : i32
    return %c0_i32, %c0_i32_0 : i32, i32
  }
  func.func @transform_4(%arg0: i32, %arg1: i32) -> (i32, i32) {
    %c0_i32 = arith.constant 0 : i32
    %c0_i32_0 = arith.constant 0 : i32
    %c0_i32_1 = arith.constant 0 : i32
    return %c0_i32, %c0_i32_0 : i32, i32
  }
  func.func @transform_5(%arg0: i32, %arg1: i32) -> (i32, i32, i32, i32) {
    %c0_i32 = arith.constant 0 : i32
    %c0_i32_0 = arith.constant 0 : i32
    %c0_i32_1 = arith.constant 0 : i32
    return %arg0, %arg1, %c0_i32, %c0_i32_0 : i32, i32, i32, i32
  }
  func.func @transform_6(%arg0: i32, %arg1: i32) -> (i32, i32) {
    %c0_i32 = arith.constant 0 : i32
    %c0_i32_0 = arith.constant 0 : i32
    %c0_i32_1 = arith.constant 0 : i32
    return %c0_i32, %c0_i32_0 : i32, i32
  }
}

module attributes {stable_mosaic.version = 11 : i64} {
  func.func @_bn_lrelu_kernel(%arg0: i32, %arg1: i32, %arg2: memref<1x1x2x128xbf16, #tpu.memory_space<vmem>>, %arg3: memref<1x128xf32, #tpu.memory_space<vmem>>, %arg4: memref<1x128xf32, #tpu.memory_space<vmem>>, %arg5: memref<1x1x2x128xbf16, #tpu.memory_space<vmem>>) attributes {dimension_semantics = [#tpu.dimension_semantics<parallel>, #tpu.dimension_semantics<parallel>], iteration_bounds = array<i64: 2, 2>, scalar_prefetch = 0 : i64, scratch_operands = 0 : i64, tpu.core_type = #tpu.core_type<tc>, window_params = [{transform_indices = @transform_0, window_bounds = array<i64: 1, 1, 2, 128>}, {pipeline_mode = #tpu.pipeline_mode<synchronous>, transform_indices = @transform_1, window_bounds = array<i64: 1, 128>}, {pipeline_mode = #tpu.pipeline_mode<synchronous>, transform_indices = @transform_2, window_bounds = array<i64: 1, 128>}, {transform_indices = @transform_3, window_bounds = array<i64: 1, 1, 2, 128>}]} {
    %c0 = arith.constant 0 : index
    %c0_0 = arith.constant 0 : index
    %c0_1 = arith.constant 0 : index
    %c0_2 = arith.constant 0 : index
    %0 = vector.load %arg2[%c0, %c0_0, %c0_1, %c0_2] : memref<1x1x2x128xbf16, #tpu.memory_space<vmem>>, vector<1x1x2x128xbf16>
    %1 = vector.shape_cast %0 : vector<1x1x2x128xbf16> to vector<2x128xbf16>
    %2 = arith.extf %1 : vector<2x128xbf16> to vector<2x128xf32>
    %c0_3 = arith.constant 0 : index
    %c0_4 = arith.constant 0 : index
    %3 = vector.load %arg3[%c0_3, %c0_4] : memref<1x128xf32, #tpu.memory_space<vmem>>, vector<1x128xf32>
    %4 = vector.broadcast %3 : vector<1x128xf32> to vector<2x128xf32>
    %5 = arith.mulf %2, %4 : vector<2x128xf32>
    %c0_5 = arith.constant 0 : index
    %c0_6 = arith.constant 0 : index
    %6 = vector.load %arg4[%c0_5, %c0_6] : memref<1x128xf32, #tpu.memory_space<vmem>>, vector<1x128xf32>
    %7 = vector.broadcast %6 : vector<1x128xf32> to vector<2x128xf32>
    %8 = arith.addf %5, %7 : vector<2x128xf32>
    %cst = arith.constant 0.000000e+00 : f32
    %9 = vector.broadcast %cst : f32 to vector<2x128xf32>
    %10 = arith.cmpf oge, %8, %9 : vector<2x128xf32>
    %cst_7 = arith.constant 0.00999999977 : f32
    %11 = vector.broadcast %cst_7 : f32 to vector<2x128xf32>
    %12 = arith.mulf %11, %8 : vector<2x128xf32>
    %13 = arith.select %10, %8, %12 : vector<2x128xi1>, vector<2x128xf32>
    %14 = arith.truncf %13 : vector<2x128xf32> to vector<2x128xbf16>
    %c0_8 = arith.constant 0 : index
    %c0_9 = arith.constant 0 : index
    %c0_10 = arith.constant 0 : index
    %c0_11 = arith.constant 0 : index
    %15 = vector.load %arg5[%c0_8, %c0_9, %c0_10, %c0_11] : memref<1x1x2x128xbf16, #tpu.memory_space<vmem>>, vector<1x1x2x128xbf16>
    %16 = vector.shape_cast %15 : vector<1x1x2x128xbf16> to vector<2x128xbf16>
    %17 = vector.shape_cast %14 : vector<2x128xbf16> to vector<1x1x2x128xbf16>
    tpu.vector_store %arg5[%c0_8, %c0_9, %c0_10, %c0_11], %17 {strides = array<i32>} : memref<1x1x2x128xbf16, #tpu.memory_space<vmem>>, vector<1x1x2x128xbf16>,
    return
  }
  func.func @transform_0(%arg0: i32, %arg1: i32) -> (i32, i32, i32, i32) {
    %c0_i32 = arith.constant 0 : i32
    %c0_i32_0 = arith.constant 0 : i32
    %c0_i32_1 = arith.constant 0 : i32
    return %arg0, %arg1, %c0_i32, %c0_i32_0 : i32, i32, i32, i32
  }
  func.func @transform_1(%arg0: i32, %arg1: i32) -> (i32, i32) {
    %c0_i32 = arith.constant 0 : i32
    %c0_i32_0 = arith.constant 0 : i32
    %c0_i32_1 = arith.constant 0 : i32
    return %c0_i32, %c0_i32_0 : i32, i32
  }
  func.func @transform_2(%arg0: i32, %arg1: i32) -> (i32, i32) {
    %c0_i32 = arith.constant 0 : i32
    %c0_i32_0 = arith.constant 0 : i32
    %c0_i32_1 = arith.constant 0 : i32
    return %c0_i32, %c0_i32_0 : i32, i32
  }
  func.func @transform_3(%arg0: i32, %arg1: i32) -> (i32, i32, i32, i32) {
    %c0_i32 = arith.constant 0 : i32
    %c0_i32_0 = arith.constant 0 : i32
    %c0_i32_1 = arith.constant 0 : i32
    return %arg0, %arg1, %c0_i32, %c0_i32_0 : i32, i32, i32, i32
  }
}

</mosaic_0001>

<bundles_post_ra>
// kernel: encoder_forward.9
= control target key start
LH: loop header
LB: loop body
LE: loop exit
PB: predicated region body
PF: predicated region fallthrough
CT: control target
= control target key end

     0   :  { %s424_s12 = smov 0   ;;  %s426_s13 = smov 0   ;;  %s478_s0 = inlined_call_operand.vmem [shape: bf16[2,8,8,128], index: 0, kind: input, shape index: {}]   ;;  %s479_s1 = inlined_call_operand.vmem [shape: f32[1,128], index: 1, kind: input, shape index: {}]   ;;  %s480_s2 = inlined_call_operand.vmem [shape: f32[1,128], index: 2, kind: input, shape index: {}]   ;;  %s481_s3 = inlined_call_operand.vmem [shape: bf16[2,8,8,128], index: 3, kind: output, shape index: {}]  }
   0x1   :  { %s428_s14 = smov 0   ;;  %s430_s15 = smov 0  }
   0x2   :  { %s432_s16 = smov 0  }
   0x3 LB: > { %s22_s17 = sadd.s32 1, %s394_s14  ;;  %s25_s18 = sadd.s32 1, %s398_s15  ;;  %s402_s16 = sphi %s432_s16, %s13_s16   ;;  %s398_s15 = sphi %s430_s15, %s485_s15   ;;  %s394_s14 = sphi %s428_s14, %s484_s14   ;;  %s390_s13 = sphi %s426_s13, %s483_s13   ;;  %s386_s12 = sphi %s424_s12, %s482_s12  }
   0x4   : > { %p23_p0 = scmp.ge.s32.totalorder %s22_s17, 8  ;;  %p315_p1 = scmp.ge.s32.totalorder %s402_s16, 1 }
   0x5   : > { %p156_p2 = scmp.lt.s32.totalorder %s402_s16, 17 }
   0x6   : > { %s487_s17 = smov (%p23_p0, %s22_s17), 0  ;;  %s489_s18 = smov (!%p23_p0, %s25_s18), %s398_s15 }
   0x7   : > { %p157_p3 = pnand %p315_p1, %p156_p2  ;;  %p27_p4 = scmp.ge.s32.totalorder %s489_s18, 2 }
   0x8   : > { %p186_p5 = scmp.lt.s32.totalorder (!%p157_p3), %s390_s13, 1  ;;  %p188_p6 = scmp.lt.s32.totalorder (!%p157_p3), %s386_s12, 7  ;;  %v320_v1 = vld [vmem:[%s479_s1] ss:$0 sm:$0xff] (!%p157_p3) }
   0x9   : > { %s491_s18 = smov (%p27_p4, %s489_s18), 0  ;;  %160 = sbr.rel (%p157_p3) target bundleno = 34 (0x22), region = 32 }
   0xa   : > { %v321_v3 = vld [vmem:[%s480_s2] ss:$0 sm:$0xff] (!%p157_p3) }
  0x10   : > { %s493_s13 = smov (!%p186_p5, %s390_s13), 1  ;;  %s495_s12 = smov (!%p188_p6, %s386_s12), 7 }
  0x11   : > { %s316_s19 = sshll.u32 %s493_s13, 3 }
  0x12   : > { %s191_s20 = sadd.s32 %s316_s19, %s495_s12 }
  0x13   : > { %s317_s21 = sshll.u32 %s191_s20, 2 }
  0x14   : > { %s193_s24 = scalar_lea.vmem %s478_s0, %s317_s21  ;;  %s201_s4 = scalar_lea.vmem %s481_s3, %s317_s21 }
  0x15   : > { %v202_v0 = vld [vmem:[%s193_s24] sm:$0xf] }
  0x16   : > { %v203_v2 = vunpack.c.l.bf16 %v202_v0 }
  0x18   : > { %v211_v4 = vmul.f32 %v320_v1, %v203_v2 }
  0x1a   : > { %v219_v5 = vadd.f32 %v321_v3, %v211_v4 }
  0x1c   : > { %vm220_vm0 = vcmp.ge.f32.partialorder %v219_v5, 0.0  ;;  %v221_v6 = vmul.f32 0.01, %v219_v5 }
  0x1e   : > { %v222_v7 = vsel %vm220_vm0, %v219_v5, %v221_v6 }
  0x1f   : > { %v223_v8 = vpack.c.bf16 %v222_v7, %v222_v7 }
  0x21   : > { %224 = vst [vmem:[%s201_s4] sm:$0xf] %v223_v8 }
  0x22 PF: > { %s13_s16 = sadd.s32 1, %s402_s16   ;;  %s482_s12 = smov %s394_s14 }
  0x23   : > { %p10_p7 = scmp.ge.s32.totalorder %s13_s16, 18   ;;  %s483_s13 = smov %s398_s15 }
  0x24   : > { %s484_s14 = smov %s487_s17  ;;  %s485_s15 = smov %s491_s18 }
  0x25   :  { %12 = sbr.rel (!%p10_p7) target bundleno = 3 (0x3), region = 62 }

// kernel: encoder_forward.7
= control target key start
LH: loop header
LB: loop body
LE: loop exit
PB: predicated region body
PF: predicated region fallthrough
CT: control target
= control target key end

     0   :  { %s2112_s18 = smov 0   ;;  %s2114_s19 = smov 0   ;;  %s2529_s0 = inlined_call_operand.vmem [shape: bf16[2,18,18,128], index: 0, kind: input, shape index: {}, may-alias: {0,1,2}]   ;;  %s2530_s1 = inlined_call_operand.vmem [shape: bf16[2,18,18,128], index: 1, kind: input, shape index: {}, may-alias: {0,1,2}]   ;;  %s2531_s2 = inlined_call_operand.vmem [shape: bf16[2,18,18,128], index: 2, kind: input, shape index: {}, may-alias: {0,1,2}]   ;;  %s2532_s3 = inlined_call_operand.vmem [shape: bf16[1152,128], index: 3, kind: input, shape index: {}]   ;;  %s2533_s4 = inlined_call_operand.vmem [shape: f32[1,128], index: 4, kind: input, shape index: {}]   ;;  %s2534_s5 = inlined_call_operand.vmem [shape: bf16[2,16,16,128], index: 5, kind: output, shape index: {}]  }
   0x1   :  { %s2116_s20 = smov 0   ;;  %s2118_s21 = smov 0  }
   0x2   :  { %s2120_s22 = smov 0  }
   0x3 LB: > { %s24_s23 = sadd.s32 1, %s2070_s20  ;;  %s27_s24 = sadd.s32 1, %s2074_s21  ;;  %s2078_s22 = sphi %s2120_s22, %s15_s22   ;;  %s2074_s21 = sphi %s2118_s21, %s2538_s21   ;;  %s2070_s20 = sphi %s2116_s20, %s2537_s20   ;;  %s2066_s19 = sphi %s2114_s19, %s2536_s19   ;;  %s2062_s18 = sphi %s2112_s18, %s2535_s18  }
   0x4   : > { %p25_p0 = scmp.ge.s32.totalorder %s24_s23, 16  ;;  %p1558_p1 = scmp.ge.s32.totalorder %s2078_s22, 1 }
   0x5   : > { %p247_p2 = scmp.lt.s32.totalorder %s2078_s22, 33 }
   0x6   : > { %s2540_s23 = smov (%p25_p0, %s24_s23), 0  ;;  %s2542_s24 = smov (!%p25_p0, %s27_s24), %s2074_s21 }
   0x7   : > { %p248_p3 = pnand %p1558_p1, %p247_p2  ;;  %p29_p4 = scmp.ge.s32.totalorder %s2542_s24, 2 }
   0x8   : > { %v1962_v0 = vld [vmem:[%s2532_s3 + $0x40] sm:$0xff] (!%p248_p3)   ;;  %v2080_v1 = vmov (!%p248_p3), 0.0   ;;  %v1964_v3 = vld [vmem:[%s2532_s3 + $0x48] sm:$0xff] (!%p248_p3)   ;;  %vm2081_vm0 = vmmov (!%p248_p3), 0   ;;  %p303_p5 = scmp.lt.s32.totalorder (!%p248_p3), %s2066_s19, 1  ;;  %p305_p6 = scmp.lt.s32.totalorder (!%p248_p3), %s2062_s18, 17 }
   0x9   : > { %s2544_s24 = smov (%p29_p4, %s2542_s24), 0  ;;  %251 = sbr.rel (%p248_p3) target bundleno = 394 (0x18a), region = 40 }
   0xa   : > { %1736 = vmatprep.subr.bf16.mxu0 (!%p248_p3), %v2080_v1  ;;  %1756 = vmatprep.subr.bf16.mxu1 (!%p248_p3), %v2080_v1  ;;  %v1963_v2 = vld [vmem:[%s2532_s3] sm:$0xff] (!%p248_p3)   ;;  %v1965_v4 = vld [vmem:[%s2532_s3 + $0x8] sm:$0xff] (!%p248_p3)   ;;  %v1966_v5 = vld [vmem:[%s2532_s3 + $0x50] sm:$0xff] (!%p248_p3)   ;;  %s312_s28 = sadd.s32 (!%p248_p3), 1, %s2062_s18  ;;  %vm387_vm1 = vsmask.f32 (!%p248_p3), 7424 }
   0xb   : > { %1737 = vmatpush3.bf16.msra.mxu0 (!%p248_p3), %v1962_v0  ;;  %1752 = vmatprep.mubr.msk.bf16.mxu0 (!%p248_p3), %vm2081_vm0, %v2080_v1  ;;  %v1967_v6 = vld [vmem:[%s2532_s3 + $0x10] sm:$0xff] (!%p248_p3)   ;;  %v1968_v7 = vld [vmem:[%s2532_s3 + $0x58] sm:$0xff] (!%p248_p3)   ;;  %v1970_v9 = vld [vmem:[%s2532_s3 + $0x60] sm:$0xff] (!%p248_p3)   ;;  %p315_p7 = scmp.lt.s32.totalorder (!%p248_p3), %s312_s28, 17  ;;  %vm596_vm2 = vcmask (!%p248_p3), 1046528   ;;  %p336_p9 = scmp.lt.s32.totalorder (!%p248_p3), %s2062_s18, 15 }
   0xc   : > { %1757 = vmatpush3.bf16.msra.mxu1 (!%p248_p3), %v1963_v2  ;;  %1738 = vmatprep.subr.bf16.mxu0 (!%p248_p3), %v2080_v1  ;;  %v1969_v8 = vld [vmem:[%s2532_s3 + $0x18] sm:$0xff] (!%p248_p3)   ;;  %v1971_v10 = vld [vmem:[%s2532_s3 + $0x20] sm:$0xff] (!%p248_p3)   ;;  %v1972_v13 = vld [vmem:[%s2532_s3 + $0x68] sm:$0xff] (!%p248_p3)  }
   0xd   : > { %1758 = vmatprep.subr.bf16.mxu1 (!%p248_p3), %v2080_v1  ;;  %1772 = vmatprep.mubr.msk.bf16.mxu1 (!%p248_p3), %vm2081_vm0, %v2080_v1  ;;  %v1973_v14 = vld [vmem:[%s2532_s3 + $0x28] sm:$0xff] (!%p248_p3)   ;;  %v1974_v16 = vld [vmem:[%s2532_s3 + $0x70] sm:$0xff] (!%p248_p3)   ;;  %v1976_v21 = vld [vmem:[%s2532_s3 + $0x78] sm:$0xff] (!%p248_p3)  }
   0xe   : > { %v1975_v20 = vld [vmem:[%s2532_s3 + $0x30] sm:$0xff] (!%p248_p3)   ;;  %v1977_v22 = vld [vmem:[%s2532_s3 + $0x38] sm:$0xff] (!%p248_p3)   ;;  %v1980_v26 = vld [vmem:[%s2532_s3 + $0x80] sm:$0xff] (!%p248_p3)  }
   0xf   : > { %1739 = vmatpush3.bf16.msra.mxu0 (!%p248_p3), %v1964_v3  ;;  %v1981_v27 = vld [vmem:[%s2532_s3 + $0xc0] sm:$0xff] (!%p248_p3)   ;;  %v1982_v28 = vld [vmem:[%s2532_s3 + $0x88] sm:$0xff] (!%p248_p3)   ;;  %v1984_v30 = vld [vmem:[%s2532_s3 + $0x90] sm:$0xff] (!%p248_p3)  }
  0x10   : > { %s2546_s19 = smov (!%p303_p5, %s2066_s19), 1  ;;  %1759 = vmatpush3.bf16.msra.mxu1 %v1965_v4  ;;  %1740 = vmatprep.subr.bf16.mxu0 %v2080_v1  ;;  %s2548_s28 = smov (!%p315_p7, %s312_s28), 17  ;;  %v1983_v29 = vld [vmem:[%s2532_s3 + $0xc8] sm:$0xff]   ;;  %v1985_v31 = vld [vmem:[%s2532_s3 + $0xd0] sm:$0xff]   ;;  %v1986_v32 = vld [vmem:[%s2532_s3 + $0x98] sm:$0xff]  }
  0x11   : > { %s306_s8 = scalar_select %p305_p6, %s2062_s18, 17  ;;  %1760 = vmatprep.subr.bf16.mxu1 %v2080_v1  ;;  %v1987_v33 = vld [vmem:[%s2532_s3 + $0xd8] sm:$0xff]   ;;  %v1988_v34 = vld [vmem:[%s2532_s3 + $0xa0] sm:$0xff]   ;;  %v1990_v36 = vld [vmem:[%s2532_s3 + $0xa8] sm:$0xff]  }
  0x12   : > { %s2176_s11 = smul.u32 54, %s2546_s19  ;;  %v1989_v35 = vld [vmem:[%s2532_s3 + $0xe0] sm:$0xff]   ;;  %v1991_v37 = vld [vmem:[%s2532_s3 + $0xe8] sm:$0xff]   ;;  %v1992_v38 = vld [vmem:[%s2532_s3 + $0xb0] sm:$0xff]   ;;  %s1563_s16 = sshll.u32 %s2546_s19, 5 }
  0x13   : > { %s1916_s14 = smul.u32 3, %s306_s8  ;;  %1741 = vmatpush3.bf16.msra.mxu0 %v1966_v5  ;;  %v1993_v39 = vld [vmem:[%s2532_s3 + $0xf0] sm:$0xff]   ;;  %v1994_v41 = vld [vmem:[%s2532_s3 + $0xb8] sm:$0xff]   ;;  %v1996_v44 = vld [vmem:[%s2532_s3 + $0x100] sm:$0xff]  }
  0x14   : > { %1761 = vmatpush3.bf16.msra.mxu1 %v1967_v6  ;;  %1742 = vmatprep.subr.bf16.mxu0 %v2080_v1  ;;  %v1995_v43 = vld [vmem:[%s2532_s3 + $0xf8] sm:$0xff]   ;;  %v1998_v47 = vld [vmem:[%s2532_s3 + $0x140] sm:$0xff]   ;;  %v1999_v48 = vld [vmem:[%s2532_s3 + $0x108] sm:$0xff]  }
  0x15   : > { %s309_s15 = sadd.s32 %s2176_s11, %s1916_s14  ;;  %1762 = vmatprep.subr.bf16.mxu1 %v2080_v1  ;;  %s323_s14 = sadd.s32 2, %s2062_s18  ;;  %v2000_v49 = vld [vmem:[%s2532_s3 + $0x148] sm:$0xff]   ;;  %v2001_v50 = vld [vmem:[%s2532_s3 + $0x110] sm:$0xff]   ;;  %v2003_v52 = vld [vmem:[%s2532_s3 + $0x118] sm:$0xff]  }
  0x16   : > { %s1559_s27 = sshll.u32 %s309_s15, 2  ;;  %p326_p8 = scmp.lt.s32.totalorder %s323_s14, 17  ;;  %v2002_v51 = vld [vmem:[%s2532_s3 + $0x150] sm:$0xff]   ;;  %v2004_v53 = vld [vmem:[%s2532_s3 + $0x158] sm:$0xff]   ;;  %v2005_v54 = vld [vmem:[%s2532_s3 + $0x120] sm:$0xff]  }
  0x17   : > { %1743 = vmatpush3.bf16.msra.mxu0 %v1968_v7  ;;  %s311_s8 = scalar_lea.vmem %s2529_s0, %s1559_s27  ;;  %s1918_s27 = smul.u32 3, %s2548_s28  ;;  %v2006_v55 = vld [vmem:[%s2532_s3 + $0x160] sm:$0xff]   ;;  %v2007_v56 = vld [vmem:[%s2532_s3 + $0x128] sm:$0xff]   ;;  %v2009_v60 = vld [vmem:[%s2532_s3 + $0x130] sm:$0xff]  }
  0x18   : > { %1763 = vmatpush3.bf16.msra.mxu1 %v1969_v8  ;;  %1744 = vmatprep.subr.bf16.mxu0 %v2080_v1  ;;  %v2204_v11 = vld [vmem:[%s311_s8] sm:$0xff]   ;;  %v2206_v12 = vld [vmem:[%s311_s8 + $0x8] ss:$0 sps:$4 sm:$0x11]   ;;  %s2550_s14 = smov (!%p326_p8, %s323_s14), 17  ;;  %v2010_v0 = vld [vmem:[%s2532_s3 + $0x170] sm:$0xff]  }
  0x19   : > { %1764 = vmatprep.subr.bf16.mxu1 %v2080_v1  ;;  %v391_v15 = vshll.u32 %v2204_v11, 16  ;;  %v389_v17 = vshrl.u32 %v2204_v11, 16  ;;  %v396_v19 = vshll.u32 %v2206_v12, 16  ;;  %s319_s8 = sadd.s32 %s1918_s27, %s2176_s11  ;;  %v597_v40 = vrot.slane %v2204_v11, 1  ;;  %s1919_s28 = smul.u32 3, %s2550_s14  ;;  %v2008_v59 = vld [vmem:[%s2532_s3 + $0x168] sm:$0xff]  }
  0x1a   : > { %s1560_s13 = sshll.u32 %s319_s8, 2  ;;  %v598_v42 = vrot.slane %v2206_v12, 1  ;;  %v2011_v2 = vld [vmem:[%s2532_s3 + $0x138] sm:$0xff]   ;;  %v2016_v12 = vld [vmem:[%s2532_s3 + $0x188] sm:$0xff]   ;;  %s2552_s18 = smov (!%p336_p9, %s2062_s18), 15 }
  0x1b   : > { %1745 = vmatpush3.bf16.msra.mxu0 %v1970_v9  ;;  %v393_v18 = vrot.slane %v391_v15, 1  ;;  %v398_v24 = vrot.slane %v396_v19, 1  ;;  %s2252_s25 = scalar_lea.vmem %s2530_s1, %s1560_s13  ;;  %s330_s14 = sadd.s32 %s1919_s28, %s2176_s11  ;;  %v2012_v5 = vld [vmem:[%s2532_s3 + $0x178] sm:$0xff]   ;;  %v2014_v9 = vld [vmem:[%s2532_s3 + $0x180] sm:$0xff]   ;;  %v2019_v15 = vld [vmem:[%s2532_s3 + $0x1d0] sm:$0xff]  }
  0x1c   : > { %1765 = vmatpush3.bf16.msra.mxu1 %v1971_v10  ;;  %1746 = vmatprep.subr.bf16.mxu0 %v2080_v1  ;;  %v599_v45 = vsel %vm596_vm2, %v597_v40, %v598_v42  ;;  %v2320_v46 = vld [vmem:[%s2252_s25] sm:$0xff]   ;;  %s1561_s27 = sshll.u32 %s330_s14, 2  ;;  %v2013_v57 = vld [vmem:[%s2252_s25 + $0x8] ss:$0 sps:$4 sm:$0x11]   ;;  %v2039_v42 = vld [vmem:[%s2532_s3 + $0x238] sm:$0xff]  }
  0x1d   : > { %1766 = vmatprep.subr.bf16.mxu1 %v2080_v1  ;;  %v394_v23 = vor.u32 %v393_v18, %v389_v17  ;;  %s2338_s28 = scalar_lea.vmem %s2531_s2, %s1561_s27  ;;  %v830_v58 = vshll.u32 %v2320_v46, 16  ;;  %v828_v61 = vshrl.u32 %v2320_v46, 16  ;;  %v835_v63 = vshll.u32 %v2013_v57, 16  ;;  %v2021_v17 = vld [vmem:[%s2532_s3 + $0x1d8] sm:$0xff]   ;;  %v2022_v18 = vld [vmem:[%s2532_s3 + $0x1a0] sm:$0xff]   ;;  %v2037_v40 = vld [vmem:[%s2532_s3 + $0x228] sm:$0xff]  }
  0x1e   : > { %v947_v6 = vrot.slane %v2320_v46, 1  ;;  %v948_v7 = vrot.slane %v2013_v57, 1  ;;  %v2023_v19 = vld [vmem:[%s2532_s3 + $0x1e0] sm:$0xff]   ;;  %s1562_s15 = sshll.u32 %s2552_s18, 1 }
  0x1f   : > { %1747 = vmatpush3.bf16.msra.mxu0 %v1972_v13  ;;  %v399_v25 = vsel %vm387_vm1, %v394_v23, %v398_v24  ;;  %v832_v62 = vrot.slane %v830_v58, 1  ;;  %v837_v4 = vrot.slane %v835_v63, 1  ;;  %v2017_v13 = vld [vmem:[%s2532_s3 + $0x1c8] sm:$0xff]   ;;  %s340_s14 = sadd.s32 %s1563_s16, %s1562_s15 }
  0x20   : > { %1767 = vmatpush3.bf16.msra.mxu1 %v1973_v14  ;;  %1748 = vmatprep.subr.bf16.mxu0 %v2080_v1  ;;  %v949_v10 = vsel %vm596_vm2, %v947_v6, %v948_v7  ;;  %v2018_v14 = vld [vmem:[%s2532_s3 + $0x190] sm:$0xff]   ;;  %v2032_v23 = vld [vmem:[%s2338_s28 + $0x8] ss:$0 sps:$4 sm:$0x11]   ;;  %s1564_s17 = sshll.u32 %s340_s14, 2 }
  0x21   : > { %1768 = vmatprep.subr.bf16.mxu1 %v2080_v1  ;;  %v833_v3 = vor.u32 %v832_v62, %v828_v61  ;;  %s342_s11 = scalar_lea.vmem %s2534_s5, %s1564_s17 }
  0x23   : > { %1749 = vmatpush3.bf16.msra.mxu0 %v1974_v16  ;;  %v838_v8 = vsel %vm387_vm1, %v833_v3, %v837_v4  ;;  %v2020_v16 = vld [vmem:[%s2532_s3 + $0x198] sm:$0xff]  }
  0x24   : > { %1769 = vmatpush3.bf16.msra.mxu1 %v1975_v20  ;;  %1750 = vmatprep.subr.bf16.mxu0 %v2080_v1  ;;  %v2030_v20 = vld [vmem:[%s2338_s28] sm:$0xff]  }
  0x25   : > { %1770 = vmatprep.subr.bf16.mxu1 %v2080_v1  ;;  %v1180_v24 = vshll.u32 %v2030_v20, 16 }
  0x27   : > { %1751 = vmatpush3.bf16.msra.mxu0 %v1976_v21  ;;  %v2024_v21 = vld [vmem:[%s2532_s3 + $0x1a8] sm:$0xff]  }
  0x28   : > { %1771 = vmatpush3.bf16.msra.mxu1 %v1977_v22  ;;  %1776 = vmatprep.subr.bf16.mxu0 %v2080_v1  ;;  %v2025_v22 = vld [vmem:[%s2532_s3 + $0x1e8] sm:$0xff]  }
  0x29   : > { %1796 = vmatprep.subr.bf16.mxu1 %v2080_v1 }
  0x2a   : > { %1753 = vmatmul.mubr.bf16.vlgmr.msra.gmra.mrb[0].mxu0 %v399_v25  ;;  %v2026_v25 = vld [vmem:[%s2532_s3 + $0x1b0] sm:$0xff]  }
  0x2b   : > { %1773 = vmatmul.mubr.bf16.vlgmr.msra.gmra.mrb[0].mxu1 %v2204_v11  ;;  %1777 = vmatpush3.bf16.msra.mxu0 %v1980_v26  ;;  %v2015_v11 = vld [vmem:[%s2532_s3 + $0x1c0] sm:$0xff]   ;;  %v2027_v26 = vld [vmem:[%s2532_s3 + $0x1f0] sm:$0xff]  }
  0x2c   : > { %1797 = vmatpush3.bf16.msra.mxu1 %v1981_v27  ;;  %1778 = vmatprep.subr.bf16.mxu0 %v2080_v1  ;;  %v1178_v27 = vshrl.u32 %v2030_v20, 16 }
  0x2d   : > { %1798 = vmatprep.subr.bf16.mxu1 %v2080_v1  ;;  %1792 = vmatprep.mubr.msk.bf16.mxu0 %vm2081_vm0, %v2080_v1 }
  0x2e   : > { %1812 = vmatprep.mubr.msk.bf16.mxu1 %vm2081_vm0, %v2080_v1 }
  0x2f   : > { %1779 = vmatpush3.bf16.msra.mxu0 %v1982_v28  ;;  %v1182_v28 = vrot.slane %v1180_v24, 1 }
  0x30   : > { %1799 = vmatpush3.bf16.msra.mxu1 %v1983_v29  ;;  %1780 = vmatprep.subr.bf16.mxu0 %v2080_v1  ;;  %v1185_v29 = vshll.u32 %v2032_v23, 16 }
  0x31   : > { %1800 = vmatprep.subr.bf16.mxu1 %v2080_v1 }
  0x33   : > { %1781 = vmatpush3.bf16.msra.mxu0 %v1984_v30  ;;  %v2028_v30 = vld [vmem:[%s2532_s3 + $0x1b8] sm:$0xff]  }
  0x34   : > { %1801 = vmatpush3.bf16.msra.mxu1 %v1985_v31  ;;  %1782 = vmatprep.subr.bf16.mxu0 %v2080_v1  ;;  %v2029_v31 = vld [vmem:[%s2532_s3 + $0x1f8] sm:$0xff]  }
  0x35   : > { %1802 = vmatprep.subr.bf16.mxu1 %v2080_v1 }
  0x37   : > { %1783 = vmatpush3.bf16.msra.mxu0 %v1986_v32  ;;  %v1183_v32 = vor.u32 %v1182_v28, %v1178_v27 }
  0x38   : > { %1803 = vmatpush3.bf16.msra.mxu1 %v1987_v33  ;;  %1784 = vmatprep.subr.bf16.mxu0 %v2080_v1  ;;  %v1187_v33 = vrot.slane %v1185_v29, 1  ;;  %v1643_v29 = vld [vmem:[%s2533_s4] ss:$0 sm:$0xff] }
  0x39   : > { %1804 = vmatprep.subr.bf16.mxu1 %v2080_v1 }
  0x3b   : > { %1785 = vmatpush3.bf16.msra.mxu0 %v1988_v34  ;;  %v2031_v34 = vld [vmem:[%s2532_s3 + $0x200] sm:$0xff]  }
  0x3c   : > { %1805 = vmatpush3.bf16.msra.mxu1 %v1989_v35  ;;  %1786 = vmatprep.subr.bf16.mxu0 %v2080_v1  ;;  %v1188_v35 = vsel %vm387_vm1, %v1183_v32, %v1187_v33 }
  0x3d   : > { %1806 = vmatprep.subr.bf16.mxu1 %v2080_v1 }
  0x3f   : > { %1787 = vmatpush3.bf16.msra.mxu0 %v1990_v36  ;;  %v2033_v36 = vld [vmem:[%s2532_s3 + $0x208] sm:$0xff]  }
  0x40   : > { %1807 = vmatpush3.bf16.msra.mxu1 %v1991_v37  ;;  %1788 = vmatprep.subr.bf16.mxu0 %v2080_v1  ;;  %v2034_v37 = vld [vmem:[%s2532_s3 + $0x210] sm:$0xff]  }
  0x41   : > { %1808 = vmatprep.subr.bf16.mxu1 %v2080_v1 }
  0x43   : > { %1789 = vmatpush3.bf16.msra.mxu0 %v1992_v38  ;;  %v2035_v38 = vld [vmem:[%s2532_s3 + $0x218] sm:$0xff]  }
  0x44   : > { %1809 = vmatpush3.bf16.msra.mxu1 %v1993_v39  ;;  %1790 = vmatprep.subr.bf16.mxu0 %v2080_v1  ;;  %v2036_v39 = vld [vmem:[%s2532_s3 + $0x220] sm:$0xff]  }
  0x45   : > { %1810 = vmatprep.subr.bf16.mxu1 %v2080_v1 }
  0x47   : > { %1791 = vmatpush3.bf16.msra.mxu0 %v1994_v41  ;;  %v2038_v41 = vld [vmem:[%s2532_s3 + $0x230] sm:$0xff]  }
  0x48   : > { %1811 = vmatpush3.bf16.msra.mxu1 %v1995_v43  ;;  %1816 = vmatprep.subr.bf16.mxu0 %v2080_v1  ;;  %v1297_v43 = vrot.slane %v2030_v20, 1 }
  0x49   : > { %1836 = vmatprep.subr.bf16.mxu1 %v2080_v1 }
  0x4a   : > { %1793 = vmatmul.mubr.bf16.vlgmr.msra.gmra.mrb[4].mxu0 %v599_v45 }
  0x4b   : > { %1817 = vmatpush3.bf16.msra.mxu0 %v1996_v44  ;;  %1813 = vmatmul.mubr.bf16.vlgmr.msra.gmra.mrb[4].mxu1 %v2320_v46  ;;  %v1298_v44 = vrot.slane %v2032_v23, 1 }
  0x4c   : > { %1837 = vmatpush3.bf16.msra.mxu1 %v1998_v47  ;;  %1818 = vmatprep.subr.bf16.mxu0 %v2080_v1 }
  0x4d   : > { %1838 = vmatprep.subr.bf16.mxu1 %v2080_v1  ;;  %1832 = vmatprep.mubr.msk.bf16.mxu0 %vm2081_vm0, %v2080_v1  ;;  %v1299_v45 = vsel %vm596_vm2, %v1297_v43, %v1298_v44 }
  0x4e   : > { %1852 = vmatprep.mubr.msk.bf16.mxu1 %vm2081_vm0, %v2080_v1 }
  0x4f   : > { %1819 = vmatpush3.bf16.msra.mxu0 %v1999_v48 }
  0x50   : > { %1839 = vmatpush3.bf16.msra.mxu1 %v2000_v49  ;;  %1820 = vmatprep.subr.bf16.mxu0 %v2080_v1 }
  0x51   : > { %1840 = vmatprep.subr.bf16.mxu1 %v2080_v1 }
  0x53   : > { %1821 = vmatpush3.bf16.msra.mxu0 %v2001_v50 }
  0x54   : > { %1841 = vmatpush3.bf16.msra.mxu1 %v2002_v51  ;;  %1822 = vmatprep.subr.bf16.mxu0 %v2080_v1 }
  0x55   : > { %1842 = vmatprep.subr.bf16.mxu1 %v2080_v1 }
  0x57   : > { %1823 = vmatpush3.bf16.msra.mxu0 %v2003_v52 }
  0x58   : > { %1843 = vmatpush3.bf16.msra.mxu1 %v2004_v53  ;;  %1824 = vmatprep.subr.bf16.mxu0 %v2080_v1 }
  0x59   : > { %1844 = vmatprep.subr.bf16.mxu1 %v2080_v1 }
  0x5b   : > { %1825 = vmatpush3.bf16.msra.mxu0 %v2005_v54 }
  0x5c   : > { %1845 = vmatpush3.bf16.msra.mxu1 %v2006_v55  ;;  %1826 = vmatprep.subr.bf16.mxu0 %v2080_v1 }
  0x5d   : > { %1846 = vmatprep.subr.bf16.mxu1 %v2080_v1 }
  0x5f   : > { %1827 = vmatpush3.bf16.msra.mxu0 %v2007_v56 }
  0x60   : > { %1847 = vmatpush3.bf16.msra.mxu1 %v2008_v59  ;;  %1828 = vmatprep.subr.bf16.mxu0 %v2080_v1 }
  0x61   : > { %1848 = vmatprep.subr.bf16.mxu1 %v2080_v1 }
  0x63   : > { %1829 = vmatpush3.bf16.msra.mxu0 %v2009_v60 }
  0x64   : > { %1849 = vmatpush3.bf16.msra.mxu1 %v2010_v0  ;;  %1830 = vmatprep.subr.bf16.mxu0 %v2080_v1 }
  0x65   : > { %1850 = vmatprep.subr.bf16.mxu1 %v2080_v1 }
  0x67   : > { %1831 = vmatpush3.bf16.msra.mxu0 %v2011_v2 }
  0x68   : > { %1851 = vmatpush3.bf16.msra.mxu1 %v2012_v5  ;;  %1856 = vmatprep.subr.bf16.mxu0 %v2080_v1 }
  0x69   : > { %1876 = vmatprep.subr.bf16.mxu1 %v2080_v1 }
  0x6a   : > { %1833 = vmatmul.mubr.bf16.vlgmr.msra.gmra.mrb[8].mxu0 %v838_v8 }
  0x6b   : > { %1857 = vmatpush3.bf16.msra.mxu0 %v2014_v9  ;;  %1853 = vmatmul.mubr.bf16.vlgmr.msra.gmra.mrb[8].mxu1 %v949_v10 }
  0x6c   : > { %1877 = vmatpush3.bf16.msra.mxu1 %v2015_v11  ;;  %1858 = vmatprep.subr.bf16.mxu0 %v2080_v1 }
  0x6d   : > { %1878 = vmatprep.subr.bf16.mxu1 %v2080_v1  ;;  %1872 = vmatprep.mubr.msk.bf16.mxu0 %vm2081_vm0, %v2080_v1 }
  0x6e   : > { %1892 = vmatprep.mubr.msk.bf16.mxu1 %vm2081_vm0, %v2080_v1 }
  0x6f   : > { %1859 = vmatpush3.bf16.msra.mxu0 %v2016_v12 }
  0x70   : > { %1879 = vmatpush3.bf16.msra.mxu1 %v2017_v13  ;;  %1860 = vmatprep.subr.bf16.mxu0 %v2080_v1 }
  0x71   : > { %1880 = vmatprep.subr.bf16.mxu1 %v2080_v1 }
  0x73   : > { %1861 = vmatpush3.bf16.msra.mxu0 %v2018_v14 }
  0x74   : > { %1881 = vmatpush3.bf16.msra.mxu1 %v2019_v15  ;;  %1862 = vmatprep.subr.bf16.mxu0 %v2080_v1 }
  0x75   : > { %1882 = vmatprep.subr.bf16.mxu1 %v2080_v1 }
  0x77   : > { %1863 = vmatpush3.bf16.msra.mxu0 %v2020_v16 }
  0x78   : > { %1883 = vmatpush3.bf16.msra.mxu1 %v2021_v17  ;;  %1864 = vmatprep.subr.bf16.mxu0 %v2080_v1 }
  0x79   : > { %1884 = vmatprep.subr.bf16.mxu1 %v2080_v1 }
  0x7b   : > { %1865 = vmatpush3.bf16.msra.mxu0 %v2022_v18 }
  0x7c   : > { %1885 = vmatpush3.bf16.msra.mxu1 %v2023_v19  ;;  %1866 = vmatprep.subr.bf16.mxu0 %v2080_v1 }
  0x7d   : > { %1886 = vmatprep.subr.bf16.mxu1 %v2080_v1 }
  0x7f   : > { %1867 = vmatpush3.bf16.msra.mxu0 %v2024_v21 }
  0x80   : > { %1887 = vmatpush3.bf16.msra.mxu1 %v2025_v22  ;;  %1868 = vmatprep.subr.bf16.mxu0 %v2080_v1 }
  0x81   : > { %1888 = vmatprep.subr.bf16.mxu1 %v2080_v1 }
  0x83   : > { %1869 = vmatpush3.bf16.msra.mxu0 %v2026_v25 }
  0x84   : > { %1889 = vmatpush3.bf16.msra.mxu1 %v2027_v26  ;;  %1870 = vmatprep.subr.bf16.mxu0 %v2080_v1 }
  0x85   : > { %1890 = vmatprep.subr.bf16.mxu1 %v2080_v1 }
  0x87   : > { %1871 = vmatpush3.bf16.msra.mxu0 %v2028_v30 }
  0x88   : > { %1891 = vmatpush3.bf16.msra.mxu1 %v2029_v31  ;;  %1896 = vmatprep.subr.bf16.mxu0 %v2080_v1 }
  0x8a   : > { %1873 = vmatmul.mubr.bf16.vlgmr.msra.gmra.mrb[12].mxu0 %v2030_v20 }
  0x8b   : > { %1897 = vmatpush3.bf16.msra.mxu0 %v2031_v34  ;;  %1893 = vmatmul.mubr.bf16.vlgmr.msra.gmra.mrb[12].mxu1 %v1188_v35 }
  0x8c   : > { %1898 = vmatprep.subr.bf16.mxu0 %v2080_v1  ;;  %1912 = vmatprep.mubr.msk.bf16.mxu0 %vm2081_vm0, %v2080_v1 }
  0x8f   : > { %1899 = vmatpush3.bf16.msra.mxu0 %v2033_v36 }
  0x90   : > { %1900 = vmatprep.subr.bf16.mxu0 %v2080_v1 }
  0x93   : > { %1901 = vmatpush3.bf16.msra.mxu0 %v2034_v37 }
  0x94   : > { %1902 = vmatprep.subr.bf16.mxu0 %v2080_v1 }
  0x97   : > { %1903 = vmatpush3.bf16.msra.mxu0 %v2035_v38 }
  0x98   : > { %1904 = vmatprep.subr.bf16.mxu0 %v2080_v1 }
  0x9b   : > { %1905 = vmatpush3.bf16.msra.mxu0 %v2036_v39 }
  0x9c   : > { %1906 = vmatprep.subr.bf16.mxu0 %v2080_v1 }
  0x9f   : > { %1907 = vmatpush3.bf16.msra.mxu0 %v2037_v40 }
  0xa0   : > { %1908 = vmatprep.subr.bf16.mxu0 %v2080_v1 }
  0xa3   : > { %1909 = vmatpush3.bf16.msra.mxu0 %v2038_v41 }
  0xa4   : > { %1910 = vmatprep.subr.bf16.mxu0 %v2080_v1 }
  0xa7   : > { %1911 = vmatpush3.bf16.msra.mxu0 %v2039_v42 }
  0xaa   : > { %1913 = vmatmul.mubr.bf16.vlgmr.msra.gmra.mrb[16].mxu0 %v1299_v45 }
  0xfd   : > { %v483_v46 = vpop.f32.mrb[0].mxu0 }
  0xfe   : > { %v573_v47 = vpop.f32.mrb[0].mxu1  ;;  %v1754_v48 = vpop.f32.mrb[1].mxu0 }
  0xff   : > { %v574_v49 = vadd.f32 %v573_v47, %v483_v46  ;;  %v1774_v50 = vpop.f32.mrb[1].mxu1  ;;  %v486_v51 = vpop.f32.mrb[2].mxu0 }
 0x100   : > { %v576_v52 = vpop.f32.mrb[2].mxu1  ;;  %v1755_v53 = vpop.f32.mrb[3].mxu0 }
 0x101   : > { %v577_v54 = vadd.f32 %v576_v52, %v486_v51  ;;  %v1775_v55 = vpop.f32.mrb[3].mxu1 }
 0x11d   : > { %v683_v56 = vpop.f32.mrb[4].mxu0 }
 0x11e   : > { %v690_v57 = vadd.f32 %v683_v56, %v574_v49  ;;  %v1794_v58 = vpop.f32.mrb[5].mxu0  ;;  %v799_v59 = vpop.f32.mrb[4].mxu1 }
 0x11f   : > { %v686_v60 = vpop.f32.mrb[6].mxu0  ;;  %v1814_v1 = vpop.f32.mrb[5].mxu1 }
 0x120   : > { %v691_v61 = vadd.f32 %v686_v60, %v577_v54  ;;  %v806_v62 = vadd.f32 %v799_v59, %v690_v57  ;;  %v1795_v63 = vpop.f32.mrb[7].mxu0  ;;  %v802_v0 = vpop.f32.mrb[6].mxu1 }
 0x121   : > { %v1815_v2 = vpop.f32.mrb[7].mxu1 }
 0x122   : > { %v807_v3 = vadd.f32 %v802_v0, %v691_v61 }
 0x13d   : > { %v922_v4 = vpop.f32.mrb[8].mxu0 }
 0x13e   : > { %v929_v5 = vadd.f32 %v922_v4, %v806_v62  ;;  %v1834_v6 = vpop.f32.mrb[9].mxu0  ;;  %v1033_v7 = vpop.f32.mrb[8].mxu1 }
 0x13f   : > { %v925_v8 = vpop.f32.mrb[10].mxu0  ;;  %v1854_v9 = vpop.f32.mrb[9].mxu1 }
 0x140   : > { %v930_v10 = vadd.f32 %v925_v8, %v807_v3  ;;  %v1040_v11 = vadd.f32 %v1033_v7, %v929_v5  ;;  %v1835_v12 = vpop.f32.mrb[11].mxu0  ;;  %v1036_v13 = vpop.f32.mrb[10].mxu1 }
 0x141   : > { %v1855_v14 = vpop.f32.mrb[11].mxu1 }
 0x142   : > { %v1041_v15 = vadd.f32 %v1036_v13, %v930_v10 }
 0x15d   : > { %v1149_v16 = vpop.f32.mrb[12].mxu0 }
 0x15e   : > { %v1156_v17 = vadd.f32 %v1149_v16, %v1040_v11  ;;  %v1874_v18 = vpop.f32.mrb[13].mxu0  ;;  %v1272_v19 = vpop.f32.mrb[12].mxu1 }
 0x15f   : > { %v1152_v20 = vpop.f32.mrb[14].mxu0  ;;  %v1894_v21 = vpop.f32.mrb[13].mxu1 }
 0x160   : > { %v1157_v22 = vadd.f32 %v1152_v20, %v1041_v15  ;;  %v1279_v23 = vadd.f32 %v1272_v19, %v1156_v17  ;;  %v1875_v24 = vpop.f32.mrb[15].mxu0  ;;  %v1275_v25 = vpop.f32.mrb[14].mxu1 }
 0x161   : > { %v1895_v26 = vpop.f32.mrb[15].mxu1 }
 0x162   : > { %v1280_v27 = vadd.f32 %v1275_v25, %v1157_v22 }
 0x17d   : > { %v1383_v28 = vpop.f32.mrb[16].mxu0 }
 0x17e   : > { %v1390_v30 = vadd.f32 %v1383_v28, %v1279_v23  ;;  %v1914_v31 = vpop.f32.mrb[17].mxu0 }
 0x17f   : > { %v1386_v32 = vpop.f32.mrb[18].mxu0 }
 0x180   : > { %v1399_v33 = vadd.f32 %v1643_v29, %v1390_v30  ;;  %v1391_v34 = vadd.f32 %v1386_v32, %v1280_v27  ;;  %v1915_v35 = vpop.f32.mrb[19].mxu0 }
 0x182   : > { %v1403_v36 = vmul.f32 0.01, %v1399_v33  ;;  %v1400_v37 = vadd.f32 %v1643_v29, %v1391_v34  ;;  %vm1401_vm3 = vcmp.ge.f32.partialorder %v1399_v33, 0.0 }
 0x184   : > { %vm1402_vm4 = vcmp.ge.f32.partialorder %v1400_v37, 0.0  ;;  %v1404_v38 = vmul.f32 0.01, %v1400_v37  ;;  %v1405_v39 = vsel %vm1401_vm3, %v1399_v33, %v1403_v36 }
 0x186   : > { %v1406_v40 = vsel %vm1402_vm4, %v1400_v37, %v1404_v38 }
 0x187   : > { %v1653_v41 = vpack.c.bf16 %v1406_v40, %v1405_v39 }
 0x189   : > { %1654 = vst [vmem:[%s342_s11] sm:$0xff] %v1653_v41  }
 0x18a PF: > { %s15_s22 = sadd.s32 1, %s2078_s22   ;;  %s2535_s18 = smov %s2070_s20 }
 0x18b   : > { %p12_p10 = scmp.ge.s32.totalorder %s15_s22, 34   ;;  %s2536_s19 = smov %s2074_s21 }
 0x18c   : > { %s2537_s20 = smov %s2540_s23  ;;  %s2538_s21 = smov %s2544_s24 }
 0x18d   :  { %14 = sbr.rel (!%p12_p10) target bundleno = 3 (0x3), region = 76 }

// kernel: encoder_forward.8
= control target key start
LH: loop header
LB: loop body
LE: loop exit
PB: predicated region body
PF: predicated region fallthrough
CT: control target
= control target key end

     0   :  { %s2154_s21 = smov 0   ;;  %s2156_s22 = smov 0   ;;  %s2545_s0 = inlined_call_operand.vmem [shape: bf16[2,17,9,256], index: 0, kind: input, shape index: {}, may-alias: {0,1,2}]   ;;  %s2546_s1 = inlined_call_operand.vmem [shape: bf16[2,17,9,256], index: 1, kind: input, shape index: {}, may-alias: {0,1,2}]   ;;  %s2547_s2 = inlined_call_operand.vmem [shape: bf16[2,17,9,256], index: 2, kind: input, shape index: {}, may-alias: {0,1,2}]   ;;  %s2548_s3 = inlined_call_operand.vmem [shape: bf16[1536,128], index: 3, kind: input, shape index: {}]   ;;  %s2549_s4 = inlined_call_operand.vmem [shape: f32[1,128], index: 4, kind: input, shape index: {}]   ;;  %s2550_s5 = inlined_call_operand.vmem [shape: bf16[2,8,8,128], index: 5, kind: output, shape index: {0}]   ;;  %s2551_s6 = inlined_call_operand.vmem [shape: f32[8,128], index: 6, kind: output, shape index: {1}]  }
   0x1   :  { %s2158_s23 = smov 0   ;;  %s2160_s24 = smov 0  }
   0x2   :  { %s2162_s25 = smov 0  }
   0x3 LB: > { %2553 = sst [smem:[#allocation2_spill]] %s2112_s24  ;;  %s26_s26 = sadd.s32 1, %s2108_s23  ;;  %s2116_s25 = sphi %s2162_s25, %s17_s25   ;;  %s2112_s24 = sphi %s2160_s24, %s2558_s24   ;;  %s2108_s23 = sphi %s2158_s23, %s2560_s23   ;;  %s2104_s22 = sphi %s2156_s22, %s2556_s22   ;;  %s2100_s21 = sphi %s2154_s21, %s2559_s21  }
   0x4   : > { %s29_s27 = sadd.s32 1, %s2112_s24  ;;  %p27_p0 = scmp.ge.s32.totalorder %s26_s26, 8 }
   0x5   : > { %p1673_p1 = scmp.ge.s32.totalorder %s2116_s25, 1  ;;  %p282_p2 = scmp.lt.s32.totalorder %s2116_s25, 17 }
   0x6   : > { %s2562_s26 = smov (%p27_p0, %s26_s26), 0  ;;  %s2564_s27 = smov (!%p27_p0, %s29_s27), %s2112_s24 }
   0x7   : > { %2554 = sst [smem:[#allocation3_spill]] %s2562_s26  ;;  %p283_p3 = pnand %p1673_p1, %p282_p2 }
   0x8   : > { %p31_p4 = scmp.ge.s32.totalorder %s2564_s27, 2  ;;  %s1674_s28 = sshll.u32 (!%p283_p3), %s2100_s21, 1 }
   0x9   : > { %286 = sbr.rel (%p283_p3) target bundleno = 371 (0x173), region = 40  ;;  %p343_p5 = scmp.lt.s32.totalorder (!%p283_p3), %s2104_s22, 1 }
   0xa   : > { %s2566_s27 = smov (%p31_p4, %s2564_s27), 0  ;;  %p345_p6 = scmp.lt.s32.totalorder (!%p283_p3), %s1674_s28, 16 }
   0xb   : > { %2555 = sst [smem:[#allocation4_spill]] %s2566_s27  ;;  %s354_s29 = sadd.s32 (!%p283_p3), 1, %s1674_s28 }
   0xc   : > { %p357_p7 = scmp.lt.s32.totalorder (!%p283_p3), %s354_s29, 16  ;;  %s367_s10 = sadd.s32 (!%p283_p3), 2, %s1674_s28 }
   0xd   : > { %p370_p8 = scmp.lt.s32.totalorder (!%p283_p3), %s367_s10, 16  ;;  %p381_p9 = scmp.lt.s32.totalorder (!%p283_p3), %s2100_s21, 7 }
   0xe   : > { %p388_p10 = scmp.eq.s32.totalorder (!%p283_p3), %s2104_s22, 0  ;;  %p389_p11 = scmp.eq.s32.totalorder (!%p283_p3), %s2100_s21, 0 }
  0x10   : > { %s344_s30 = scalar_select %p343_p5, %s2104_s22, 1 }
  0x11   : > { %s346_s7 = scalar_select %p345_p6, %s1674_s28, 16 }
  0x12   : > { %s1928_s8 = smul.u32 68, %s344_s30  ;;  %s1683_s16 = sshll.u32 %s344_s30, 3 }
  0x13   : > { %s1675_s9 = sshll.u32 %s346_s7, 2  ;;  %s2568_s29 = smov (!%p357_p7, %s354_s29), 16 }
  0x14   : > { %s349_s11 = sadd.s32 %s1928_s8, %s1675_s9  ;;  %s2570_s10 = smov (!%p370_p8, %s367_s10), 16 }
  0x15   : > { %s1676_s12 = sshll.u32 %s349_s11, 2  ;;  %s1678_s17 = sshll.u32 %s2568_s29, 2 }
  0x16   : > { %s2195_s15 = scalar_lea.vmem %s2545_s0, %s1676_s12  ;;  %s361_s18 = sadd.s32 %s1928_s8, %s1678_s17 }
  0x17   : > { %s1681_s19 = sshll.u32 %s2570_s10, 2  ;;  %s1679_s20 = sshll.u32 %s361_s18, 2 }
  0x18   : > { %s374_s28 = sadd.s32 %s1928_s8, %s1681_s19  ;;  %s2201_s11 = scalar_lea.vmem %s2546_s1, %s1679_s20 }
  0x19   : > { %s1682_s27 = sshll.u32 %s374_s28, 2  ;;  %s2572_s21 = smov (!%p381_p9, %s2100_s21), 7 }
  0x1a   : > { %s2206_s12 = scalar_lea.vmem %s2547_s2, %s1682_s27  ;;  %p390_p12 = pnand %p389_p11, %p388_p10 }
  0x1b   : > { %s384_s22 = sadd.s32 %s1683_s16, %s2572_s21  ;;  %v2118_v0 = vmov (!%p390_p12), 0.0  }
  0x1c   : > { %s1684_s29 = sshll.u32 %s384_s22, 2  ;;  %393 = sbr.rel (%p390_p12) target bundleno = 35 (0x23), region = 44  ;;  %394 = vst [vmem:[%s2551_s6] sm:$0xff] (!%p390_p12), %v2118_v0 }
  0x1d   : > { %s2215_s8 = scalar_lea.vmem %s2550_s5, %s1684_s29 }
  0x23 PF: > { %v1970_v1 = vld [vmem:[%s2548_s3 + $0xc0] sm:$0xff]   ;;  %v1974_v5 = vld [vmem:[%s2548_s3 + $0xc8] sm:$0xff]   ;;  %v1978_v9 = vld [vmem:[%s2548_s3 + $0xd0] sm:$0xff]  }
  0x24   : > { %v1971_v2 = vld [vmem:[%s2548_s3 + $0x40] sm:$0xff]   ;;  %1796 = vmatprep.subr.bf16.mxu0 %v1970_v1  ;;  %v1975_v6 = vld [vmem:[%s2548_s3 + $0x48] sm:$0xff]   ;;  %v1979_v10 = vld [vmem:[%s2548_s3 + $0x50] sm:$0xff]  }
  0x25   : > { %v1972_v3 = vld [vmem:[%s2548_s3 + $0x80] sm:$0xff]   ;;  %1818 = vmatprep.subr.bf16.mxu1 %v1971_v2  ;;  %v1976_v7 = vld [vmem:[%s2548_s3 + $0x88] sm:$0xff]   ;;  %v1980_v11 = vld [vmem:[%s2548_s3 + $0x90] sm:$0xff]  }
  0x26   : > { %v1973_v4 = vld [vmem:[%s2548_s3] sm:$0xff]   ;;  %1797 = vmatpush3.bf16.msra.mxu0 %v1972_v3  ;;  %v1977_v8 = vld [vmem:[%s2548_s3 + $0x8] sm:$0xff]   ;;  %v1981_v12 = vld [vmem:[%s2548_s3 + $0x10] sm:$0xff]  }
  0x27   : > { %1819 = vmatpush3.bf16.msra.mxu1 %v1973_v4  ;;  %1798 = vmatprep.subr.bf16.mxu0 %v1974_v5  ;;  %v1982_v13 = vld [vmem:[%s2548_s3 + $0xd8] sm:$0xff]   ;;  %v1986_v17 = vld [vmem:[%s2548_s3 + $0xe0] sm:$0xff]   ;;  %v1990_v21 = vld [vmem:[%s2548_s3 + $0xe8] sm:$0xff]  }
  0x28   : > { %1820 = vmatprep.subr.bf16.mxu1 %v1975_v6  ;;  %v1983_v14 = vld [vmem:[%s2548_s3 + $0x58] sm:$0xff]   ;;  %v1987_v18 = vld [vmem:[%s2548_s3 + $0x60] sm:$0xff]   ;;  %v1991_v22 = vld [vmem:[%s2548_s3 + $0x68] sm:$0xff]  }
  0x29   : > { %v1984_v15 = vld [vmem:[%s2548_s3 + $0x98] sm:$0xff]   ;;  %v1988_v19 = vld [vmem:[%s2548_s3 + $0xa0] sm:$0xff]   ;;  %v1992_v23 = vld [vmem:[%s2548_s3 + $0xa8] sm:$0xff]  }
  0x2a   : > { %1799 = vmatpush3.bf16.msra.mxu0 %v1976_v7  ;;  %v1985_v16 = vld [vmem:[%s2548_s3 + $0x18] sm:$0xff]   ;;  %v1989_v20 = vld [vmem:[%s2548_s3 + $0x20] sm:$0xff]   ;;  %v1993_v24 = vld [vmem:[%s2548_s3 + $0x28] sm:$0xff]  }
  0x2b   : > { %1821 = vmatpush3.bf16.msra.mxu1 %v1977_v8  ;;  %1800 = vmatprep.subr.bf16.mxu0 %v1978_v9  ;;  %v1994_v25 = vld [vmem:[%s2548_s3 + $0xf0] sm:$0xff]   ;;  %v1998_v29 = vld [vmem:[%s2548_s3 + $0xf8] sm:$0xff]   ;;  %v395_v33 = vld [vmem:[%s2195_s15] sm:$0xff] }
  0x2c   : > { %1822 = vmatprep.subr.bf16.mxu1 %v1979_v10  ;;  %v1995_v26 = vld [vmem:[%s2548_s3 + $0x70] sm:$0xff]   ;;  %v1999_v30 = vld [vmem:[%s2548_s3 + $0x78] sm:$0xff]   ;;  %v396_v34 = vld [vmem:[%s2195_s15 + $0x8] sm:$0x11]  ;;  %v1704_v37 = vcombine.high %v395_v33, %v395_v33  ;;  %v1703_v38 = vcombine.low %v395_v33, %v395_v33 }
  0x2d   : > { %v1996_v27 = vld [vmem:[%s2548_s3 + $0xb0] sm:$0xff]   ;;  %v2000_v31 = vld [vmem:[%s2548_s3 + $0xb8] sm:$0xff]   ;;  %v1685_v35 = vcombine.low %v395_v33, %v396_v34  ;;  %v1686_v36 = vcombine.high %v395_v33, %v396_v34  ;;  %v2006_v39 = vld [vmem:[%s2548_s3 + $0x140] sm:$0xff]  }
  0x2e   : > { %1801 = vmatpush3.bf16.msra.mxu0 %v1980_v11  ;;  %v1997_v28 = vld [vmem:[%s2548_s3 + $0x30] sm:$0xff]   ;;  %v2001_v32 = vld [vmem:[%s2548_s3 + $0x38] sm:$0xff]   ;;  %v2007_v40 = vld [vmem:[%s2548_s3 + $0x1c0] sm:$0xff]   ;;  %753 = vmatprep.mubr.bf16.mxu1 %v1704_v37 }
  0x2f   : > { %1823 = vmatpush3.bf16.msra.mxu1 %v1981_v12  ;;  %1802 = vmatprep.subr.bf16.mxu0 %v1982_v13  ;;  %v477_v41 = vshrl.u32 %v1686_v36, 16  ;;  %v479_v42 = vshll.u32 %v1686_v36, 16  ;;  %v470_v43 = vshrl.u32 %v1685_v35, 16  ;;  %v472_v44 = vshll.u32 %v1685_v35, 16  ;;  %v2008_v47 = vld [vmem:[%s2548_s3 + $0x100] sm:$0xff]   ;;  %v2011_v51 = vld [vmem:[%s2548_s3 + $0x1c8] sm:$0xff]  }
  0x30   : > { %1824 = vmatprep.subr.bf16.mxu1 %v1983_v14  ;;  %v2009_v48 = vld [vmem:[%s2548_s3 + $0x180] sm:$0xff]   ;;  %v2010_v52 = vld [vmem:[%s2548_s3 + $0x148] sm:$0xff]   ;;  %v2015_v55 = vld [vmem:[%s2548_s3 + $0x1d0] sm:$0xff]  }
  0x31   : > { %v481_v45 = vrot.slane %v479_v42, 1  ;;  %v474_v46 = vrot.slane %v472_v44, 1  ;;  %v2013_v53 = vld [vmem:[%s2548_s3 + $0x188] sm:$0xff]   ;;  %v2014_v56 = vld [vmem:[%s2548_s3 + $0x150] sm:$0xff]   ;;  %v2019_v59 = vld [vmem:[%s2548_s3 + $0x1d8] sm:$0xff]  }
  0x32   : > { %1803 = vmatpush3.bf16.msra.mxu0 %v1984_v15  ;;  %v2012_v54 = vld [vmem:[%s2548_s3 + $0x108] sm:$0xff]   ;;  %v2017_v57 = vld [vmem:[%s2548_s3 + $0x190] sm:$0xff]   ;;  %v2018_v60 = vld [vmem:[%s2548_s3 + $0x158] sm:$0xff]  }
  0x33   : > { %1825 = vmatpush3.bf16.msra.mxu1 %v1985_v16  ;;  %1804 = vmatprep.subr.bf16.mxu0 %v1986_v17  ;;  %v482_v49 = vor.u32 %v481_v45, %v477_v41  ;;  %v475_v50 = vor.u32 %v474_v46, %v470_v43  ;;  %v2016_v58 = vld [vmem:[%s2548_s3 + $0x110] sm:$0xff]   ;;  %v2021_v61 = vld [vmem:[%s2548_s3 + $0x198] sm:$0xff]   ;;  %v2023_v63 = vld [vmem:[%s2548_s3 + $0x1e0] sm:$0xff]  }
  0x34   : > { %1826 = vmatprep.subr.bf16.mxu1 %v1987_v18  ;;  %v2020_v62 = vld [vmem:[%s2548_s3 + $0x118] sm:$0xff]   ;;  %v2022_v0 = vld [vmem:[%s2548_s3 + $0x160] sm:$0xff]   ;;  %v2027_v3 = vld [vmem:[%s2548_s3 + $0x1e8] sm:$0xff]  }
  0x35   : > { %613 = vmatprep.mubr.bf16.mxu0 %v482_v49  ;;  %v2025_v1 = vld [vmem:[%s2548_s3 + $0x1a0] sm:$0xff]   ;;  %v2026_v4 = vld [vmem:[%s2548_s3 + $0x168] sm:$0xff]   ;;  %v2031_v7 = vld [vmem:[%s2548_s3 + $0x1f0] sm:$0xff]  }
  0x36   : > { %1805 = vmatpush3.bf16.msra.mxu0 %v1988_v19  ;;  %v2024_v2 = vld [vmem:[%s2548_s3 + $0x120] sm:$0xff]   ;;  %v2029_v5 = vld [vmem:[%s2548_s3 + $0x1a8] sm:$0xff]   ;;  %v2030_v8 = vld [vmem:[%s2548_s3 + $0x170] sm:$0xff]  }
  0x37   : > { %1827 = vmatpush3.bf16.msra.mxu1 %v1989_v20  ;;  %1806 = vmatprep.subr.bf16.mxu0 %v1990_v21  ;;  %v2028_v6 = vld [vmem:[%s2548_s3 + $0x128] sm:$0xff]   ;;  %v2033_v9 = vld [vmem:[%s2548_s3 + $0x1b0] sm:$0xff]   ;;  %v2035_v11 = vld [vmem:[%s2548_s3 + $0x1f8] sm:$0xff]  }
  0x38   : > { %1828 = vmatprep.subr.bf16.mxu1 %v1991_v22  ;;  %v2032_v10 = vld [vmem:[%s2548_s3 + $0x130] sm:$0xff]   ;;  %v2034_v12 = vld [vmem:[%s2548_s3 + $0x178] sm:$0xff]   ;;  %v761_v15 = vld [vmem:[%s2201_s11] sm:$0xff] }
  0x39   : > { %v2036_v13 = vld [vmem:[%s2548_s3 + $0x138] sm:$0xff]   ;;  %v762_v16 = vld [vmem:[%s2201_s11 + $0x8] sm:$0x11]  ;;  %v1722_v17 = vcombine.high %v761_v15, %v761_v15  ;;  %v2042_v20 = vld [vmem:[%s2548_s3 + $0x240] sm:$0xff]  }
  0x3a   : > { %1807 = vmatpush3.bf16.msra.mxu0 %v1992_v23  ;;  %v2037_v14 = vld [vmem:[%s2548_s3 + $0x1b8] sm:$0xff]   ;;  %v1739_v18 = vcombine.low %v761_v15, %v762_v16  ;;  %v1740_v19 = vcombine.high %v761_v15, %v762_v16  ;;  %v2043_v21 = vld [vmem:[%s2548_s3 + $0x2c0] sm:$0xff]   ;;  %v2046_v33 = vld [vmem:[%s2548_s3 + $0x248] sm:$0xff]  }
  0x3b   : > { %1829 = vmatpush3.bf16.msra.mxu1 %v1993_v24  ;;  %1808 = vmatprep.subr.bf16.mxu0 %v1994_v25  ;;  %v2047_v34 = vld [vmem:[%s2548_s3 + $0x2c8] sm:$0xff]   ;;  %v2050_v37 = vld [vmem:[%s2548_s3 + $0x250] sm:$0xff]   ;;  %v2054_v41 = vld [vmem:[%s2548_s3 + $0x258] sm:$0xff]  }
  0x3c   : > { %1830 = vmatprep.subr.bf16.mxu1 %v1995_v26  ;;  %v984_v22 = vshrl.u32 %v1740_v19, 16  ;;  %v986_v23 = vshll.u32 %v1740_v19, 16  ;;  %v977_v24 = vshrl.u32 %v1739_v18, 16  ;;  %v979_v25 = vshll.u32 %v1739_v18, 16  ;;  %v2048_v35 = vld [vmem:[%s2548_s3 + $0x208] sm:$0xff]   ;;  %v2055_v42 = vld [vmem:[%s2548_s3 + $0x2d8] sm:$0xff]  }
  0x3d   : > { %v2049_v36 = vld [vmem:[%s2548_s3 + $0x288] sm:$0xff]   ;;  %v2056_v43 = vld [vmem:[%s2548_s3 + $0x218] sm:$0xff]   ;;  %v2058_v45 = vld [vmem:[%s2548_s3 + $0x260] sm:$0xff]  }
  0x3e   : > { %1809 = vmatpush3.bf16.msra.mxu0 %v1996_v27  ;;  %v988_v26 = vrot.slane %v986_v23, 1  ;;  %v1721_v27 = vcombine.low %v761_v15, %v761_v15  ;;  %v2057_v44 = vld [vmem:[%s2548_s3 + $0x298] sm:$0xff]   ;;  %v2059_v46 = vld [vmem:[%s2548_s3 + $0x2e0] sm:$0xff]   ;;  %v2062_v49 = vld [vmem:[%s2548_s3 + $0x268] sm:$0xff]  }
  0x3f   : > { %1831 = vmatpush3.bf16.msra.mxu1 %v1997_v28  ;;  %1810 = vmatprep.subr.bf16.mxu0 %v1998_v29  ;;  %v981_v28 = vrot.slane %v979_v25, 1  ;;  %v2044_v29 = vld [vmem:[%s2548_s3 + $0x200] sm:$0xff]  }
  0x40   : > { %1832 = vmatprep.subr.bf16.mxu1 %v1999_v30  ;;  %v2045_v30 = vld [vmem:[%s2548_s3 + $0x280] sm:$0xff]  }
  0x42   : > { %1811 = vmatpush3.bf16.msra.mxu0 %v2000_v31  ;;  %v989_v31 = vor.u32 %v988_v26, %v984_v22 }
  0x43   : > { %1833 = vmatpush3.bf16.msra.mxu1 %v2001_v32  ;;  %1840 = vmatprep.subr.bf16.mxu0 %v2006_v39  ;;  %v982_v32 = vor.u32 %v981_v28, %v977_v24  ;;  %v2052_v39 = vld [vmem:[%s2548_s3 + $0x210] sm:$0xff]  }
  0x44   : > { %1862 = vmatprep.subr.bf16.mxu1 %v2007_v40  ;;  %v2053_v40 = vld [vmem:[%s2548_s3 + $0x290] sm:$0xff]  }
  0x45   : > { %614 = vmatmul.mubr.bf16.vlgmr.msra.gmra.mrb[0].mxu0 %v475_v50  ;;  %v2063_v50 = vld [vmem:[%s2548_s3 + $0x2e8] sm:$0xff]  }
  0x46   : > { %754 = vmatmul.mubr.bf16.vlgmr.msra.gmra.mrb[0].mxu1 %v1703_v38  ;;  %1841 = vmatpush3.bf16.msra.mxu0 %v2008_v47  ;;  %v2051_v38 = vld [vmem:[%s2548_s3 + $0x2d0] sm:$0xff]   ;;  %v2060_v47 = vld [vmem:[%s2548_s3 + $0x220] sm:$0xff]  }
  0x47   : > { %1863 = vmatpush3.bf16.msra.mxu1 %v2009_v48  ;;  %1842 = vmatprep.subr.bf16.mxu0 %v2010_v52  ;;  %v2061_v48 = vld [vmem:[%s2548_s3 + $0x2a0] sm:$0xff]   ;;  %v2065_v52 = vld [vmem:[%s2548_s3 + $0x2a8] sm:$0xff]  }
  0x48   : > { %1864 = vmatprep.subr.bf16.mxu1 %v2011_v51  ;;  %930 = vmatprep.mubr.bf16.mxu0 %v1722_v17  ;;  %v2064_v51 = vld [vmem:[%s2548_s3 + $0x228] sm:$0xff]  }
  0x49   : > { %1120 = vmatprep.mubr.bf16.mxu1 %v989_v31 }
  0x4a   : > { %1843 = vmatpush3.bf16.msra.mxu0 %v2012_v54  ;;  %v2067_v54 = vld [vmem:[%s2548_s3 + $0x2f0] sm:$0xff]  }
  0x4b   : > { %1865 = vmatpush3.bf16.msra.mxu1 %v2013_v53  ;;  %1844 = vmatprep.subr.bf16.mxu0 %v2014_v56  ;;  %v2066_v53 = vld [vmem:[%s2548_s3 + $0x270] sm:$0xff]  }
  0x4c   : > { %1866 = vmatprep.subr.bf16.mxu1 %v2015_v55  ;;  %v2068_v55 = vld [vmem:[%s2548_s3 + $0x230] sm:$0xff]  }
  0x4d   : > { %v2069_v56 = vld [vmem:[%s2548_s3 + $0x2b0] sm:$0xff]  }
  0x4e   : > { %1845 = vmatpush3.bf16.msra.mxu0 %v2016_v58  ;;  %v2071_v58 = vld [vmem:[%s2548_s3 + $0x2f8] sm:$0xff]  }
  0x4f   : > { %1867 = vmatpush3.bf16.msra.mxu1 %v2017_v57  ;;  %1846 = vmatprep.subr.bf16.mxu0 %v2018_v60  ;;  %v2070_v57 = vld [vmem:[%s2548_s3 + $0x278] sm:$0xff]  }
  0x50   : > { %1868 = vmatprep.subr.bf16.mxu1 %v2019_v59  ;;  %v1129_v59 = vld [vmem:[%s2206_s12] sm:$0xff]  ;;  %v2072_v60 = vld [vmem:[%s2548_s3 + $0x238] sm:$0xff]  }
  0x52   : > { %1847 = vmatpush3.bf16.msra.mxu0 %v2020_v62  ;;  %v1130_v62 = vld [vmem:[%s2206_s12 + $0x8] sm:$0x11] }
  0x53   : > { %1869 = vmatpush3.bf16.msra.mxu1 %v2021_v61  ;;  %1848 = vmatprep.subr.bf16.mxu0 %v2022_v0  ;;  %v1758_v61 = vcombine.high %v1129_v59, %v1129_v59  ;;  %v1775_v0 = vcombine.low %v1129_v59, %v1130_v62 }
  0x54   : > { %1870 = vmatprep.subr.bf16.mxu1 %v2023_v63  ;;  %v2073_v63 = vld [vmem:[%s2548_s3 + $0x2b8] sm:$0xff]  }
  0x56   : > { %1849 = vmatpush3.bf16.msra.mxu0 %v2024_v2  ;;  %v1757_v2 = vcombine.low %v1129_v59, %v1129_v59 }
  0x57   : > { %1871 = vmatpush3.bf16.msra.mxu1 %v2025_v1  ;;  %1850 = vmatprep.subr.bf16.mxu0 %v2026_v4  ;;  %v1776_v1 = vcombine.high %v1129_v59, %v1130_v62  ;;  %v1507_v59 = vld [vmem:[%s2551_s6] sm:$0x1]  ;;  %v1516_v62 = vld [vmem:[%s2551_s6 + $0x1] sm:$0x1] }
  0x58   : > { %1872 = vmatprep.subr.bf16.mxu1 %v2027_v3 }
  0x59   : > { %v1352_v3 = vshrl.u32 %v1776_v1, 16  ;;  %v1354_v4 = vshll.u32 %v1776_v1, 16 }
  0x5a   : > { %1851 = vmatpush3.bf16.msra.mxu0 %v2028_v6  ;;  %v1347_v6 = vshll.u32 %v1775_v0, 16 }
  0x5b   : > { %1873 = vmatpush3.bf16.msra.mxu1 %v2029_v5  ;;  %1852 = vmatprep.subr.bf16.mxu0 %v2030_v8  ;;  %v1345_v5 = vshrl.u32 %v1775_v0, 16 }
  0x5c   : > { %1874 = vmatprep.subr.bf16.mxu1 %v2031_v7  ;;  %v1356_v7 = vrot.slane %v1354_v4, 1  ;;  %v1349_v8 = vrot.slane %v1347_v6, 1 }
  0x5e   : > { %1853 = vmatpush3.bf16.msra.mxu0 %v2032_v10  ;;  %v1350_v10 = vor.u32 %v1349_v8, %v1345_v5 }
  0x5f   : > { %1875 = vmatpush3.bf16.msra.mxu1 %v2033_v9  ;;  %1854 = vmatprep.subr.bf16.mxu0 %v2034_v12  ;;  %v1357_v9 = vor.u32 %v1356_v7, %v1352_v3 }
  0x60   : > { %1876 = vmatprep.subr.bf16.mxu1 %v2035_v11 }
  0x62   : > { %1855 = vmatpush3.bf16.msra.mxu0 %v2036_v13 }
  0x63   : > { %1877 = vmatpush3.bf16.msra.mxu1 %v2037_v14  ;;  %1884 = vmatprep.subr.bf16.mxu0 %v2042_v20 }
  0x64   : > { %1906 = vmatprep.subr.bf16.mxu1 %v2043_v21 }
  0x65   : > { %931 = vmatmul.mubr.bf16.vlgmr.msra.gmra.mrb[4].mxu0 %v1721_v27 }
  0x66   : > { %1121 = vmatmul.mubr.bf16.vlgmr.msra.gmra.mrb[4].mxu1 %v982_v32  ;;  %1885 = vmatpush3.bf16.msra.mxu0 %v2044_v29 }
  0x67   : > { %1907 = vmatpush3.bf16.msra.mxu1 %v2045_v30  ;;  %1886 = vmatprep.subr.bf16.mxu0 %v2046_v33 }
  0x68   : > { %1908 = vmatprep.subr.bf16.mxu1 %v2047_v34  ;;  %1298 = vmatprep.mubr.bf16.mxu0 %v1758_v61 }
  0x69   : > { %1488 = vmatprep.mubr.bf16.mxu1 %v1357_v9 }
  0x6a   : > { %1887 = vmatpush3.bf16.msra.mxu0 %v2048_v35 }
  0x6b   : > { %1909 = vmatpush3.bf16.msra.mxu1 %v2049_v36  ;;  %1888 = vmatprep.subr.bf16.mxu0 %v2050_v37 }
  0x6c   : > { %1910 = vmatprep.subr.bf16.mxu1 %v2051_v38 }
  0x6e   : > { %1889 = vmatpush3.bf16.msra.mxu0 %v2052_v39 }
  0x6f   : > { %1911 = vmatpush3.bf16.msra.mxu1 %v2053_v40  ;;  %1890 = vmatprep.subr.bf16.mxu0 %v2054_v41 }
  0x70   : > { %1912 = vmatprep.subr.bf16.mxu1 %v2055_v42 }
  0x72   : > { %1891 = vmatpush3.bf16.msra.mxu0 %v2056_v43 }
  0x73   : > { %1913 = vmatpush3.bf16.msra.mxu1 %v2057_v44  ;;  %1892 = vmatprep.subr.bf16.mxu0 %v2058_v45  ;;  %v1793_v44 = vld [vmem:[%s2549_s4] ss:$0 sm:$0xff] }
  0x74   : > { %1914 = vmatprep.subr.bf16.mxu1 %v2059_v46 }
  0x76   : > { %1893 = vmatpush3.bf16.msra.mxu0 %v2060_v47 }
  0x77   : > { %1915 = vmatpush3.bf16.msra.mxu1 %v2061_v48  ;;  %1894 = vmatprep.subr.bf16.mxu0 %v2062_v49 }
  0x78   : > { %1916 = vmatprep.subr.bf16.mxu1 %v2063_v50 }
  0x7a   : > { %1895 = vmatpush3.bf16.msra.mxu0 %v2064_v51 }
  0x7b   : > { %1917 = vmatpush3.bf16.msra.mxu1 %v2065_v52  ;;  %1896 = vmatprep.subr.bf16.mxu0 %v2066_v53 }
  0x7c   : > { %1918 = vmatprep.subr.bf16.mxu1 %v2067_v54 }
  0x7e   : > { %1897 = vmatpush3.bf16.msra.mxu0 %v2068_v55 }
  0x7f   : > { %1919 = vmatpush3.bf16.msra.mxu1 %v2069_v56  ;;  %1898 = vmatprep.subr.bf16.mxu0 %v2070_v57 }
  0x80   : > { %1920 = vmatprep.subr.bf16.mxu1 %v2071_v58 }
  0x82   : > { %1899 = vmatpush3.bf16.msra.mxu0 %v2072_v60 }
  0x83   : > { %1921 = vmatpush3.bf16.msra.mxu1 %v2073_v63 }
  0x85   : > { %1299 = vmatmul.mubr.bf16.vlgmr.msra.gmra.mrb[8].mxu0 %v1757_v2 }
  0x86   : > { %1489 = vmatmul.mubr.bf16.vlgmr.msra.gmra.mrb[8].mxu1 %v1350_v10 }
 0x118   : > { %v1812_v16 = vpop.f32.mrb[0].mxu0 }
 0x119   : > { %v1834_v11 = vpop.f32.mrb[0].mxu1  ;;  %v1813_v17 = vpop.f32.mrb[1].mxu0 }
 0x11a   : > { %v1835_v12 = vpop.f32.mrb[1].mxu1  ;;  %v1814_v18 = vadd.f32 %v1813_v17, %v1812_v16  ;;  %v1815_v19 = vpop.f32.mrb[2].mxu0 }
 0x11b   : > { %v1836_v13 = vadd.f32 %v1835_v12, %v1834_v11  ;;  %v1837_v14 = vpop.f32.mrb[2].mxu1  ;;  %v1816_v20 = vpop.f32.mrb[3].mxu0 }
 0x11c   : > { %v1838_v15 = vpop.f32.mrb[3].mxu1 }
 0x11d   : > { %v756_v21 = vadd.f32 %v1836_v13, %v1814_v18 }
 0x138   : > { %v1856_v22 = vpop.f32.mrb[4].mxu0 }
 0x139   : > { %v1878_v23 = vpop.f32.mrb[4].mxu1  ;;  %v1857_v24 = vpop.f32.mrb[5].mxu0 }
 0x13a   : > { %v1858_v25 = vadd.f32 %v1857_v24, %v1856_v22  ;;  %v1879_v26 = vpop.f32.mrb[5].mxu1  ;;  %v1859_v27 = vpop.f32.mrb[6].mxu0 }
 0x13b   : > { %v1880_v28 = vadd.f32 %v1879_v26, %v1878_v23  ;;  %v1881_v29 = vpop.f32.mrb[6].mxu1  ;;  %v1860_v30 = vpop.f32.mrb[7].mxu0 }
 0x13c   : > { %v938_v31 = vadd.f32 %v1858_v25, %v756_v21  ;;  %v1882_v32 = vpop.f32.mrb[7].mxu1 }
 0x13e   : > { %v1128_v33 = vadd.f32 %v1880_v28, %v938_v31 }
 0x158   : > { %v1900_v34 = vpop.f32.mrb[8].mxu0 }
 0x159   : > { %v1901_v35 = vpop.f32.mrb[9].mxu0  ;;  %v1922_v38 = vpop.f32.mrb[8].mxu1 }
 0x15a   : > { %v1902_v36 = vadd.f32 %v1901_v35, %v1900_v34  ;;  %v1903_v37 = vpop.f32.mrb[10].mxu0  ;;  %v1923_v41 = vpop.f32.mrb[9].mxu1 }
 0x15b   : > { %v1904_v39 = vpop.f32.mrb[11].mxu0  ;;  %v1924_v42 = vadd.f32 %v1923_v41, %v1922_v38  ;;  %v1925_v43 = vpop.f32.mrb[10].mxu1 }
 0x15c   : > { %v1306_v40 = vadd.f32 %v1902_v36, %v1128_v33  ;;  %v1926_v45 = vpop.f32.mrb[11].mxu1 }
 0x15e   : > { %v1496_v46 = vadd.f32 %v1924_v42, %v1306_v40 }
 0x160   : > { %v1504_v47 = vadd.f32 %v1793_v44, %v1496_v46 }
 0x162   : > { %v1505_v48 = vpack.c.bf16 %v1504_v47, %v1504_v47  ;;  %v1508_v49 = vrot.slane %v1504_v47, 4  ;;  %v1517_v50 = vmul.f32 %v1504_v47, %v1504_v47 }
 0x164   : > { %1506 = vst [vmem:[%s2215_s8] sm:$0xf] %v1505_v48  ;;  %v1509_v51 = vadd.f32 %v1508_v49, %v1504_v47  ;;  %v1518_v52 = vrot.slane %v1517_v50, 4 }
 0x166   : > { %v1510_v53 = vrot.slane %v1509_v51, 2  ;;  %v1519_v54 = vadd.f32 %v1518_v52, %v1517_v50 }
 0x168   : > { %v1511_v55 = vadd.f32 %v1510_v53, %v1509_v51  ;;  %v1520_v56 = vrot.slane %v1519_v54, 2 }
 0x16a   : > { %v1512_v57 = vrot.slane %v1511_v55, 1  ;;  %v1521_v58 = vadd.f32 %v1520_v56, %v1519_v54 }
 0x16c   : > { %v1513_v60 = vadd.f32 %v1512_v57, %v1511_v55  ;;  %v1522_v61 = vrot.slane %v1521_v58, 1 }
 0x16e   : > { %v1514_v63 = vadd.f32 %v1513_v60, %v1507_v59  ;;  %v1523_v0 = vadd.f32 %v1522_v61, %v1521_v58 }
 0x170   : > { %1515 = vst [vmem:[%s2551_s6] sm:$0x1] %v1514_v63  ;;  %v1524_v1 = vadd.f32 %v1523_v0, %v1516_v62 }
 0x172   : > { %1525 = vst [vmem:[%s2551_s6 + $0x1] sm:$0x1] %v1524_v1 }
 0x173 PF: > { %s17_s25 = sadd.s32 1, %s2116_s25   ;;  %s2556_s22 = sld [smem:[#allocation2_spill]] }
 0x174   : > { %p14_p13 = scmp.ge.s32.totalorder %s17_s25, 18   ;;  %s2557_s28 = sld [smem:[#allocation3_spill]] }
 0x175   : > { %s2558_s24 = sld [smem:[#allocation4_spill]]  ;;  %s2559_s21 = smov %s2108_s23 }
 0x176   :  { %16 = sbr.rel (!%p14_p13) target bundleno = 3 (0x3), region = 88 }
 0x17a   : > { %s2560_s23 = smov %s2557_s28 }

// kernel: encoder_forward.11
= control target key start
LH: loop header
LB: loop body
LE: loop exit
PB: predicated region body
PF: predicated region fallthrough
CT: control target
= control target key end

     0   :  { %s424_s12 = smov 0   ;;  %s426_s13 = smov 0   ;;  %s478_s0 = inlined_call_operand.vmem [shape: bf16[2,4,4,128], index: 0, kind: input, shape index: {}]   ;;  %s479_s1 = inlined_call_operand.vmem [shape: f32[1,128], index: 1, kind: input, shape index: {}]   ;;  %s480_s2 = inlined_call_operand.vmem [shape: f32[1,128], index: 2, kind: input, shape index: {}]   ;;  %s481_s3 = inlined_call_operand.vmem [shape: bf16[2,4,4,128], index: 3, kind: output, shape index: {}]  }
   0x1   :  { %s428_s14 = smov 0   ;;  %s430_s15 = smov 0  }
   0x2   :  { %s432_s16 = smov 0  }
   0x3 LB: > { %s22_s17 = sadd.s32 1, %s394_s14  ;;  %s25_s18 = sadd.s32 1, %s398_s15  ;;  %s402_s16 = sphi %s432_s16, %s13_s16   ;;  %s398_s15 = sphi %s430_s15, %s485_s15   ;;  %s394_s14 = sphi %s428_s14, %s484_s14   ;;  %s390_s13 = sphi %s426_s13, %s483_s13   ;;  %s386_s12 = sphi %s424_s12, %s482_s12  }
   0x4   : > { %p23_p0 = scmp.ge.s32.totalorder %s22_s17, 4  ;;  %p315_p1 = scmp.ge.s32.totalorder %s402_s16, 1 }
   0x5   : > { %p156_p2 = scmp.lt.s32.totalorder %s402_s16, 9 }
   0x6   : > { %s487_s17 = smov (%p23_p0, %s22_s17), 0  ;;  %s489_s18 = smov (!%p23_p0, %s25_s18), %s398_s15 }
   0x7   : > { %p157_p3 = pnand %p315_p1, %p156_p2  ;;  %p27_p4 = scmp.ge.s32.totalorder %s489_s18, 2 }
   0x8   : > { %p186_p5 = scmp.lt.s32.totalorder (!%p157_p3), %s390_s13, 1  ;;  %p188_p6 = scmp.lt.s32.totalorder (!%p157_p3), %s386_s12, 3  ;;  %v320_v1 = vld [vmem:[%s479_s1] ss:$0 sm:$0xff] (!%p157_p3) }
   0x9   : > { %s491_s18 = smov (%p27_p4, %s489_s18), 0  ;;  %160 = sbr.rel (%p157_p3) target bundleno = 34 (0x22), region = 32 }
   0xa   : > { %v321_v3 = vld [vmem:[%s480_s2] ss:$0 sm:$0xff] (!%p157_p3) }
  0x10   : > { %s493_s13 = smov (!%p186_p5, %s390_s13), 1  ;;  %s495_s12 = smov (!%p188_p6, %s386_s12), 3 }
  0x11   : > { %s316_s19 = sshll.u32 %s493_s13, 2 }
  0x12   : > { %s191_s20 = sadd.s32 %s316_s19, %s495_s12 }
  0x13   : > { %s317_s21 = sshll.u32 %s191_s20, 1 }
  0x14   : > { %s193_s24 = scalar_lea.vmem %s478_s0, %s317_s21  ;;  %s201_s4 = scalar_lea.vmem %s481_s3, %s317_s21 }
  0x15   : > { %v202_v0 = vld [vmem:[%s193_s24] sm:$0x3] }
  0x16   : > { %v203_v2 = vunpack.c.l.bf16 %v202_v0 }
  0x18   : > { %v211_v4 = vmul.f32 %v320_v1, %v203_v2 }
  0x1a   : > { %v219_v5 = vadd.f32 %v321_v3, %v211_v4 }
  0x1c   : > { %vm220_vm0 = vcmp.ge.f32.partialorder %v219_v5, 0.0  ;;  %v221_v6 = vmul.f32 0.01, %v219_v5 }
  0x1e   : > { %v222_v7 = vsel %vm220_vm0, %v219_v5, %v221_v6 }
  0x1f   : > { %v223_v8 = vpack.c.bf16 %v222_v7, %v222_v7 }
  0x21   : > { %224 = vst [vmem:[%s201_s4] sm:$0x3] %v223_v8 }
  0x22 PF: > { %s13_s16 = sadd.s32 1, %s402_s16   ;;  %s482_s12 = smov %s394_s14 }
  0x23   : > { %p10_p7 = scmp.ge.s32.totalorder %s13_s16, 10   ;;  %s483_s13 = smov %s398_s15 }
  0x24   : > { %s484_s14 = smov %s487_s17  ;;  %s485_s15 = smov %s491_s18 }
  0x25   :  { %12 = sbr.rel (!%p10_p7) target bundleno = 3 (0x3), region = 62 }

// kernel: encoder_forward.10
= control target key start
LH: loop header
LB: loop body
LE: loop exit
PB: predicated region body
PF: predicated region fallthrough
CT: control target
= control target key end

     0   :  { %s2127_s21 = smov 0   ;;  %s2129_s22 = smov 0   ;;  %s2515_s0 = inlined_call_operand.vmem [shape: bf16[2,9,5,256], index: 0, kind: input, shape index: {}, may-alias: {0,1,2}]   ;;  %s2516_s1 = inlined_call_operand.vmem [shape: bf16[2,9,5,256], index: 1, kind: input, shape index: {}, may-alias: {0,1,2}]   ;;  %s2517_s2 = inlined_call_operand.vmem [shape: bf16[2,9,5,256], index: 2, kind: input, shape index: {}, may-alias: {0,1,2}]   ;;  %s2518_s3 = inlined_call_operand.vmem [shape: bf16[1536,128], index: 3, kind: input, shape index: {}]   ;;  %s2519_s4 = inlined_call_operand.vmem [shape: f32[1,128], index: 4, kind: input, shape index: {}]   ;;  %s2520_s5 = inlined_call_operand.vmem [shape: bf16[2,4,4,128], index: 5, kind: output, shape index: {0}]   ;;  %s2521_s6 = inlined_call_operand.vmem [shape: f32[8,128], index: 6, kind: output, shape index: {1}]  }
   0x1   :  { %s2131_s23 = smov 0   ;;  %s2133_s24 = smov 0  }
   0x2   :  { %s2135_s25 = smov 0  }
   0x3 LB: > { %2523 = sst [smem:[#allocation2_spill]] %s2085_s24  ;;  %s26_s26 = sadd.s32 1, %s2081_s23  ;;  %s2089_s25 = sphi %s2135_s25, %s17_s25   ;;  %s2085_s24 = sphi %s2133_s24, %s2528_s24   ;;  %s2081_s23 = sphi %s2131_s23, %s2530_s23   ;;  %s2077_s22 = sphi %s2129_s22, %s2526_s22   ;;  %s2073_s21 = sphi %s2127_s21, %s2529_s21  }
   0x4   : > { %s29_s27 = sadd.s32 1, %s2085_s24  ;;  %p27_p0 = scmp.ge.s32.totalorder %s26_s26, 4 }
   0x5   : > { %p1658_p1 = scmp.ge.s32.totalorder %s2089_s25, 1  ;;  %p282_p2 = scmp.lt.s32.totalorder %s2089_s25, 9 }
   0x6   : > { %s2532_s26 = smov (%p27_p0, %s26_s26), 0  ;;  %s2534_s27 = smov (!%p27_p0, %s29_s27), %s2085_s24 }
   0x7   : > { %2524 = sst [smem:[#allocation3_spill]] %s2532_s26  ;;  %p283_p3 = pnand %p1658_p1, %p282_p2 }
   0x8   : > { %p31_p4 = scmp.ge.s32.totalorder %s2534_s27, 2  ;;  %s1659_s28 = sshll.u32 (!%p283_p3), %s2073_s21, 1 }
   0x9   : > { %286 = sbr.rel (%p283_p3) target bundleno = 372 (0x174), region = 40  ;;  %p343_p5 = scmp.lt.s32.totalorder (!%p283_p3), %s2077_s22, 1 }
   0xa   : > { %s2536_s27 = smov (%p31_p4, %s2534_s27), 0  ;;  %p345_p6 = scmp.lt.s32.totalorder (!%p283_p3), %s1659_s28, 8 }
   0xb   : > { %2525 = sst [smem:[#allocation4_spill]] %s2536_s27  ;;  %s354_s29 = sadd.s32 (!%p283_p3), 1, %s1659_s28 }
   0xc   : > { %p357_p7 = scmp.lt.s32.totalorder (!%p283_p3), %s354_s29, 8  ;;  %s367_s10 = sadd.s32 (!%p283_p3), 2, %s1659_s28 }
   0xd   : > { %p370_p8 = scmp.lt.s32.totalorder (!%p283_p3), %s367_s10, 8  ;;  %p381_p9 = scmp.lt.s32.totalorder (!%p283_p3), %s2073_s21, 3 }
   0xe   : > { %p388_p10 = scmp.eq.s32.totalorder (!%p283_p3), %s2077_s22, 0  ;;  %p389_p11 = scmp.eq.s32.totalorder (!%p283_p3), %s2073_s21, 0 }
  0x10   : > { %s344_s30 = scalar_select %p343_p5, %s2077_s22, 1 }
  0x11   : > { %s346_s7 = scalar_select %p345_p6, %s1659_s28, 8 }
  0x12   : > { %s1907_s8 = smul.u32 18, %s344_s30  ;;  %s1668_s16 = sshll.u32 %s344_s30, 2 }
  0x13   : > { %s1660_s9 = sshll.u32 %s346_s7, 1  ;;  %s2538_s29 = smov (!%p357_p7, %s354_s29), 8 }
  0x14   : > { %s349_s11 = sadd.s32 %s1907_s8, %s1660_s9  ;;  %s2540_s10 = smov (!%p370_p8, %s367_s10), 8 }
  0x15   : > { %s1661_s12 = sshll.u32 %s349_s11, 2  ;;  %s1663_s17 = sshll.u32 %s2538_s29, 1 }
  0x16   : > { %s2168_s15 = scalar_lea.vmem %s2515_s0, %s1661_s12  ;;  %s361_s18 = sadd.s32 %s1907_s8, %s1663_s17 }
  0x17   : > { %s1666_s19 = sshll.u32 %s2540_s10, 1  ;;  %s1664_s20 = sshll.u32 %s361_s18, 2 }
  0x18   : > { %s374_s28 = sadd.s32 %s1907_s8, %s1666_s19  ;;  %s2174_s11 = scalar_lea.vmem %s2516_s1, %s1664_s20 }
  0x19   : > { %s1667_s27 = sshll.u32 %s374_s28, 2  ;;  %s2542_s21 = smov (!%p381_p9, %s2073_s21), 3 }
  0x1a   : > { %s2179_s12 = scalar_lea.vmem %s2517_s2, %s1667_s27  ;;  %p390_p12 = pnand %p389_p11, %p388_p10 }
  0x1b   : > { %s384_s22 = sadd.s32 %s1668_s16, %s2542_s21  ;;  %v2091_v0 = vmov (!%p390_p12), 0.0  }
  0x1c   : > { %s1669_s29 = sshll.u32 %s384_s22, 1  ;;  %393 = sbr.rel (%p390_p12) target bundleno = 35 (0x23), region = 44  ;;  %394 = vst [vmem:[%s2521_s6] sm:$0xff] (!%p390_p12), %v2091_v0 }
  0x1d   : > { %s2188_s8 = scalar_lea.vmem %s2520_s5, %s1669_s29 }
  0x23 PF: > { %v1949_v1 = vld [vmem:[%s2518_s3 + $0xc0] sm:$0xff]   ;;  %v1953_v5 = vld [vmem:[%s2518_s3 + $0xc8] sm:$0xff]   ;;  %v1957_v9 = vld [vmem:[%s2518_s3 + $0xd0] sm:$0xff]   ;;  %vm1490_vm0 = vcmask 1043456  }
  0x24   : > { %v1950_v2 = vld [vmem:[%s2518_s3 + $0x40] sm:$0xff]   ;;  %1775 = vmatprep.subr.bf16.mxu0 %v1949_v1  ;;  %v1954_v6 = vld [vmem:[%s2518_s3 + $0x48] sm:$0xff]   ;;  %v1958_v10 = vld [vmem:[%s2518_s3 + $0x50] sm:$0xff]  }
  0x25   : > { %v1951_v3 = vld [vmem:[%s2518_s3 + $0x80] sm:$0xff]   ;;  %1797 = vmatprep.subr.bf16.mxu1 %v1950_v2  ;;  %v1955_v7 = vld [vmem:[%s2518_s3 + $0x88] sm:$0xff]   ;;  %v1959_v11 = vld [vmem:[%s2518_s3 + $0x90] sm:$0xff]  }
  0x26   : > { %v1952_v4 = vld [vmem:[%s2518_s3] sm:$0xff]   ;;  %1776 = vmatpush3.bf16.msra.mxu0 %v1951_v3  ;;  %v1956_v8 = vld [vmem:[%s2518_s3 + $0x8] sm:$0xff]   ;;  %v1960_v12 = vld [vmem:[%s2518_s3 + $0x10] sm:$0xff]  }
  0x27   : > { %1798 = vmatpush3.bf16.msra.mxu1 %v1952_v4  ;;  %1777 = vmatprep.subr.bf16.mxu0 %v1953_v5  ;;  %v1961_v13 = vld [vmem:[%s2518_s3 + $0xd8] sm:$0xff]   ;;  %v1965_v17 = vld [vmem:[%s2518_s3 + $0xe0] sm:$0xff]   ;;  %v1969_v21 = vld [vmem:[%s2518_s3 + $0xe8] sm:$0xff]  }
  0x28   : > { %1799 = vmatprep.subr.bf16.mxu1 %v1954_v6  ;;  %v1962_v14 = vld [vmem:[%s2518_s3 + $0x58] sm:$0xff]   ;;  %v1966_v18 = vld [vmem:[%s2518_s3 + $0x60] sm:$0xff]   ;;  %v1970_v22 = vld [vmem:[%s2518_s3 + $0x68] sm:$0xff]  }
  0x29   : > { %v1963_v15 = vld [vmem:[%s2518_s3 + $0x98] sm:$0xff]   ;;  %v1967_v19 = vld [vmem:[%s2518_s3 + $0xa0] sm:$0xff]   ;;  %v1971_v23 = vld [vmem:[%s2518_s3 + $0xa8] sm:$0xff]  }
  0x2a   : > { %1778 = vmatpush3.bf16.msra.mxu0 %v1955_v7  ;;  %v1964_v16 = vld [vmem:[%s2518_s3 + $0x18] sm:$0xff]   ;;  %v1968_v20 = vld [vmem:[%s2518_s3 + $0x20] sm:$0xff]   ;;  %v1972_v24 = vld [vmem:[%s2518_s3 + $0x28] sm:$0xff]  }
  0x2b   : > { %1800 = vmatpush3.bf16.msra.mxu1 %v1956_v8  ;;  %1779 = vmatprep.subr.bf16.mxu0 %v1957_v9  ;;  %v1973_v25 = vld [vmem:[%s2518_s3 + $0xf0] sm:$0xff]   ;;  %v1977_v29 = vld [vmem:[%s2518_s3 + $0xf8] sm:$0xff]   ;;  %v395_v33 = vld [vmem:[%s2168_s15] sm:$0x77] }
  0x2c   : > { %1801 = vmatprep.subr.bf16.mxu1 %v1958_v10  ;;  %v1974_v26 = vld [vmem:[%s2518_s3 + $0x70] sm:$0xff]   ;;  %v1978_v30 = vld [vmem:[%s2518_s3 + $0x78] sm:$0xff]   ;;  %v1670_v34 = vcombine.low %v395_v33, %v395_v33  ;;  %v1671_v35 = vcombine.high %v395_v33, %v395_v33  ;;  %v1983_v36 = vld [vmem:[%s2518_s3 + $0x140] sm:$0xff]  }
  0x2d   : > { %v1975_v27 = vld [vmem:[%s2518_s3 + $0xb0] sm:$0xff]   ;;  %v1979_v31 = vld [vmem:[%s2518_s3 + $0xb8] sm:$0xff]   ;;  %v1984_v37 = vld [vmem:[%s2518_s3 + $0x1c0] sm:$0xff]  }
  0x2e   : > { %1780 = vmatpush3.bf16.msra.mxu0 %v1959_v11  ;;  %v1976_v28 = vld [vmem:[%s2518_s3 + $0x30] sm:$0xff]   ;;  %v1980_v32 = vld [vmem:[%s2518_s3 + $0x38] sm:$0xff]   ;;  %v473_v38 = vshrl.u32 %v1671_v35, 16  ;;  %v475_v39 = vshll.u32 %v1671_v35, 16  ;;  %747 = vmatprep.mubr.bf16.mxu1 %v1671_v35  ;;  %v466_v40 = vshrl.u32 %v1670_v34, 16  ;;  %v468_v41 = vshll.u32 %v1670_v34, 16 }
  0x2f   : > { %1802 = vmatpush3.bf16.msra.mxu1 %v1960_v12  ;;  %1781 = vmatprep.subr.bf16.mxu0 %v1961_v13  ;;  %v1986_v42 = vld [vmem:[%s2518_s3 + $0x180] sm:$0xff]   ;;  %v1988_v46 = vld [vmem:[%s2518_s3 + $0x1c8] sm:$0xff]   ;;  %v1992_v52 = vld [vmem:[%s2518_s3 + $0x1d0] sm:$0xff]  }
  0x30   : > { %1803 = vmatprep.subr.bf16.mxu1 %v1962_v14  ;;  %v477_v43 = vrot.slane %v475_v39, 1  ;;  %v470_v44 = vrot.slane %v468_v41, 1  ;;  %v1985_v45 = vld [vmem:[%s2518_s3 + $0x100] sm:$0xff]   ;;  %v1987_v49 = vld [vmem:[%s2518_s3 + $0x148] sm:$0xff]   ;;  %v1991_v53 = vld [vmem:[%s2518_s3 + $0x150] sm:$0xff]  }
  0x31   : > { %v1990_v50 = vld [vmem:[%s2518_s3 + $0x188] sm:$0xff]   ;;  %v1994_v54 = vld [vmem:[%s2518_s3 + $0x190] sm:$0xff]   ;;  %v1996_v56 = vld [vmem:[%s2518_s3 + $0x1d8] sm:$0xff]  }
  0x32   : > { %1782 = vmatpush3.bf16.msra.mxu0 %v1963_v15  ;;  %v478_v47 = vor.u32 %v477_v43, %v473_v38  ;;  %v471_v48 = vor.u32 %v470_v44, %v466_v40  ;;  %v1989_v51 = vld [vmem:[%s2518_s3 + $0x108] sm:$0xff]   ;;  %v1993_v55 = vld [vmem:[%s2518_s3 + $0x110] sm:$0xff]   ;;  %v1995_v57 = vld [vmem:[%s2518_s3 + $0x158] sm:$0xff]  }
  0x33   : > { %1804 = vmatpush3.bf16.msra.mxu1 %v1964_v16  ;;  %1783 = vmatprep.subr.bf16.mxu0 %v1965_v17  ;;  %v1998_v58 = vld [vmem:[%s2518_s3 + $0x198] sm:$0xff]   ;;  %v2000_v60 = vld [vmem:[%s2518_s3 + $0x1e0] sm:$0xff]   ;;  %v2004_v0 = vld [vmem:[%s2518_s3 + $0x1e8] sm:$0xff]  }
  0x34   : > { %1805 = vmatprep.subr.bf16.mxu1 %v1966_v18  ;;  %609 = vmatprep.mubr.bf16.mxu0 %v478_v47  ;;  %v1997_v59 = vld [vmem:[%s2518_s3 + $0x118] sm:$0xff]   ;;  %v1999_v61 = vld [vmem:[%s2518_s3 + $0x160] sm:$0xff]   ;;  %v2003_v1 = vld [vmem:[%s2518_s3 + $0x168] sm:$0xff]  }
  0x35   : > { %v2002_v62 = vld [vmem:[%s2518_s3 + $0x1a0] sm:$0xff]   ;;  %v2006_v2 = vld [vmem:[%s2518_s3 + $0x1a8] sm:$0xff]   ;;  %v2008_v4 = vld [vmem:[%s2518_s3 + $0x1f0] sm:$0xff]  }
  0x36   : > { %1784 = vmatpush3.bf16.msra.mxu0 %v1967_v19  ;;  %v2001_v63 = vld [vmem:[%s2518_s3 + $0x120] sm:$0xff]   ;;  %v2005_v3 = vld [vmem:[%s2518_s3 + $0x128] sm:$0xff]   ;;  %v2007_v5 = vld [vmem:[%s2518_s3 + $0x170] sm:$0xff]  }
  0x37   : > { %1806 = vmatpush3.bf16.msra.mxu1 %v1968_v20  ;;  %1785 = vmatprep.subr.bf16.mxu0 %v1969_v21  ;;  %v2010_v6 = vld [vmem:[%s2518_s3 + $0x1b0] sm:$0xff]   ;;  %v2012_v8 = vld [vmem:[%s2518_s3 + $0x1f8] sm:$0xff]   ;;  %v755_v11 = vld [vmem:[%s2174_s11] sm:$0x77] }
  0x38   : > { %1807 = vmatprep.subr.bf16.mxu1 %v1970_v22  ;;  %v2009_v7 = vld [vmem:[%s2518_s3 + $0x130] sm:$0xff]   ;;  %v2011_v9 = vld [vmem:[%s2518_s3 + $0x178] sm:$0xff]   ;;  %v1704_v13 = vcombine.low %v755_v11, %v755_v11  ;;  %v1705_v14 = vcombine.high %v755_v11, %v755_v11  ;;  %v2018_v15 = vld [vmem:[%s2518_s3 + $0x2c0] sm:$0xff]  }
  0x39   : > { %v2014_v10 = vld [vmem:[%s2518_s3 + $0x1b8] sm:$0xff]   ;;  %v2017_v20 = vld [vmem:[%s2518_s3 + $0x240] sm:$0xff]   ;;  %v2027_v33 = vld [vmem:[%s2518_s3 + $0x210] sm:$0xff]  }
  0x3a   : > { %1786 = vmatpush3.bf16.msra.mxu0 %v1971_v23  ;;  %v2013_v12 = vld [vmem:[%s2518_s3 + $0x138] sm:$0xff]   ;;  %v972_v16 = vshrl.u32 %v1705_v14, 16  ;;  %v974_v17 = vshll.u32 %v1705_v14, 16  ;;  %v965_v18 = vshrl.u32 %v1704_v13, 16  ;;  %v967_v19 = vshll.u32 %v1704_v13, 16  ;;  %v2019_v23 = vld [vmem:[%s2518_s3 + $0x200] sm:$0xff]  }
  0x3b   : > { %1808 = vmatpush3.bf16.msra.mxu1 %v1972_v24  ;;  %1787 = vmatprep.subr.bf16.mxu0 %v1973_v25  ;;  %v2020_v24 = vld [vmem:[%s2518_s3 + $0x280] sm:$0xff]   ;;  %v2029_v35 = vld [vmem:[%s2518_s3 + $0x258] sm:$0xff]   ;;  %v2037_v43 = vld [vmem:[%s2518_s3 + $0x268] sm:$0xff]  }
  0x3c   : > { %1809 = vmatprep.subr.bf16.mxu1 %v1974_v26  ;;  %v976_v21 = vrot.slane %v974_v17, 1  ;;  %v969_v22 = vrot.slane %v967_v19, 1  ;;  %v2032_v38 = vld [vmem:[%s2518_s3 + $0x298] sm:$0xff]   ;;  %v2033_v39 = vld [vmem:[%s2518_s3 + $0x260] sm:$0xff]   ;;  %v2038_v44 = vld [vmem:[%s2518_s3 + $0x2e8] sm:$0xff]  }
  0x3d   : > { %v2034_v40 = vld [vmem:[%s2518_s3 + $0x2e0] sm:$0xff]   ;;  %v2041_v47 = vld [vmem:[%s2518_s3 + $0x270] sm:$0xff]  }
  0x3e   : > { %1788 = vmatpush3.bf16.msra.mxu0 %v1975_v27  ;;  %v977_v25 = vor.u32 %v976_v21, %v972_v16  ;;  %v970_v26 = vor.u32 %v969_v22, %v965_v18  ;;  %v2021_v27 = vld [vmem:[%s2518_s3 + $0x248] sm:$0xff]   ;;  %v2035_v41 = vld [vmem:[%s2518_s3 + $0x220] sm:$0xff]  }
  0x3f   : > { %1810 = vmatpush3.bf16.msra.mxu1 %v1976_v28  ;;  %1789 = vmatprep.subr.bf16.mxu0 %v1977_v29  ;;  %v2022_v28 = vld [vmem:[%s2518_s3 + $0x2c8] sm:$0xff]  }
  0x40   : > { %1811 = vmatprep.subr.bf16.mxu1 %v1978_v30  ;;  %v2023_v29 = vld [vmem:[%s2518_s3 + $0x208] sm:$0xff]  }
  0x41   : > { %v2024_v30 = vld [vmem:[%s2518_s3 + $0x288] sm:$0xff]  }
  0x42   : > { %1790 = vmatpush3.bf16.msra.mxu0 %v1979_v31  ;;  %v2025_v31 = vld [vmem:[%s2518_s3 + $0x250] sm:$0xff]  }
  0x43   : > { %1812 = vmatpush3.bf16.msra.mxu1 %v1980_v32  ;;  %1819 = vmatprep.subr.bf16.mxu0 %v1983_v36  ;;  %v2026_v32 = vld [vmem:[%s2518_s3 + $0x2d0] sm:$0xff]   ;;  %v2030_v36 = vld [vmem:[%s2518_s3 + $0x2d8] sm:$0xff]  }
  0x44   : > { %1841 = vmatprep.subr.bf16.mxu1 %v1984_v37  ;;  %v2031_v37 = vld [vmem:[%s2518_s3 + $0x218] sm:$0xff]  }
  0x45   : > { %610 = vmatmul.mubr.bf16.vlgmr.msra.gmra.mrb[0].mxu0 %v471_v48  ;;  %v2042_v48 = vld [vmem:[%s2518_s3 + $0x2f0] sm:$0xff]  }
  0x46   : > { %748 = vmatmul.mubr.bf16.vlgmr.msra.gmra.mrb[0].mxu1 %v1670_v34  ;;  %1820 = vmatpush3.bf16.msra.mxu0 %v1985_v45  ;;  %v2028_v34 = vld [vmem:[%s2518_s3 + $0x290] sm:$0xff]   ;;  %v2039_v45 = vld [vmem:[%s2518_s3 + $0x228] sm:$0xff]  }
  0x47   : > { %1842 = vmatpush3.bf16.msra.mxu1 %v1986_v42  ;;  %1821 = vmatprep.subr.bf16.mxu0 %v1987_v49  ;;  %v2036_v42 = vld [vmem:[%s2518_s3 + $0x2a0] sm:$0xff]   ;;  %v2043_v49 = vld [vmem:[%s2518_s3 + $0x230] sm:$0xff]  }
  0x48   : > { %1843 = vmatprep.subr.bf16.mxu1 %v1988_v46  ;;  %923 = vmatprep.mubr.bf16.mxu0 %v1705_v14  ;;  %v2040_v46 = vld [vmem:[%s2518_s3 + $0x2a8] sm:$0xff]  }
  0x49   : > { %1108 = vmatprep.mubr.bf16.mxu1 %v977_v25 }
  0x4a   : > { %1822 = vmatpush3.bf16.msra.mxu0 %v1989_v51  ;;  %v2045_v51 = vld [vmem:[%s2518_s3 + $0x278] sm:$0xff]  }
  0x4b   : > { %1844 = vmatpush3.bf16.msra.mxu1 %v1990_v50  ;;  %1823 = vmatprep.subr.bf16.mxu0 %v1991_v53  ;;  %v2044_v50 = vld [vmem:[%s2518_s3 + $0x2b0] sm:$0xff]   ;;  %v1117_v53 = vld [vmem:[%s2179_s12] sm:$0x77] }
  0x4c   : > { %1845 = vmatprep.subr.bf16.mxu1 %v1992_v52  ;;  %v2046_v52 = vld [vmem:[%s2518_s3 + $0x2f8] sm:$0xff]  }
  0x4e   : > { %1824 = vmatpush3.bf16.msra.mxu0 %v1993_v55  ;;  %v1739_v55 = vcombine.high %v1117_v53, %v1117_v53 }
  0x4f   : > { %1846 = vmatpush3.bf16.msra.mxu1 %v1994_v54  ;;  %1825 = vmatprep.subr.bf16.mxu0 %v1995_v57  ;;  %v1738_v54 = vcombine.low %v1117_v53, %v1117_v53  ;;  %v2048_v57 = vld [vmem:[%s2518_s3 + $0x2b8] sm:$0xff]  }
  0x50   : > { %1847 = vmatprep.subr.bf16.mxu1 %v1996_v56  ;;  %v2047_v56 = vld [vmem:[%s2518_s3 + $0x238] sm:$0xff]  }
  0x52   : > { %1826 = vmatpush3.bf16.msra.mxu0 %v1997_v59  ;;  %v1336_v59 = vshll.u32 %v1739_v55, 16 }
  0x53   : > { %1848 = vmatpush3.bf16.msra.mxu1 %v1998_v58  ;;  %1827 = vmatprep.subr.bf16.mxu0 %v1999_v61  ;;  %v1334_v58 = vshrl.u32 %v1739_v55, 16  ;;  %v1329_v61 = vshll.u32 %v1738_v54, 16 }
  0x54   : > { %1849 = vmatprep.subr.bf16.mxu1 %v2000_v60  ;;  %v1327_v60 = vshrl.u32 %v1738_v54, 16 }
  0x56   : > { %1828 = vmatpush3.bf16.msra.mxu0 %v2001_v63  ;;  %v1331_v63 = vrot.slane %v1329_v61, 1 }
  0x57   : > { %1850 = vmatpush3.bf16.msra.mxu1 %v2002_v62  ;;  %1829 = vmatprep.subr.bf16.mxu0 %v2003_v1  ;;  %v1338_v62 = vrot.slane %v1336_v59, 1 }
  0x58   : > { %1851 = vmatprep.subr.bf16.mxu1 %v2004_v0  ;;  %v1332_v1 = vor.u32 %v1331_v63, %v1327_v60 }
  0x59   : > { %v1339_v0 = vor.u32 %v1338_v62, %v1334_v58 }
  0x5a   : > { %1830 = vmatpush3.bf16.msra.mxu0 %v2005_v3 }
  0x5b   : > { %1852 = vmatpush3.bf16.msra.mxu1 %v2006_v2  ;;  %1831 = vmatprep.subr.bf16.mxu0 %v2007_v5 }
  0x5c   : > { %1853 = vmatprep.subr.bf16.mxu1 %v2008_v4 }
  0x5e   : > { %1832 = vmatpush3.bf16.msra.mxu0 %v2009_v7 }
  0x5f   : > { %1854 = vmatpush3.bf16.msra.mxu1 %v2010_v6  ;;  %1833 = vmatprep.subr.bf16.mxu0 %v2011_v9 }
  0x60   : > { %1855 = vmatprep.subr.bf16.mxu1 %v2012_v8 }
  0x62   : > { %1834 = vmatpush3.bf16.msra.mxu0 %v2013_v12 }
  0x63   : > { %1856 = vmatpush3.bf16.msra.mxu1 %v2014_v10  ;;  %1863 = vmatprep.subr.bf16.mxu0 %v2017_v20 }
  0x64   : > { %1885 = vmatprep.subr.bf16.mxu1 %v2018_v15 }
  0x65   : > { %924 = vmatmul.mubr.bf16.vlgmr.msra.gmra.mrb[4].mxu0 %v1704_v13 }
  0x66   : > { %1109 = vmatmul.mubr.bf16.vlgmr.msra.gmra.mrb[4].mxu1 %v970_v26  ;;  %1864 = vmatpush3.bf16.msra.mxu0 %v2019_v23 }
  0x67   : > { %1886 = vmatpush3.bf16.msra.mxu1 %v2020_v24  ;;  %1865 = vmatprep.subr.bf16.mxu0 %v2021_v27 }
  0x68   : > { %1887 = vmatprep.subr.bf16.mxu1 %v2022_v28  ;;  %1285 = vmatprep.mubr.bf16.mxu0 %v1739_v55  ;;  %v1500_v55 = vld [vmem:[%s2521_s6 + $0x1] sm:$0x1] }
  0x69   : > { %1470 = vmatprep.mubr.bf16.mxu1 %v1339_v0 }
  0x6a   : > { %1866 = vmatpush3.bf16.msra.mxu0 %v2023_v29 }
  0x6b   : > { %1888 = vmatpush3.bf16.msra.mxu1 %v2024_v30  ;;  %1867 = vmatprep.subr.bf16.mxu0 %v2025_v31 }
  0x6c   : > { %1889 = vmatprep.subr.bf16.mxu1 %v2026_v32 }
  0x6e   : > { %1868 = vmatpush3.bf16.msra.mxu0 %v2027_v33 }
  0x6f   : > { %1890 = vmatpush3.bf16.msra.mxu1 %v2028_v34  ;;  %1869 = vmatprep.subr.bf16.mxu0 %v2029_v35 }
  0x70   : > { %1891 = vmatprep.subr.bf16.mxu1 %v2030_v36  ;;  %v1772_v36 = vld [vmem:[%s2519_s4] ss:$0 sm:$0xff] }
  0x72   : > { %1870 = vmatpush3.bf16.msra.mxu0 %v2031_v37 }
  0x73   : > { %1892 = vmatpush3.bf16.msra.mxu1 %v2032_v38  ;;  %1871 = vmatprep.subr.bf16.mxu0 %v2033_v39 }
  0x74   : > { %1893 = vmatprep.subr.bf16.mxu1 %v2034_v40 }
  0x76   : > { %1872 = vmatpush3.bf16.msra.mxu0 %v2035_v41 }
  0x77   : > { %1894 = vmatpush3.bf16.msra.mxu1 %v2036_v42  ;;  %1873 = vmatprep.subr.bf16.mxu0 %v2037_v43 }
  0x78   : > { %1895 = vmatprep.subr.bf16.mxu1 %v2038_v44 }
  0x7a   : > { %1874 = vmatpush3.bf16.msra.mxu0 %v2039_v45 }
  0x7b   : > { %1896 = vmatpush3.bf16.msra.mxu1 %v2040_v46  ;;  %1875 = vmatprep.subr.bf16.mxu0 %v2041_v47 }
  0x7c   : > { %1897 = vmatprep.subr.bf16.mxu1 %v2042_v48 }
  0x7e   : > { %1876 = vmatpush3.bf16.msra.mxu0 %v2043_v49 }
  0x7f   : > { %1898 = vmatpush3.bf16.msra.mxu1 %v2044_v50  ;;  %1877 = vmatprep.subr.bf16.mxu0 %v2045_v51 }
  0x80   : > { %1899 = vmatprep.subr.bf16.mxu1 %v2046_v52  ;;  %v1489_v52 = vld [vmem:[%s2521_s6] sm:$0x1] }
  0x82   : > { %1878 = vmatpush3.bf16.msra.mxu0 %v2047_v56 }
  0x83   : > { %1900 = vmatpush3.bf16.msra.mxu1 %v2048_v57 }
  0x85   : > { %1286 = vmatmul.mubr.bf16.vlgmr.msra.gmra.mrb[8].mxu0 %v1738_v54 }
  0x86   : > { %1471 = vmatmul.mubr.bf16.vlgmr.msra.gmra.mrb[8].mxu1 %v1332_v1 }
 0x118   : > { %v1791_v7 = vpop.f32.mrb[0].mxu0 }
 0x119   : > { %v1813_v2 = vpop.f32.mrb[0].mxu1  ;;  %v1792_v8 = vpop.f32.mrb[1].mxu0 }
 0x11a   : > { %v1814_v3 = vpop.f32.mrb[1].mxu1  ;;  %v1793_v9 = vadd.f32 %v1792_v8, %v1791_v7  ;;  %v1794_v10 = vpop.f32.mrb[2].mxu0 }
 0x11b   : > { %v1815_v4 = vadd.f32 %v1814_v3, %v1813_v2  ;;  %v1816_v5 = vpop.f32.mrb[2].mxu1  ;;  %v1795_v11 = vpop.f32.mrb[3].mxu0 }
 0x11c   : > { %v1817_v6 = vpop.f32.mrb[3].mxu1 }
 0x11d   : > { %v750_v12 = vadd.f32 %v1815_v4, %v1793_v9 }
 0x138   : > { %v1835_v13 = vpop.f32.mrb[4].mxu0 }
 0x139   : > { %v1857_v14 = vpop.f32.mrb[4].mxu1  ;;  %v1836_v15 = vpop.f32.mrb[5].mxu0 }
 0x13a   : > { %v1858_v16 = vpop.f32.mrb[5].mxu1  ;;  %v1837_v17 = vadd.f32 %v1836_v15, %v1835_v13  ;;  %v1838_v19 = vpop.f32.mrb[6].mxu0 }
 0x13b   : > { %v1859_v18 = vadd.f32 %v1858_v16, %v1857_v14  ;;  %v1860_v20 = vpop.f32.mrb[6].mxu1  ;;  %v1839_v21 = vpop.f32.mrb[7].mxu0 }
 0x13c   : > { %v1861_v22 = vpop.f32.mrb[7].mxu1  ;;  %v931_v23 = vadd.f32 %v1837_v17, %v750_v12 }
 0x13e   : > { %v1116_v24 = vadd.f32 %v1859_v18, %v931_v23 }
 0x158   : > { %v1879_v25 = vpop.f32.mrb[8].mxu0 }
 0x159   : > { %v1901_v26 = vpop.f32.mrb[8].mxu1  ;;  %v1880_v27 = vpop.f32.mrb[9].mxu0 }
 0x15a   : > { %v1881_v28 = vadd.f32 %v1880_v27, %v1879_v25  ;;  %v1902_v29 = vpop.f32.mrb[9].mxu1  ;;  %v1882_v30 = vpop.f32.mrb[10].mxu0 }
 0x15b   : > { %v1903_v31 = vadd.f32 %v1902_v29, %v1901_v26  ;;  %v1904_v32 = vpop.f32.mrb[10].mxu1  ;;  %v1883_v33 = vpop.f32.mrb[11].mxu0 }
 0x15c   : > { %v1293_v34 = vadd.f32 %v1881_v28, %v1116_v24  ;;  %v1905_v35 = vpop.f32.mrb[11].mxu1 }
 0x15e   : > { %v1478_v37 = vadd.f32 %v1903_v31, %v1293_v34 }
 0x160   : > { %v1486_v38 = vadd.f32 %v1772_v36, %v1478_v37 }
 0x162   : > { %v1487_v39 = vpack.c.bf16 %v1486_v38, %v1486_v38  ;;  %v1491_v40 = vsel %vm1490_vm0, %v1486_v38, 0.0  ;;  %v1501_v41 = vmul.f32 %v1486_v38, %v1486_v38 }
 0x163   : > { %v1492_v42 = vrot.slane %v1491_v40, 4 }
 0x164   : > { %1488 = vst [vmem:[%s2188_s8] sm:$0x3] %v1487_v39  ;;  %v1502_v43 = vsel %vm1490_vm0, %v1501_v41, 0.0 }
 0x165   : > { %v1493_v44 = vadd.f32 %v1492_v42, %v1491_v40  ;;  %v1503_v45 = vrot.slane %v1502_v43, 4 }
 0x167   : > { %v1494_v46 = vrot.slane %v1493_v44, 2  ;;  %v1504_v47 = vadd.f32 %v1503_v45, %v1502_v43 }
 0x169   : > { %v1495_v48 = vadd.f32 %v1494_v46, %v1493_v44  ;;  %v1505_v49 = vrot.slane %v1504_v47, 2 }
 0x16b   : > { %v1496_v50 = vrot.slane %v1495_v48, 1  ;;  %v1506_v51 = vadd.f32 %v1505_v49, %v1504_v47 }
 0x16d   : > { %v1497_v53 = vadd.f32 %v1496_v50, %v1495_v48  ;;  %v1507_v54 = vrot.slane %v1506_v51, 1 }
 0x16f   : > { %v1498_v56 = vadd.f32 %v1497_v53, %v1489_v52  ;;  %v1508_v57 = vadd.f32 %v1507_v54, %v1506_v51 }
 0x171   : > { %1499 = vst [vmem:[%s2521_s6] sm:$0x1] %v1498_v56  ;;  %v1509_v58 = vadd.f32 %v1508_v57, %v1500_v55 }
 0x173   : > { %1510 = vst [vmem:[%s2521_s6 + $0x1] sm:$0x1] %v1509_v58 }
 0x174 PF: > { %s17_s25 = sadd.s32 1, %s2089_s25   ;;  %s2526_s22 = sld [smem:[#allocation2_spill]] }
 0x175   : > { %p14_p13 = scmp.ge.s32.totalorder %s17_s25, 10   ;;  %s2527_s28 = sld [smem:[#allocation3_spill]] }
 0x176   : > { %s2528_s24 = sld [smem:[#allocation4_spill]]  ;;  %s2529_s21 = smov %s2081_s23 }
 0x177   :  { %16 = sbr.rel (!%p14_p13) target bundleno = 3 (0x3), region = 88 }
 0x17b   : > { %s2530_s23 = smov %s2527_s28 }

// kernel: encoder_forward.13
= control target key start
LH: loop header
LB: loop body
LE: loop exit
PB: predicated region body
PF: predicated region fallthrough
CT: control target
= control target key end

     0   :  { %s408_s12 = smov 0   ;;  %s410_s13 = smov 0   ;;  %s462_s0 = inlined_call_operand.vmem [shape: bf16[2,2,2,128], index: 0, kind: input, shape index: {}]   ;;  %s463_s1 = inlined_call_operand.vmem [shape: f32[1,128], index: 1, kind: input, shape index: {}]   ;;  %s464_s2 = inlined_call_operand.vmem [shape: f32[1,128], index: 2, kind: input, shape index: {}]   ;;  %s465_s3 = inlined_call_operand.vmem [shape: bf16[2,2,2,128], index: 3, kind: output, shape index: {}]  }
   0x1   :  { %s412_s14 = smov 0   ;;  %s414_s15 = smov 0  }
   0x2   :  { %s416_s16 = smov 0  }
   0x3 LB: > { %s22_s17 = sadd.s32 1, %s378_s14  ;;  %s25_s18 = sadd.s32 1, %s382_s15  ;;  %s386_s16 = sphi %s416_s16, %s13_s16   ;;  %s382_s15 = sphi %s414_s15, %s469_s15   ;;  %s378_s14 = sphi %s412_s14, %s468_s14   ;;  %s374_s13 = sphi %s410_s13, %s467_s13   ;;  %s370_s12 = sphi %s408_s12, %s466_s12  }
   0x4   : > { %p23_p0 = scmp.ge.s32.totalorder %s22_s17, 2  ;;  %p301_p1 = scmp.ge.s32.totalorder %s386_s16, 1 }
   0x5   : > { %p155_p2 = scmp.lt.s32.totalorder %s386_s16, 5 }
   0x6   : > { %s471_s17 = smov (%p23_p0, %s22_s17), 0  ;;  %s473_s18 = smov (!%p23_p0, %s25_s18), %s382_s15 }
   0x7   : > { %p156_p3 = pnand %p301_p1, %p155_p2  ;;  %p27_p4 = scmp.ge.s32.totalorder %s473_s18, 2 }
   0x8   : > { %p183_p5 = scmp.lt.s32.totalorder (!%p156_p3), %s374_s13, 1  ;;  %p185_p6 = scmp.lt.s32.totalorder (!%p156_p3), %s370_s12, 1  ;;  %v304_v1 = vld [vmem:[%s463_s1] ss:$0 sm:$0xff] (!%p156_p3) }
   0x9   : > { %s475_s18 = smov (%p27_p4, %s473_s18), 0  ;;  %159 = sbr.rel (%p156_p3) target bundleno = 33 (0x21), region = 32 }
   0xa   : > { %v305_v3 = vld [vmem:[%s464_s2] ss:$0 sm:$0xff] (!%p156_p3) }
  0x10   : > { %s477_s13 = smov (!%p183_p5, %s374_s13), 1  ;;  %s479_s12 = smov (!%p185_p6, %s370_s12), 1 }
  0x11   : > { %s302_s19 = sshll.u32 %s477_s13, 1 }
  0x12   : > { %s188_s20 = sadd.s32 %s302_s19, %s479_s12 }
  0x13   : > { %s189_s23 = scalar_lea.vmem %s462_s0, %s188_s20  ;;  %s196_s30 = scalar_lea.vmem %s465_s3, %s188_s20 }
  0x14   : > { %v197_v0 = vld [vmem:[%s189_s23] sm:$0x1] }
  0x15   : > { %v198_v2 = vunpack.c.l.bf16 %v197_v0 }
  0x17   : > { %v206_v4 = vmul.f32 %v304_v1, %v198_v2 }
  0x19   : > { %v214_v5 = vadd.f32 %v305_v3, %v206_v4 }
  0x1b   : > { %vm215_vm0 = vcmp.ge.f32.partialorder %v214_v5, 0.0  ;;  %v216_v6 = vmul.f32 0.01, %v214_v5 }
  0x1d   : > { %v217_v7 = vsel %vm215_vm0, %v214_v5, %v216_v6 }
  0x1e   : > { %v218_v8 = vpack.c.bf16 %v217_v7, %v217_v7 }
  0x20   : > { %219 = vst [vmem:[%s196_s30] sm:$0x1] %v218_v8 }
  0x21 PF: > { %s13_s16 = sadd.s32 1, %s386_s16   ;;  %s466_s12 = smov %s378_s14 }
  0x22   : > { %p10_p7 = scmp.ge.s32.totalorder %s13_s16, 6   ;;  %s467_s13 = smov %s382_s15 }
  0x23   : > { %s468_s14 = smov %s471_s17  ;;  %s469_s15 = smov %s475_s18 }
  0x24   :  { %12 = sbr.rel (!%p10_p7) target bundleno = 3 (0x3), region = 62 }

// kernel: encoder_forward.12
= control target key start
LH: loop header
LB: loop body
LE: loop exit
PB: predicated region body
PF: predicated region fallthrough
CT: control target
= control target key end

     0   :  { %s2121_s21 = smov 0   ;;  %s2123_s22 = smov 0   ;;  %s2514_s0 = inlined_call_operand.vmem [shape: bf16[2,5,3,256], index: 0, kind: input, shape index: {}, may-alias: {0,1,2}]   ;;  %s2515_s1 = inlined_call_operand.vmem [shape: bf16[2,5,3,256], index: 1, kind: input, shape index: {}, may-alias: {0,1,2}]   ;;  %s2516_s2 = inlined_call_operand.vmem [shape: bf16[2,5,3,256], index: 2, kind: input, shape index: {}, may-alias: {0,1,2}]   ;;  %s2517_s3 = inlined_call_operand.vmem [shape: bf16[1536,128], index: 3, kind: input, shape index: {}]   ;;  %s2518_s4 = inlined_call_operand.vmem [shape: f32[1,128], index: 4, kind: input, shape index: {}]   ;;  %s2519_s5 = inlined_call_operand.vmem [shape: bf16[2,2,2,128], index: 5, kind: output, shape index: {0}]   ;;  %s2520_s6 = inlined_call_operand.vmem [shape: f32[8,128], index: 6, kind: output, shape index: {1}]  }
   0x1   :  { %s2125_s23 = smov 0   ;;  %s2127_s24 = smov 0  }
   0x2   :  { %s2129_s25 = smov 0  }
   0x3 LB: > { %2522 = sst [smem:[#allocation2_spill]] %s2079_s24  ;;  %s26_s26 = sadd.s32 1, %s2075_s23  ;;  %s2083_s25 = sphi %s2129_s25, %s17_s25   ;;  %s2079_s24 = sphi %s2127_s24, %s2527_s24   ;;  %s2075_s23 = sphi %s2125_s23, %s2529_s23   ;;  %s2071_s22 = sphi %s2123_s22, %s2525_s22   ;;  %s2067_s21 = sphi %s2121_s21, %s2528_s21  }
   0x4   : > { %s29_s27 = sadd.s32 1, %s2079_s24  ;;  %p27_p0 = scmp.ge.s32.totalorder %s26_s26, 2 }
   0x5   : > { %p1662_p1 = scmp.ge.s32.totalorder %s2083_s25, 1  ;;  %p282_p2 = scmp.lt.s32.totalorder %s2083_s25, 5 }
   0x6   : > { %s2531_s26 = smov (%p27_p0, %s26_s26), 0  ;;  %s2533_s27 = smov (!%p27_p0, %s29_s27), %s2079_s24 }
   0x7   : > { %2523 = sst [smem:[#allocation3_spill]] %s2531_s26  ;;  %p283_p3 = pnand %p1662_p1, %p282_p2 }
   0x8   : > { %p31_p4 = scmp.ge.s32.totalorder %s2533_s27, 2  ;;  %s1663_s28 = sshll.u32 (!%p283_p3), %s2067_s21, 1 }
   0x9   : > { %286 = sbr.rel (%p283_p3) target bundleno = 372 (0x174), region = 40  ;;  %p342_p5 = scmp.lt.s32.totalorder (!%p283_p3), %s2071_s22, 1 }
   0xa   : > { %s2535_s27 = smov (%p31_p4, %s2533_s27), 0  ;;  %p344_p6 = scmp.lt.s32.totalorder (!%p283_p3), %s1663_s28, 4 }
   0xb   : > { %2524 = sst [smem:[#allocation4_spill]] %s2535_s27  ;;  %s353_s29 = sadd.s32 (!%p283_p3), 1, %s1663_s28 }
   0xc   : > { %p356_p7 = scmp.lt.s32.totalorder (!%p283_p3), %s353_s29, 4  ;;  %s366_s10 = sadd.s32 (!%p283_p3), 2, %s1663_s28 }
   0xd   : > { %p369_p8 = scmp.lt.s32.totalorder (!%p283_p3), %s366_s10, 4  ;;  %p380_p9 = scmp.lt.s32.totalorder (!%p283_p3), %s2067_s21, 1 }
   0xe   : > { %p386_p10 = scmp.eq.s32.totalorder (!%p283_p3), %s2071_s22, 0  ;;  %p387_p11 = scmp.eq.s32.totalorder (!%p283_p3), %s2067_s21, 0 }
  0x10   : > { %s343_s30 = scalar_select %p342_p5, %s2071_s22, 1 }
  0x11   : > { %s345_s7 = scalar_select %p344_p6, %s1663_s28, 4 }
  0x12   : > { %s1907_s8 = smul.u32 10, %s343_s30  ;;  %s1672_s16 = sshll.u32 %s343_s30, 1 }
  0x13   : > { %s1664_s9 = sshll.u32 %s345_s7, 1  ;;  %s2537_s29 = smov (!%p356_p7, %s353_s29), 4 }
  0x14   : > { %s348_s11 = sadd.s32 %s1907_s8, %s1664_s9  ;;  %s2539_s10 = smov (!%p369_p8, %s366_s10), 4 }
  0x15   : > { %s1665_s12 = sshll.u32 %s348_s11, 1  ;;  %s1667_s17 = sshll.u32 %s2537_s29, 1 }
  0x16   : > { %s2162_s15 = scalar_lea.vmem %s2514_s0, %s1665_s12  ;;  %s360_s18 = sadd.s32 %s1907_s8, %s1667_s17 }
  0x17   : > { %s1670_s19 = sshll.u32 %s2539_s10, 1  ;;  %s1668_s20 = sshll.u32 %s360_s18, 1 }
  0x18   : > { %s373_s28 = sadd.s32 %s1907_s8, %s1670_s19  ;;  %s2168_s11 = scalar_lea.vmem %s2515_s1, %s1668_s20 }
  0x19   : > { %s1671_s27 = sshll.u32 %s373_s28, 1  ;;  %s2541_s21 = smov (!%p380_p9, %s2067_s21), 1 }
  0x1a   : > { %s2173_s12 = scalar_lea.vmem %s2516_s2, %s1671_s27  ;;  %p388_p12 = pnand %p387_p11, %p386_p10 }
  0x1b   : > { %s2179_s22 = sadd.s32 %s1672_s16, %s2541_s21  ;;  %v2085_v0 = vmov (!%p388_p12), 0.0  }
  0x1c   : > { %s384_s8 = scalar_lea.vmem %s2519_s5, %s2179_s22  ;;  %391 = sbr.rel (%p388_p12) target bundleno = 35 (0x23), region = 44  ;;  %392 = vst [vmem:[%s2520_s6] sm:$0xff] (!%p388_p12), %v2085_v0 }
  0x23 PF: > { %v1949_v1 = vld [vmem:[%s2517_s3 + $0xc0] sm:$0xff]   ;;  %v1953_v5 = vld [vmem:[%s2517_s3 + $0xc8] sm:$0xff]   ;;  %v1957_v9 = vld [vmem:[%s2517_s3 + $0xd0] sm:$0xff]   ;;  %vm1500_vm0 = vcmask 1041408  }
  0x24   : > { %v1950_v2 = vld [vmem:[%s2517_s3 + $0x40] sm:$0xff]   ;;  %1775 = vmatprep.subr.bf16.mxu0 %v1949_v1  ;;  %v1954_v6 = vld [vmem:[%s2517_s3 + $0x48] sm:$0xff]   ;;  %v1958_v10 = vld [vmem:[%s2517_s3 + $0x50] sm:$0xff]  }
  0x25   : > { %v1951_v3 = vld [vmem:[%s2517_s3 + $0x80] sm:$0xff]   ;;  %1797 = vmatprep.subr.bf16.mxu1 %v1950_v2  ;;  %v1955_v7 = vld [vmem:[%s2517_s3 + $0x88] sm:$0xff]   ;;  %v1959_v11 = vld [vmem:[%s2517_s3 + $0x90] sm:$0xff]  }
  0x26   : > { %v1952_v4 = vld [vmem:[%s2517_s3] sm:$0xff]   ;;  %1776 = vmatpush3.bf16.msra.mxu0 %v1951_v3  ;;  %v1956_v8 = vld [vmem:[%s2517_s3 + $0x8] sm:$0xff]   ;;  %v1960_v12 = vld [vmem:[%s2517_s3 + $0x10] sm:$0xff]  }
  0x27   : > { %1798 = vmatpush3.bf16.msra.mxu1 %v1952_v4  ;;  %1777 = vmatprep.subr.bf16.mxu0 %v1953_v5  ;;  %v1961_v13 = vld [vmem:[%s2517_s3 + $0xd8] sm:$0xff]   ;;  %v1965_v17 = vld [vmem:[%s2517_s3 + $0xe0] sm:$0xff]   ;;  %v1969_v21 = vld [vmem:[%s2517_s3 + $0xe8] sm:$0xff]  }
  0x28   : > { %1799 = vmatprep.subr.bf16.mxu1 %v1954_v6  ;;  %v1962_v14 = vld [vmem:[%s2517_s3 + $0x58] sm:$0xff]   ;;  %v1966_v18 = vld [vmem:[%s2517_s3 + $0x60] sm:$0xff]   ;;  %v1970_v22 = vld [vmem:[%s2517_s3 + $0x68] sm:$0xff]  }
  0x29   : > { %v1963_v15 = vld [vmem:[%s2517_s3 + $0x98] sm:$0xff]   ;;  %v1967_v19 = vld [vmem:[%s2517_s3 + $0xa0] sm:$0xff]   ;;  %v1971_v23 = vld [vmem:[%s2517_s3 + $0xa8] sm:$0xff]  }
  0x2a   : > { %1778 = vmatpush3.bf16.msra.mxu0 %v1955_v7  ;;  %v1964_v16 = vld [vmem:[%s2517_s3 + $0x18] sm:$0xff]   ;;  %v1968_v20 = vld [vmem:[%s2517_s3 + $0x20] sm:$0xff]   ;;  %v1972_v24 = vld [vmem:[%s2517_s3 + $0x28] sm:$0xff]  }
  0x2b   : > { %1800 = vmatpush3.bf16.msra.mxu1 %v1956_v8  ;;  %1779 = vmatprep.subr.bf16.mxu0 %v1957_v9  ;;  %v1973_v25 = vld [vmem:[%s2517_s3 + $0xf0] sm:$0xff]   ;;  %v1977_v29 = vld [vmem:[%s2517_s3 + $0xf8] sm:$0xff]   ;;  %v1673_v33 = vld.sshfl [vmem:[%s2162_s15] sm:$0x33 pattern:$0x76325410] }
  0x2c   : > { %1801 = vmatprep.subr.bf16.mxu1 %v1958_v10  ;;  %v1974_v26 = vld [vmem:[%s2517_s3 + $0x70] sm:$0xff]   ;;  %v1978_v30 = vld [vmem:[%s2517_s3 + $0x78] sm:$0xff]   ;;  %v466_v34 = vcombine.high %v1673_v33, %v1673_v33  ;;  %v468_v35 = vshrl.u32 %v1673_v33, 16  ;;  %v470_v36 = vshll.u32 %v1673_v33, 16  ;;  %v1981_v37 = vld [vmem:[%s2517_s3 + $0x140] sm:$0xff]  }
  0x2d   : > { %v1975_v27 = vld [vmem:[%s2517_s3 + $0xb0] sm:$0xff]   ;;  %v1979_v31 = vld [vmem:[%s2517_s3 + $0xb8] sm:$0xff]   ;;  %v1982_v38 = vld [vmem:[%s2517_s3 + $0x1c0] sm:$0xff]  }
  0x2e   : > { %1780 = vmatpush3.bf16.msra.mxu0 %v1959_v11  ;;  %v1976_v28 = vld [vmem:[%s2517_s3 + $0x30] sm:$0xff]   ;;  %v1980_v32 = vld [vmem:[%s2517_s3 + $0x38] sm:$0xff]   ;;  %v475_v39 = vshrl.u32 %v466_v34, 16  ;;  %v477_v40 = vshll.u32 %v466_v34, 16  ;;  %749 = vmatprep.mubr.bf16.mxu1 %v466_v34  ;;  %v472_v41 = vrot.slane %v470_v36, 1  ;;  %v1984_v42 = vld [vmem:[%s2517_s3 + $0x180] sm:$0xff]  }
  0x2f   : > { %1802 = vmatpush3.bf16.msra.mxu1 %v1960_v12  ;;  %1781 = vmatprep.subr.bf16.mxu0 %v1961_v13  ;;  %v1983_v44 = vld [vmem:[%s2517_s3 + $0x100] sm:$0xff]   ;;  %v1986_v46 = vld [vmem:[%s2517_s3 + $0x1c8] sm:$0xff]   ;;  %v1990_v51 = vld [vmem:[%s2517_s3 + $0x1d0] sm:$0xff]  }
  0x30   : > { %1803 = vmatprep.subr.bf16.mxu1 %v1962_v14  ;;  %v479_v43 = vrot.slane %v477_v40, 1  ;;  %v473_v45 = vor.u32 %v472_v41, %v468_v35  ;;  %v1985_v48 = vld [vmem:[%s2517_s3 + $0x148] sm:$0xff]   ;;  %v1989_v52 = vld [vmem:[%s2517_s3 + $0x150] sm:$0xff]   ;;  %v1994_v55 = vld [vmem:[%s2517_s3 + $0x1d8] sm:$0xff]  }
  0x31   : > { %v1988_v49 = vld [vmem:[%s2517_s3 + $0x188] sm:$0xff]   ;;  %v1992_v53 = vld [vmem:[%s2517_s3 + $0x190] sm:$0xff]   ;;  %v1993_v56 = vld [vmem:[%s2517_s3 + $0x158] sm:$0xff]  }
  0x32   : > { %1782 = vmatpush3.bf16.msra.mxu0 %v1963_v15  ;;  %v480_v47 = vor.u32 %v479_v43, %v475_v39  ;;  %v1987_v50 = vld [vmem:[%s2517_s3 + $0x108] sm:$0xff]   ;;  %v1991_v54 = vld [vmem:[%s2517_s3 + $0x110] sm:$0xff]   ;;  %v1996_v57 = vld [vmem:[%s2517_s3 + $0x198] sm:$0xff]  }
  0x33   : > { %1804 = vmatpush3.bf16.msra.mxu1 %v1964_v16  ;;  %1783 = vmatprep.subr.bf16.mxu0 %v1965_v17  ;;  %v1995_v58 = vld [vmem:[%s2517_s3 + $0x118] sm:$0xff]   ;;  %v1998_v59 = vld [vmem:[%s2517_s3 + $0x1e0] sm:$0xff]   ;;  %v2002_v63 = vld [vmem:[%s2517_s3 + $0x1e8] sm:$0xff]  }
  0x34   : > { %1805 = vmatprep.subr.bf16.mxu1 %v1966_v18  ;;  %611 = vmatprep.mubr.bf16.mxu0 %v480_v47  ;;  %v1997_v60 = vld [vmem:[%s2517_s3 + $0x160] sm:$0xff]   ;;  %v2001_v0 = vld [vmem:[%s2517_s3 + $0x168] sm:$0xff]   ;;  %v2006_v3 = vld [vmem:[%s2517_s3 + $0x1f0] sm:$0xff]  }
  0x35   : > { %v2000_v61 = vld [vmem:[%s2517_s3 + $0x1a0] sm:$0xff]   ;;  %v2004_v1 = vld [vmem:[%s2517_s3 + $0x1a8] sm:$0xff]   ;;  %v2005_v4 = vld [vmem:[%s2517_s3 + $0x170] sm:$0xff]  }
  0x36   : > { %1784 = vmatpush3.bf16.msra.mxu0 %v1967_v19  ;;  %v1999_v62 = vld [vmem:[%s2517_s3 + $0x120] sm:$0xff]   ;;  %v2003_v2 = vld [vmem:[%s2517_s3 + $0x128] sm:$0xff]   ;;  %v2008_v5 = vld [vmem:[%s2517_s3 + $0x1b0] sm:$0xff]  }
  0x37   : > { %1806 = vmatpush3.bf16.msra.mxu1 %v1968_v20  ;;  %1785 = vmatprep.subr.bf16.mxu0 %v1969_v21  ;;  %v2007_v6 = vld [vmem:[%s2517_s3 + $0x130] sm:$0xff]   ;;  %v2010_v7 = vld [vmem:[%s2517_s3 + $0x1f8] sm:$0xff]   ;;  %v1706_v10 = vld.sshfl [vmem:[%s2168_s11] sm:$0x33 pattern:$0x76325410] }
  0x38   : > { %1807 = vmatprep.subr.bf16.mxu1 %v1970_v22  ;;  %v2009_v8 = vld [vmem:[%s2517_s3 + $0x178] sm:$0xff]   ;;  %v798_v12 = vcombine.high %v1706_v10, %v1706_v10  ;;  %v971_v13 = vshrl.u32 %v1706_v10, 16  ;;  %v973_v14 = vshll.u32 %v1706_v10, 16  ;;  %v2014_v15 = vld [vmem:[%s2517_s3 + $0x2c0] sm:$0xff]   ;;  %v2033_v41 = vld [vmem:[%s2517_s3 + $0x268] sm:$0xff]  }
  0x39   : > { %v2012_v9 = vld [vmem:[%s2517_s3 + $0x1b8] sm:$0xff]   ;;  %v2013_v19 = vld [vmem:[%s2517_s3 + $0x240] sm:$0xff]   ;;  %v2035_v43 = vld [vmem:[%s2517_s3 + $0x228] sm:$0xff]  }
  0x3a   : > { %1786 = vmatpush3.bf16.msra.mxu0 %v1971_v23  ;;  %v2011_v11 = vld [vmem:[%s2517_s3 + $0x138] sm:$0xff]   ;;  %v978_v16 = vshrl.u32 %v798_v12, 16  ;;  %v980_v17 = vshll.u32 %v798_v12, 16  ;;  %v975_v18 = vrot.slane %v973_v14, 1  ;;  %v2015_v21 = vld [vmem:[%s2517_s3 + $0x200] sm:$0xff]   ;;  %v2039_v47 = vld [vmem:[%s2517_s3 + $0x230] sm:$0xff]  }
  0x3b   : > { %1808 = vmatpush3.bf16.msra.mxu1 %v1972_v24  ;;  %1787 = vmatprep.subr.bf16.mxu0 %v1973_v25  ;;  %v2016_v23 = vld [vmem:[%s2517_s3 + $0x280] sm:$0xff]   ;;  %v2017_v25 = vld [vmem:[%s2517_s3 + $0x248] sm:$0xff]   ;;  %v2026_v34 = vld [vmem:[%s2517_s3 + $0x2d8] sm:$0xff]  }
  0x3c   : > { %1809 = vmatprep.subr.bf16.mxu1 %v1974_v26  ;;  %v982_v20 = vrot.slane %v980_v17, 1  ;;  %v976_v22 = vor.u32 %v975_v18, %v971_v13  ;;  %v2018_v26 = vld [vmem:[%s2517_s3 + $0x2c8] sm:$0xff]   ;;  %v2027_v35 = vld [vmem:[%s2517_s3 + $0x218] sm:$0xff]   ;;  %v2031_v39 = vld [vmem:[%s2517_s3 + $0x220] sm:$0xff]  }
  0x3d   : > { %v2028_v36 = vld [vmem:[%s2517_s3 + $0x298] sm:$0xff]   ;;  %v2032_v40 = vld [vmem:[%s2517_s3 + $0x2a0] sm:$0xff]  }
  0x3e   : > { %1788 = vmatpush3.bf16.msra.mxu0 %v1975_v27  ;;  %v983_v24 = vor.u32 %v982_v20, %v978_v16  ;;  %v2019_v27 = vld [vmem:[%s2517_s3 + $0x208] sm:$0xff]  }
  0x3f   : > { %1810 = vmatpush3.bf16.msra.mxu1 %v1976_v28  ;;  %1789 = vmatprep.subr.bf16.mxu0 %v1977_v29  ;;  %v2020_v28 = vld [vmem:[%s2517_s3 + $0x288] sm:$0xff]   ;;  %v2021_v29 = vld [vmem:[%s2517_s3 + $0x250] sm:$0xff]  }
  0x40   : > { %1811 = vmatprep.subr.bf16.mxu1 %v1978_v30  ;;  %v2022_v30 = vld [vmem:[%s2517_s3 + $0x2d0] sm:$0xff]  }
  0x42   : > { %1790 = vmatpush3.bf16.msra.mxu0 %v1979_v31  ;;  %v2023_v31 = vld [vmem:[%s2517_s3 + $0x210] sm:$0xff]  }
  0x43   : > { %1812 = vmatpush3.bf16.msra.mxu1 %v1980_v32  ;;  %1819 = vmatprep.subr.bf16.mxu0 %v1981_v37  ;;  %v2024_v32 = vld [vmem:[%s2517_s3 + $0x290] sm:$0xff]   ;;  %v2029_v37 = vld [vmem:[%s2517_s3 + $0x260] sm:$0xff]  }
  0x44   : > { %1841 = vmatprep.subr.bf16.mxu1 %v1982_v38  ;;  %v2030_v38 = vld [vmem:[%s2517_s3 + $0x2e0] sm:$0xff]  }
  0x45   : > { %612 = vmatmul.mubr.bf16.vlgmr.msra.gmra.mrb[0].mxu0 %v473_v45  ;;  %v2037_v45 = vld [vmem:[%s2517_s3 + $0x270] sm:$0xff]  }
  0x46   : > { %750 = vmatmul.mubr.bf16.vlgmr.msra.gmra.mrb[0].mxu1 %v1673_v33  ;;  %1820 = vmatpush3.bf16.msra.mxu0 %v1983_v44  ;;  %v2025_v33 = vld [vmem:[%s2517_s3 + $0x258] sm:$0xff]   ;;  %v2036_v44 = vld [vmem:[%s2517_s3 + $0x2a8] sm:$0xff]  }
  0x47   : > { %1842 = vmatpush3.bf16.msra.mxu1 %v1984_v42  ;;  %1821 = vmatprep.subr.bf16.mxu0 %v1985_v48  ;;  %v2034_v42 = vld [vmem:[%s2517_s3 + $0x2e8] sm:$0xff]   ;;  %v2040_v48 = vld [vmem:[%s2517_s3 + $0x2b0] sm:$0xff]  }
  0x48   : > { %1843 = vmatprep.subr.bf16.mxu1 %v1986_v46  ;;  %929 = vmatprep.mubr.bf16.mxu0 %v798_v12  ;;  %v2038_v46 = vld [vmem:[%s2517_s3 + $0x2f0] sm:$0xff]  }
  0x49   : > { %1114 = vmatprep.mubr.bf16.mxu1 %v983_v24 }
  0x4a   : > { %1822 = vmatpush3.bf16.msra.mxu0 %v1987_v50  ;;  %v2042_v50 = vld [vmem:[%s2517_s3 + $0x2f8] sm:$0xff]  }
  0x4b   : > { %1844 = vmatpush3.bf16.msra.mxu1 %v1988_v49  ;;  %1823 = vmatprep.subr.bf16.mxu0 %v1989_v52  ;;  %v2041_v49 = vld [vmem:[%s2517_s3 + $0x278] sm:$0xff]  }
  0x4c   : > { %1845 = vmatprep.subr.bf16.mxu1 %v1990_v51  ;;  %v1739_v51 = vld.sshfl [vmem:[%s2173_s12] sm:$0x33 pattern:$0x76325410]  ;;  %v2043_v52 = vld [vmem:[%s2517_s3 + $0x238] sm:$0xff]  }
  0x4e   : > { %1824 = vmatpush3.bf16.msra.mxu0 %v1991_v54  ;;  %v1339_v54 = vshll.u32 %v1739_v51, 16 }
  0x4f   : > { %1846 = vmatpush3.bf16.msra.mxu1 %v1992_v53  ;;  %1825 = vmatprep.subr.bf16.mxu0 %v1993_v56  ;;  %v1164_v53 = vcombine.high %v1739_v51, %v1739_v51  ;;  %v1337_v56 = vshrl.u32 %v1739_v51, 16 }
  0x50   : > { %1847 = vmatprep.subr.bf16.mxu1 %v1994_v55  ;;  %v2044_v55 = vld [vmem:[%s2517_s3 + $0x2b8] sm:$0xff]  }
  0x52   : > { %1826 = vmatpush3.bf16.msra.mxu0 %v1995_v58  ;;  %v1346_v58 = vshll.u32 %v1164_v53, 16 }
  0x53   : > { %1848 = vmatpush3.bf16.msra.mxu1 %v1996_v57  ;;  %1827 = vmatprep.subr.bf16.mxu0 %v1997_v60  ;;  %v1344_v57 = vshrl.u32 %v1164_v53, 16 }
  0x54   : > { %1849 = vmatprep.subr.bf16.mxu1 %v1998_v59  ;;  %v1341_v59 = vrot.slane %v1339_v54, 1  ;;  %v1348_v60 = vrot.slane %v1346_v58, 1 }
  0x56   : > { %1828 = vmatpush3.bf16.msra.mxu0 %v1999_v62  ;;  %v1349_v62 = vor.u32 %v1348_v60, %v1344_v57 }
  0x57   : > { %1850 = vmatpush3.bf16.msra.mxu1 %v2000_v61  ;;  %1829 = vmatprep.subr.bf16.mxu0 %v2001_v0  ;;  %v1342_v61 = vor.u32 %v1341_v59, %v1337_v56 }
  0x58   : > { %1851 = vmatprep.subr.bf16.mxu1 %v2002_v63 }
  0x5a   : > { %1830 = vmatpush3.bf16.msra.mxu0 %v2003_v2 }
  0x5b   : > { %1852 = vmatpush3.bf16.msra.mxu1 %v2004_v1  ;;  %1831 = vmatprep.subr.bf16.mxu0 %v2005_v4 }
  0x5c   : > { %1853 = vmatprep.subr.bf16.mxu1 %v2006_v3 }
  0x5e   : > { %1832 = vmatpush3.bf16.msra.mxu0 %v2007_v6 }
  0x5f   : > { %1854 = vmatpush3.bf16.msra.mxu1 %v2008_v5  ;;  %1833 = vmatprep.subr.bf16.mxu0 %v2009_v8 }
  0x60   : > { %1855 = vmatprep.subr.bf16.mxu1 %v2010_v7 }
  0x62   : > { %1834 = vmatpush3.bf16.msra.mxu0 %v2011_v11 }
  0x63   : > { %1856 = vmatpush3.bf16.msra.mxu1 %v2012_v9  ;;  %1863 = vmatprep.subr.bf16.mxu0 %v2013_v19 }
  0x64   : > { %1885 = vmatprep.subr.bf16.mxu1 %v2014_v15 }
  0x65   : > { %930 = vmatmul.mubr.bf16.vlgmr.msra.gmra.mrb[4].mxu0 %v1706_v10 }
  0x66   : > { %1115 = vmatmul.mubr.bf16.vlgmr.msra.gmra.mrb[4].mxu1 %v976_v22  ;;  %1864 = vmatpush3.bf16.msra.mxu0 %v2015_v21 }
  0x67   : > { %1886 = vmatpush3.bf16.msra.mxu1 %v2016_v23  ;;  %1865 = vmatprep.subr.bf16.mxu0 %v2017_v25 }
  0x68   : > { %1887 = vmatprep.subr.bf16.mxu1 %v2018_v26  ;;  %1295 = vmatprep.mubr.bf16.mxu0 %v1164_v53 }
  0x69   : > { %1480 = vmatprep.mubr.bf16.mxu1 %v1349_v62 }
  0x6a   : > { %1866 = vmatpush3.bf16.msra.mxu0 %v2019_v27 }
  0x6b   : > { %1888 = vmatpush3.bf16.msra.mxu1 %v2020_v28  ;;  %1867 = vmatprep.subr.bf16.mxu0 %v2021_v29 }
  0x6c   : > { %1889 = vmatprep.subr.bf16.mxu1 %v2022_v30 }
  0x6e   : > { %1868 = vmatpush3.bf16.msra.mxu0 %v2023_v31 }
  0x6f   : > { %1890 = vmatpush3.bf16.msra.mxu1 %v2024_v32  ;;  %1869 = vmatprep.subr.bf16.mxu0 %v2025_v33  ;;  %v1772_v32 = vld [vmem:[%s2518_s4] ss:$0 sm:$0xff] }
  0x70   : > { %1891 = vmatprep.subr.bf16.mxu1 %v2026_v34 }
  0x72   : > { %1870 = vmatpush3.bf16.msra.mxu0 %v2027_v35 }
  0x73   : > { %1892 = vmatpush3.bf16.msra.mxu1 %v2028_v36  ;;  %1871 = vmatprep.subr.bf16.mxu0 %v2029_v37 }
  0x74   : > { %1893 = vmatprep.subr.bf16.mxu1 %v2030_v38 }
  0x76   : > { %1872 = vmatpush3.bf16.msra.mxu0 %v2031_v39 }
  0x77   : > { %1894 = vmatpush3.bf16.msra.mxu1 %v2032_v40  ;;  %1873 = vmatprep.subr.bf16.mxu0 %v2033_v41 }
  0x78   : > { %1895 = vmatprep.subr.bf16.mxu1 %v2034_v42 }
  0x7a   : > { %1874 = vmatpush3.bf16.msra.mxu0 %v2035_v43 }
  0x7b   : > { %1896 = vmatpush3.bf16.msra.mxu1 %v2036_v44  ;;  %1875 = vmatprep.subr.bf16.mxu0 %v2037_v45 }
  0x7c   : > { %1897 = vmatprep.subr.bf16.mxu1 %v2038_v46 }
  0x7e   : > { %1876 = vmatpush3.bf16.msra.mxu0 %v2039_v47 }
  0x7f   : > { %1898 = vmatpush3.bf16.msra.mxu1 %v2040_v48  ;;  %1877 = vmatprep.subr.bf16.mxu0 %v2041_v49  ;;  %v1499_v49 = vld [vmem:[%s2520_s6] sm:$0x1] }
  0x80   : > { %1899 = vmatprep.subr.bf16.mxu1 %v2042_v50 }
  0x82   : > { %1878 = vmatpush3.bf16.msra.mxu0 %v2043_v52  ;;  %v1510_v52 = vld [vmem:[%s2520_s6 + $0x1] sm:$0x1] }
  0x83   : > { %1900 = vmatpush3.bf16.msra.mxu1 %v2044_v55 }
  0x85   : > { %1296 = vmatmul.mubr.bf16.vlgmr.msra.gmra.mrb[8].mxu0 %v1739_v51 }
  0x86   : > { %1481 = vmatmul.mubr.bf16.vlgmr.msra.gmra.mrb[8].mxu1 %v1342_v61 }
 0x118   : > { %v1791_v4 = vpop.f32.mrb[0].mxu0 }
 0x119   : > { %v1813_v63 = vpop.f32.mrb[0].mxu1  ;;  %v1792_v5 = vpop.f32.mrb[1].mxu0 }
 0x11a   : > { %v1814_v0 = vpop.f32.mrb[1].mxu1  ;;  %v1793_v6 = vadd.f32 %v1792_v5, %v1791_v4  ;;  %v1794_v7 = vpop.f32.mrb[2].mxu0 }
 0x11b   : > { %v1815_v1 = vadd.f32 %v1814_v0, %v1813_v63  ;;  %v1816_v2 = vpop.f32.mrb[2].mxu1  ;;  %v1795_v8 = vpop.f32.mrb[3].mxu0 }
 0x11c   : > { %v1817_v3 = vpop.f32.mrb[3].mxu1 }
 0x11d   : > { %v752_v9 = vadd.f32 %v1815_v1, %v1793_v6 }
 0x138   : > { %v1835_v10 = vpop.f32.mrb[4].mxu0 }
 0x139   : > { %v1857_v11 = vpop.f32.mrb[4].mxu1  ;;  %v1836_v12 = vpop.f32.mrb[5].mxu0 }
 0x13a   : > { %v1837_v13 = vadd.f32 %v1836_v12, %v1835_v10  ;;  %v1858_v14 = vpop.f32.mrb[5].mxu1  ;;  %v1838_v15 = vpop.f32.mrb[6].mxu0 }
 0x13b   : > { %v1859_v16 = vadd.f32 %v1858_v14, %v1857_v11  ;;  %v1860_v17 = vpop.f32.mrb[6].mxu1  ;;  %v1839_v18 = vpop.f32.mrb[7].mxu0 }
 0x13c   : > { %v937_v19 = vadd.f32 %v1837_v13, %v752_v9  ;;  %v1861_v20 = vpop.f32.mrb[7].mxu1 }
 0x13e   : > { %v1122_v21 = vadd.f32 %v1859_v16, %v937_v19 }
 0x158   : > { %v1879_v22 = vpop.f32.mrb[8].mxu0 }
 0x159   : > { %v1880_v23 = vpop.f32.mrb[9].mxu0  ;;  %v1901_v24 = vpop.f32.mrb[8].mxu1 }
 0x15a   : > { %v1881_v25 = vadd.f32 %v1880_v23, %v1879_v22  ;;  %v1882_v26 = vpop.f32.mrb[10].mxu0  ;;  %v1902_v27 = vpop.f32.mrb[9].mxu1 }
 0x15b   : > { %v1883_v28 = vpop.f32.mrb[11].mxu0  ;;  %v1903_v30 = vadd.f32 %v1902_v27, %v1901_v24  ;;  %v1904_v31 = vpop.f32.mrb[10].mxu1 }
 0x15c   : > { %v1303_v29 = vadd.f32 %v1881_v25, %v1122_v21  ;;  %v1905_v33 = vpop.f32.mrb[11].mxu1 }
 0x15e   : > { %v1488_v34 = vadd.f32 %v1903_v30, %v1303_v29 }
 0x160   : > { %v1496_v35 = vadd.f32 %v1772_v32, %v1488_v34 }
 0x162   : > { %v1497_v36 = vpack.c.bf16 %v1496_v35, %v1496_v35  ;;  %v1501_v37 = vsel %vm1500_vm0, %v1496_v35, 0.0  ;;  %v1511_v38 = vmul.f32 %v1496_v35, %v1496_v35 }
 0x163   : > { %v1502_v39 = vrot.slane %v1501_v37, 4 }
 0x164   : > { %1498 = vst [vmem:[%s384_s8] sm:$0x1] %v1497_v36  ;;  %v1512_v40 = vsel %vm1500_vm0, %v1511_v38, 0.0 }
 0x165   : > { %v1503_v41 = vadd.f32 %v1502_v39, %v1501_v37  ;;  %v1513_v42 = vrot.slane %v1512_v40, 4 }
 0x167   : > { %v1504_v43 = vrot.slane %v1503_v41, 2  ;;  %v1514_v44 = vadd.f32 %v1513_v42, %v1512_v40 }
 0x169   : > { %v1505_v45 = vadd.f32 %v1504_v43, %v1503_v41  ;;  %v1515_v46 = vrot.slane %v1514_v44, 2 }
 0x16b   : > { %v1506_v47 = vrot.slane %v1505_v45, 1  ;;  %v1516_v48 = vadd.f32 %v1515_v46, %v1514_v44 }
 0x16d   : > { %v1507_v50 = vadd.f32 %v1506_v47, %v1505_v45  ;;  %v1517_v51 = vrot.slane %v1516_v48, 1 }
 0x16f   : > { %v1508_v53 = vadd.f32 %v1507_v50, %v1499_v49  ;;  %v1518_v54 = vadd.f32 %v1517_v51, %v1516_v48 }
 0x171   : > { %1509 = vst [vmem:[%s2520_s6] sm:$0x1] %v1508_v53  ;;  %v1519_v55 = vadd.f32 %v1518_v54, %v1510_v52 }
 0x173   : > { %1520 = vst [vmem:[%s2520_s6 + $0x1] sm:$0x1] %v1519_v55 }
 0x174 PF: > { %s17_s25 = sadd.s32 1, %s2083_s25   ;;  %s2525_s22 = sld [smem:[#allocation2_spill]] }
 0x175   : > { %p14_p13 = scmp.ge.s32.totalorder %s17_s25, 6   ;;  %s2526_s27 = sld [smem:[#allocation3_spill]] }
 0x176   : > { %s2527_s24 = sld [smem:[#allocation4_spill]]  ;;  %s2528_s21 = smov %s2075_s23 }
 0x177   :  { %16 = sbr.rel (!%p14_p13) target bundleno = 3 (0x3), region = 88 }
 0x17b   : > { %s2529_s23 = smov %s2526_s27 }

</bundles_post_ra>
